<compile_context>
chip_gen: v5e
topology: v5e:2x2
jax: 0.10.0
libtpu: 0.0.40
codegen_flags: <defaults>
</compile_context>

<pallas_src>
import functools

import numpy as np
import jax
import jax.numpy as jnp
from jax import lax
from jax.experimental import pallas as pl
from jax.experimental.pallas import tpu as pltpu

BN_EPS = 1e-5
BN_MOMENTUM = 0.1
CARDINALITY = 32  # BottleneckX.cardinality


# ----------------------------------------------------------------------------
# Hardware-aware defaults
# ----------------------------------------------------------------------------
def _tpu_device_kind():
    try:
        return jax.devices()[0].device_kind.lower()
    except Exception:
        return ""


def _is_v7x():
    kind = _tpu_device_kind()
    return ("v7" in kind) or ("tpu7" in kind)


def _default_vmem_limit_bytes():
    """Generation-aware VMEM limit: ~75% of physical, capped at 100 MiB."""
    cap = None
    try:
        cap = int(pltpu.get_tpu_info().vmem_capacity_bytes)
    except Exception:
        cap = None
    if not cap or cap <= 0:
        cap = (64 if _is_v7x() else 128) * 1024 * 1024
    return min((cap * 3) // 4, 100 * 1024 * 1024)


# ----------------------------------------------------------------------------
# Pallas kernel: one batch image per grid step.
# ----------------------------------------------------------------------------
def _bottleneckx_kernel(x_ref, *rest, H, W, Cin, Cb, Cout, blk, nblk,
                        dilation, identity_residual, accumulate):
    if identity_residual:
        w1_ref, b1_ref, w2_ref, b2_ref, w3_ref, b3_ref, out_ref = rest
        res_ref = x_ref
    else:
        res_ref, w1_ref, b1_ref, w2_ref, b2_ref, w3_ref, b3_ref, out_ref = rest

    d = dilation
    HW = H * W

    # ---- conv1 (1x1) + folded BN1 + ReLU ---------------------------------
    x2d = x_ref[0].reshape(HW, Cin).astype(jnp.bfloat16)
    t1 = jnp.dot(x2d, w1_ref[...], preferred_element_type=jnp.float32)
    t1 = jnp.maximum(t1 + b1_ref[...], 0.0)                      # (HW, Cb) f32

    # ---- conv2 (3x3, groups=32) + folded BN2 + ReLU ----------------------
    # Each of the 9 taps is a single flat-pixel-axis XLU roll (H and W shift
    # combined: shift = -(dh*W + dw)) plus an (HW, 1) boundary mask that is
    # broadcast across lanes (zeroes both row-wrap and top/bottom halo).
    h_idx = lax.broadcasted_iota(jnp.int32, (H, W, 1), 0).reshape(HW, 1)
    w_idx = lax.broadcasted_iota(jnp.int32, (H, W, 1), 1).reshape(HW, 1)

    offsets = [((kh - 1) * d, (kw - 1) * d)
               for kh in range(3) for kw in range(3)]             # tap order kh*3+kw

    def tap_mask(dh, dw):
        conds = []
        if dh > 0:
            conds.append(h_idx < H - dh)
        if dh < 0:
            conds.append(h_idx >= -dh)
        if dw > 0:
            conds.append(w_idx < W - dw)
        if dw < 0:
            conds.append(w_idx >= -dw)
        m = None
        for c in conds:
            m = c if m is None else (m & c)
        return m

    masks = [tap_mask(dh, dw) for dh, dw in offsets]

    def make_tap(src, dh, dw, mask):
        shift = (-(dh * W + dw)) % HW
        v = pltpu.roll(src, shift, axis=0) if shift else src
        if mask is not None:
            v = jnp.where(mask, v, 0.0)
        return v.astype(jnp.bfloat16)

    # Only the diagonal (group-aligned) 128-channel blocks of the grouped
    # weight are multiplied -> no structural-zero MXU FLOPs for Cb >= 256.
    t2_blocks = []
    for b in range(nblk):
        t1_blk = t1[:, b * blk:(b + 1) * blk]                    # lane-aligned slice
        w2b = w2_ref[b]                                          # (9*blk, blk) bf16
        if accumulate:
            # v7x: MRB in-place accumulation; never materialize the 9-tap slab.
            acc = jnp.zeros((HW, blk), jnp.float32)
            for t, (dh, dw) in enumerate(offsets):
                tap = make_tap(t1_blk, dh, dw, masks[t])
                acc = acc + jnp.dot(tap, w2b[t * blk:(t + 1) * blk],
                                    preferred_element_type=jnp.float32)
        else:
            # v5e/v6e: fused-K form, accumulation happens inside one matmul.
            slab = jnp.concatenate(
                [make_tap(t1_blk, dh, dw, masks[t])
                 for t, (dh, dw) in enumerate(offsets)], axis=1)  # (HW, 9*blk)
            acc = jnp.dot(slab, w2b, preferred_element_type=jnp.float32)
        t2_blk = jnp.maximum(acc + b2_ref[:, b * blk:(b + 1) * blk], 0.0)
        t2_blocks.append(t2_blk.astype(jnp.bfloat16))
    t2b = t2_blocks[0] if nblk == 1 else jnp.concatenate(t2_blocks, axis=1)

    # ---- conv3 (1x1) + folded BN3 + residual + ReLU ----------------------
    t3 = jnp.dot(t2b, w3_ref[...], preferred_element_type=jnp.float32)
    res = res_ref[0].reshape(HW, Cout).astype(jnp.float32)
    out = jnp.maximum(t3 + b3_ref[...] + res, 0.0)
    out_ref[0] = out.reshape(H, W, Cout).astype(out_ref.dtype)


# ----------------------------------------------------------------------------
# Wrappers
# ----------------------------------------------------------------------------
def bottleneckx_forward_nhwc(x_nhwc, params, residual_nhwc=None, *, dilation=1,
                             conv2_accumulate=None, out_dtype=None,
                             vmem_limit_bytes=None):
    """x_nhwc: (N, H, W, Cin) f32 or bf16. Returns (N, H, W, Cout) in out_dtype
    (defaults to x dtype).  This is the hot-path entry point (no transposes)."""
    x = x_nhwc
    N, H, W, Cin = x.shape
    Cb = params["b1"].shape[-1]
    Cout = params["b3"].shape[-1]
    nblk, nine_blk, blk = params["w2s"].shape
    assert nine_blk == 9 * blk and nblk * blk == Cb

    if out_dtype is None:
        out_dtype = x.dtype
    identity = residual_nhwc is None
    if identity and Cin != Cout:
        raise ValueError("identity residual requires Cin == Cout")
    if conv2_accumulate is None:
        conv2_accumulate = _is_v7x()          # MRB accumulation only pays on v7x
    if vmem_limit_bytes is None:
        vmem_limit_bytes = _default_vmem_limit_bytes()

    kernel = functools.partial(
        _bottleneckx_kernel, H=H, W=W, Cin=Cin, Cb=Cb, Cout=Cout,
        blk=blk, nblk=nblk, dilation=dilation, identity_residual=identity,
        accumulate=conv2_accumulate)

    in_specs = [pl.BlockSpec((1, H, W, Cin), lambda b: (b, 0, 0, 0))]      # x
    inputs = [x]
    if not identity:
        in_specs.append(pl.BlockSpec((1, H, W, Cout), lambda b: (b, 0, 0, 0)))
        inputs.append(residual_nhwc)
    in_specs += [
        pl.BlockSpec((Cin, Cb), lambda b: (0, 0)),           # w1 (BN1 folded, bf16)
        pl.BlockSpec((1, Cb), lambda b: (0, 0)),             # b1
        pl.BlockSpec((nblk, 9 * blk, blk), lambda b: (0, 0, 0)),  # w2 diagonal blocks
        pl.BlockSpec((1, Cb), lambda b: (0, 0)),             # b2
        pl.BlockSpec((Cb, Cout), lambda b: (0, 0)),          # w3 (BN3 folded, bf16)
        pl.BlockSpec((1, Cout), lambda b: (0, 0)),           # b3
    ]
    inputs += [params["w1f"], params["b1"], params["w2s"], params["b2"],
               params["w3f"], params["b3"]]

    return pl.pallas_call(
        kernel,
        out_shape=jax.ShapeDtypeStruct((N, H, W, Cout), out_dtype),
        grid_spec=pltpu.PrefetchScalarGridSpec(
            num_scalar_prefetch=0,
            grid=(N,),
            in_specs=in_specs,
            out_specs=pl.BlockSpec((1, H, W, Cout), lambda b: (b, 0, 0, 0)),
        ),
        compiler_params=pltpu.CompilerParams(
            dimension_semantics=("parallel",),
            vmem_limit_bytes=vmem_limit_bytes),
    )(*inputs)


def bottleneckx_forward(x_nchw, params, residual_nchw=None, *, dilation=1, **kw):
    """NCHW wrapper matching the PyTorch module interface.  Boundary use only —
    keep activations NHWC across layers and call bottleneckx_forward_nhwc to
    avoid the HBM relayout transposes on the hot path."""
    x = jnp.transpose(x_nchw, (0, 2, 3, 1))
    res = None if residual_nchw is None else jnp.transpose(residual_nchw, (0, 2, 3, 1))
    out = bottleneckx_forward_nhwc(x, params, res, dilation=dilation, **kw)
    return jnp.transpose(out, (0, 3, 1, 2))


# ----------------------------------------------------------------------------
# Deterministic parameter construction (mirrors BottleneckX.__init__ shapes)
# ----------------------------------------------------------------------------
def make_params(key, inplanes, planes):
    cardinality = CARDINALITY
    bottle_planes = planes * cardinality // 32
    cg = bottle_planes // cardinality                 # channels per group

    ks = jax.random.split(key, 15)

    def bn_fold(kg, kb, km, kv, c):
        gamma = jax.random.uniform(kg, (c,), minval=0.5, maxval=1.5)
        beta = jax.random.normal(kb, (c,)) * 0.1
        mean = jax.random.normal(km, (c,)) * 0.1
        var = jax.random.uniform(kv, (c,), minval=0.5, maxval=1.5)
        scale = gamma / jnp.sqrt(var + BN_EPS)
        bias = beta - mean * scale
        return (scale.reshape(1, c).astype(jnp.float32),
                bias.reshape(1, c).astype(jnp.float32))

    # conv1: torch weight (bottle, inplanes, 1, 1) -> (inplanes, bottle)
    w1_t = jax.random.normal(ks[0], (bottle_planes, inplanes)) * 0.1
    w1 = jnp.transpose(w1_t, (1, 0)).astype(jnp.float32)
    s1, b1 = bn_fold(ks[1], ks[2], ks[3], ks[4], bottle_planes)

    # conv2: torch grouped weight (bottle, cg, 3, 3)
    w2_t = np.asarray(jax.random.normal(ks[5], (bottle_planes, cg, 3, 3)) * 0.1,
                      dtype=np.float32)
    s2, b2 = bn_fold(ks[6], ks[7], ks[8], ks[9], bottle_planes)

    # Choose the per-matmul channel block: 128 lanes when the group boundaries
    # align (128 % cg == 0), else fall back to the single dense block.
    if bottle_planes > 128 and bottle_planes % 128 == 0 and 128 % cg == 0:
        blk = 128
    else:
        blk = bottle_planes
    nblk = bottle_planes // blk

    # Dense block-diagonal expansion with BN2 scale folded into output
    # channels, then keep only the diagonal (group-aligned) channel blocks,
    # stacked along K in tap order (kh*3 + kw): shape (nblk, 9*blk, blk).
    w2_dense = np.zeros((3, 3, bottle_planes, bottle_planes), np.float32)
    for co in range(bottle_planes):
        g = co // cg
        w2_dense[:, :, g * cg:(g + 1) * cg, co] = np.transpose(w2_t[co], (1, 2, 0))
    w2_dense = w2_dense * np.asarray(s2).reshape(1, 1, 1, -1)
    w2_9 = w2_dense.reshape(9, bottle_planes, bottle_planes)     # (tap, ci, co)
    w2s = np.stack(
        [w2_9[:, b * blk:(b + 1) * blk, b * blk:(b + 1) * blk].reshape(9 * blk, blk)
         for b in range(nblk)], axis=0)
    w2_hwio = jnp.asarray(np.transpose(w2_t, (2, 3, 1, 0)))      # for the reference

    # conv3: torch weight (planes, bottle, 1, 1) -> (bottle, planes)
    w3_t = jax.random.normal(ks[10], (planes, bottle_planes)) * 0.1
    w3 = jnp.transpose(w3_t, (1, 0)).astype(jnp.float32)
    s3, b3 = bn_fold(ks[11], ks[12], ks[13], ks[14], planes)

    return dict(
        # kernel operands (BN scales folded into weights, bf16 for the MXU)
        w1f=(w1 * s1).astype(jnp.bfloat16),
        w2s=jnp.asarray(w2s).astype(jnp.bfloat16),
        w3f=(w3 * s3).astype(jnp.bfloat16),
        b1=b1, b2=b2, b3=b3,
        # f32 originals for the XLA reference
        w1=w1, s1=s1, w2_hwio=w2_hwio, s2=s2, w3=w3, s3=s3)


# ----------------------------------------------------------------------------
# Pure-JAX reference (XLA convs, f32, NHWC) used to sanity-check the kernel.
# ----------------------------------------------------------------------------
def reference_forward_nhwc(x_nhwc, params, residual_nhwc=None, dilation=1):
    x = x_nhwc.astype(jnp.float32)
    res = x if residual_nhwc is None else residual_nhwc.astype(jnp.float32)
    t1 = jax.nn.relu(jnp.einsum('nhwc,cd->nhwd', x, params["w1"])
                     * params["s1"] + params["b1"])
    t2 = lax.conv_general_dilated(
        t1, params["w2_hwio"], window_strides=(1, 1),
        padding=((dilation, dilation), (dilation, dilation)),
        rhs_dilation=(dilation, dilation),
        dimension_numbers=('NHWC', 'HWIO', 'NHWC'),
        feature_group_count=CARDINALITY)
    t2 = jax.nn.relu(t2 * params["s2"] + params["b2"])
    t3 = jnp.einsum('nhwc,cd->nhwd', t2, params["w3"]) * params["s3"] + params["b3"]
    return jax.nn.relu(t3 + res)


if __name__ == "__main__":
    # Small lane-dense shapes: inplanes == planes (identity residual valid),
    # planes divisible by cardinality=32, C = 128 so bottle_planes fills the
    # 128-lane vregs (nblk = 1).
    N, Hs, Ws, C = 2, 16, 16, 128
    inplanes = planes = C

    key = jax.random.PRNGKey(0)
    kx, kr, kp, kx2, kp2 = jax.random.split(key, 5)
    x = jax.random.normal(kx, (N, Hs, Ws, C), dtype=jnp.float32)
    params = make_params(kp, inplanes, planes)

    # 1) identity residual (residual=None), dilation=1, f32 I/O, NHWC hot path
    out = jax.block_until_ready(bottleneckx_forward_nhwc(x, params, None, dilation=1))
    ref = np.asarray(reference_forward_nhwc(x, params, None, dilation=1))
    assert out.shape == (N, Hs, Ws, planes)
    err = float(np.max(np.abs(np.asarray(out) - ref)))
    assert np.allclose(np.asarray(out), ref, rtol=5e-2, atol=5e-2), err

    # 2) explicit residual, dilation=2
    resid = jax.random.normal(kr, (N, Hs, Ws, C), dtype=jnp.float32)
    out2 = jax.block_until_ready(bottleneckx_forward_nhwc(x, params, resid, dilation=2))
    ref2 = np.asarray(reference_forward_nhwc(x, params, resid, dilation=2))
    assert np.allclose(np.asarray(out2), ref2, rtol=5e-2, atol=5e-2)

    # 3) conv2-accumulate path (v7x MRB form) — same math, different schedule
    out3 = jax.block_until_ready(
        bottleneckx_forward_nhwc(x, params, None, dilation=1, conv2_accumulate=True))
    assert np.allclose(np.asarray(out3), ref, rtol=5e-2, atol=5e-2)

    # 4) bf16 activation I/O (halves HBM traffic on the mem-bound roofline)
    out4 = jax.block_until_ready(
        bottleneckx_forward_nhwc(x.astype(jnp.bfloat16), params, None, dilation=1))
    assert out4.dtype == jnp.bfloat16
    assert np.allclose(np.asarray(out4.astype(jnp.float32)), ref, rtol=1e-1, atol=1e-1)

    # 5) NCHW drop-in wrapper parity with the NHWC hot path
    x_nchw = jnp.transpose(x, (0, 3, 1, 2))
    out5 = jax.block_until_ready(bottleneckx_forward(x_nchw, params, None, dilation=1))
    assert np.allclose(np.asarray(out5),
                       np.asarray(jnp.transpose(out, (0, 3, 1, 2))),
                       rtol=1e-6, atol=1e-6)

    # 6) Cb = 256 (nblk = 2): exercises the diagonal-block conv2 decomposition
    C2, H2, W2 = 256, 8, 8
    x6 = jax.random.normal(kx2, (N, H2, W2, C2), dtype=jnp.float32)
    params6 = make_params(kp2, C2, C2)
    assert params6["w2s"].shape == (2, 9 * 128, 128)
    out6 = jax.block_until_ready(bottleneckx_forward_nhwc(x6, params6, None, dilation=1))
    ref6 = np.asarray(reference_forward_nhwc(x6, params6, None, dilation=1))
    assert np.allclose(np.asarray(out6), ref6, rtol=5e-2, atol=1e-1)

    print("KERNEL_OK")
</pallas_src>

<mosaic_0001>
module attributes {stable_mosaic.version = 11 : i64} {
  func.func @_bottleneckx_kernel(%arg0: i32, %arg1: memref<1x16x16x128xf32, #tpu.memory_space<vmem>>, %arg2: memref<128x128xbf16, #tpu.memory_space<vmem>>, %arg3: memref<1x128xf32, #tpu.memory_space<vmem>>, %arg4: memref<1x1152x128xbf16, #tpu.memory_space<vmem>>, %arg5: memref<1x128xf32, #tpu.memory_space<vmem>>, %arg6: memref<128x128xbf16, #tpu.memory_space<vmem>>, %arg7: memref<1x128xf32, #tpu.memory_space<vmem>>, %arg8: memref<1x16x16x128xf32, #tpu.memory_space<vmem>>) attributes {dimension_semantics = [#tpu.dimension_semantics<parallel>], iteration_bounds = array<i64: 2>, scalar_prefetch = 0 : i64, scratch_operands = 0 : i64, tpu.core_type = #tpu.core_type<tc>, window_params = [{transform_indices = @transform_0, window_bounds = array<i64: 1, 16, 16, 128>}, {pipeline_mode = #tpu.pipeline_mode<synchronous>, transform_indices = @transform_1, window_bounds = array<i64: 128, 128>}, {pipeline_mode = #tpu.pipeline_mode<synchronous>, transform_indices = @transform_2, window_bounds = array<i64: 1, 128>}, {pipeline_mode = #tpu.pipeline_mode<synchronous>, transform_indices = @transform_3, window_bounds = array<i64: 1, 1152, 128>}, {pipeline_mode = #tpu.pipeline_mode<synchronous>, transform_indices = @transform_4, window_bounds = array<i64: 1, 128>}, {pipeline_mode = #tpu.pipeline_mode<synchronous>, transform_indices = @transform_5, window_bounds = array<i64: 128, 128>}, {pipeline_mode = #tpu.pipeline_mode<synchronous>, transform_indices = @transform_6, window_bounds = array<i64: 1, 128>}, {transform_indices = @transform_7, window_bounds = array<i64: 1, 16, 16, 128>}]} {
    %c0 = arith.constant 0 : index
    %c0_0 = arith.constant 0 : index
    %c0_1 = arith.constant 0 : index
    %c0_2 = arith.constant 0 : index
    %0 = vector.load %arg1[%c0, %c0_0, %c0_1, %c0_2] : memref<1x16x16x128xf32, #tpu.memory_space<vmem>>, vector<1x16x16x128xf32>
    %1 = vector.shape_cast %0 : vector<1x16x16x128xf32> to vector<16x16x128xf32>
    %2 = vector.shape_cast %1 : vector<16x16x128xf32> to vector<256x128xf32>
    %3 = arith.truncf %2 : vector<256x128xf32> to vector<256x128xbf16>
    %c0_3 = arith.constant 0 : index
    %c0_4 = arith.constant 0 : index
    %4 = vector.load %arg2[%c0_3, %c0_4] : memref<128x128xbf16, #tpu.memory_space<vmem>>, vector<128x128xbf16>
    %cst = arith.constant dense<0.000000e+00> : vector<256x128xf32>
    %5 = tpu.matmul %3, %4, %cst {dimension_numbers = #tpu.dot_dimension_numbers<[1], [0], [0], [1], [0, 0, 1, 1], [], []>} : vector<256x128xbf16>, vector<128x128xbf16>, vector<256x128xf32> -> vector<256x128xf32>
    %c0_5 = arith.constant 0 : index
    %c0_6 = arith.constant 0 : index
    %6 = vector.load %arg3[%c0_5, %c0_6] : memref<1x128xf32, #tpu.memory_space<vmem>>, vector<1x128xf32>
    %7 = vector.broadcast %6 : vector<1x128xf32> to vector<256x128xf32>
    %8 = arith.addf %5, %7 : vector<256x128xf32>
    %cst_7 = arith.constant 0.000000e+00 : f32
    %9 = vector.broadcast %cst_7 : f32 to vector<256x128xf32>
    %10 = arith.maximumf %8, %9 : vector<256x128xf32>
    %11 = tpu.iota {dimensions = array<i32: 0>} : vector<16x16x1xi32>
    %12 = vector.shape_cast %11 : vector<16x16x1xi32> to vector<256x1xi32>
    %13 = tpu.iota {dimensions = array<i32: 1>} : vector<16x16x1xi32>
    %14 = vector.shape_cast %13 : vector<16x16x1xi32> to vector<256x1xi32>
    %c1_i32 = arith.constant 1 : i32
    %15 = vector.broadcast %c1_i32 : i32 to vector<256x1xi32>
    %16 = arith.cmpi sge, %12, %15 : vector<256x1xi32>
    %c1_i32_8 = arith.constant 1 : i32
    %17 = vector.broadcast %c1_i32_8 : i32 to vector<256x1xi32>
    %18 = arith.cmpi sge, %14, %17 : vector<256x1xi32>
    %19 = arith.andi %16, %18 : vector<256x1xi1>
    %c1_i32_9 = arith.constant 1 : i32
    %20 = vector.broadcast %c1_i32_9 : i32 to vector<256x1xi32>
    %21 = arith.cmpi sge, %12, %20 : vector<256x1xi32>
    %c1_i32_10 = arith.constant 1 : i32
    %22 = vector.broadcast %c1_i32_10 : i32 to vector<256x1xi32>
    %23 = arith.cmpi sge, %12, %22 : vector<256x1xi32>
    %c15_i32 = arith.constant 15 : i32
    %24 = vector.broadcast %c15_i32 : i32 to vector<256x1xi32>
    %25 = arith.cmpi slt, %14, %24 : vector<256x1xi32>
    %26 = arith.andi %23, %25 : vector<256x1xi1>
    %c1_i32_11 = arith.constant 1 : i32
    %27 = vector.broadcast %c1_i32_11 : i32 to vector<256x1xi32>
    %28 = arith.cmpi sge, %14, %27 : vector<256x1xi32>
    %c15_i32_12 = arith.constant 15 : i32
    %29 = vector.broadcast %c15_i32_12 : i32 to vector<256x1xi32>
    %30 = arith.cmpi slt, %14, %29 : vector<256x1xi32>
    %c15_i32_13 = arith.constant 15 : i32
    %31 = vector.broadcast %c15_i32_13 : i32 to vector<256x1xi32>
    %32 = arith.cmpi slt, %12, %31 : vector<256x1xi32>
    %c1_i32_14 = arith.constant 1 : i32
    %33 = vector.broadcast %c1_i32_14 : i32 to vector<256x1xi32>
    %34 = arith.cmpi sge, %14, %33 : vector<256x1xi32>
    %35 = arith.andi %32, %34 : vector<256x1xi1>
    %c15_i32_15 = arith.constant 15 : i32
    %36 = vector.broadcast %c15_i32_15 : i32 to vector<256x1xi32>
    %37 = arith.cmpi slt, %12, %36 : vector<256x1xi32>
    %c15_i32_16 = arith.constant 15 : i32
    %38 = vector.broadcast %c15_i32_16 : i32 to vector<256x1xi32>
    %39 = arith.cmpi slt, %12, %38 : vector<256x1xi32>
    %c15_i32_17 = arith.constant 15 : i32
    %40 = vector.broadcast %c15_i32_17 : i32 to vector<256x1xi32>
    %41 = arith.cmpi slt, %14, %40 : vector<256x1xi32>
    %42 = arith.andi %39, %41 : vector<256x1xi1>
    %c0_18 = arith.constant 0 : index
    %c0_19 = arith.constant 0 : index
    %c0_20 = arith.constant 0 : index
    %43 = vector.load %arg4[%c0_18, %c0_19, %c0_20] : memref<1x1152x128xbf16, #tpu.memory_space<vmem>>, vector<1x1152x128xbf16>
    %44 = vector.shape_cast %43 : vector<1x1152x128xbf16> to vector<1152x128xbf16>
    %c17_i32 = arith.constant 17 : i32
    %45 = tpu.dynamic_rotate %10 by %c17_i32 dim 0 : vector<256x128xf32>, i32 -> vector<256x128xf32>
    %cst_21 = arith.constant 0.000000e+00 : f32
    %46 = vector.shape_cast %19 : vector<256x1xi1> to vector<256x1xi1>
    %47 = vector.broadcast %46 : vector<256x1xi1> to vector<256x128xi1>
    %48 = vector.broadcast %cst_21 : f32 to vector<256x128xf32>
    %49 = arith.select %47, %45, %48 : vector<256x128xi1>, vector<256x128xf32>
    %50 = arith.truncf %49 : vector<256x128xf32> to vector<256x128xbf16>
    %c16_i32 = arith.constant 16 : i32
    %51 = tpu.dynamic_rotate %10 by %c16_i32 dim 0 : vector<256x128xf32>, i32 -> vector<256x128xf32>
    %cst_22 = arith.constant 0.000000e+00 : f32
    %52 = vector.shape_cast %21 : vector<256x1xi1> to vector<256x1xi1>
    %53 = vector.broadcast %52 : vector<256x1xi1> to vector<256x128xi1>
    %54 = vector.broadcast %cst_22 : f32 to vector<256x128xf32>
    %55 = arith.select %53, %51, %54 : vector<256x128xi1>, vector<256x128xf32>
    %56 = arith.truncf %55 : vector<256x128xf32> to vector<256x128xbf16>
    %c15_i32_23 = arith.constant 15 : i32
    %57 = tpu.dynamic_rotate %10 by %c15_i32_23 dim 0 : vector<256x128xf32>, i32 -> vector<256x128xf32>
    %cst_24 = arith.constant 0.000000e+00 : f32
    %58 = vector.shape_cast %26 : vector<256x1xi1> to vector<256x1xi1>
    %59 = vector.broadcast %58 : vector<256x1xi1> to vector<256x128xi1>
    %60 = vector.broadcast %cst_24 : f32 to vector<256x128xf32>
    %61 = arith.select %59, %57, %60 : vector<256x128xi1>, vector<256x128xf32>
    %62 = arith.truncf %61 : vector<256x128xf32> to vector<256x128xbf16>
    %c1_i32_25 = arith.constant 1 : i32
    %63 = tpu.dynamic_rotate %10 by %c1_i32_25 dim 0 : vector<256x128xf32>, i32 -> vector<256x128xf32>
    %cst_26 = arith.constant 0.000000e+00 : f32
    %64 = vector.shape_cast %28 : vector<256x1xi1> to vector<256x1xi1>
    %65 = vector.broadcast %64 : vector<256x1xi1> to vector<256x128xi1>
    %66 = vector.broadcast %cst_26 : f32 to vector<256x128xf32>
    %67 = arith.select %65, %63, %66 : vector<256x128xi1>, vector<256x128xf32>
    %68 = arith.truncf %67 : vector<256x128xf32> to vector<256x128xbf16>
    %69 = arith.truncf %10 : vector<256x128xf32> to vector<256x128xbf16>
    %c255_i32 = arith.constant 255 : i32
    %70 = tpu.dynamic_rotate %10 by %c255_i32 dim 0 : vector<256x128xf32>, i32 -> vector<256x128xf32>
    %cst_27 = arith.constant 0.000000e+00 : f32
    %71 = vector.shape_cast %30 : vector<256x1xi1> to vector<256x1xi1>
    %72 = vector.broadcast %71 : vector<256x1xi1> to vector<256x128xi1>
    %73 = vector.broadcast %cst_27 : f32 to vector<256x128xf32>
    %74 = arith.select %72, %70, %73 : vector<256x128xi1>, vector<256x128xf32>
    %75 = arith.truncf %74 : vector<256x128xf32> to vector<256x128xbf16>
    %c241_i32 = arith.constant 241 : i32
    %76 = tpu.dynamic_rotate %10 by %c241_i32 dim 0 : vector<256x128xf32>, i32 -> vector<256x128xf32>
    %cst_28 = arith.constant 0.000000e+00 : f32
    %77 = vector.shape_cast %35 : vector<256x1xi1> to vector<256x1xi1>
    %78 = vector.broadcast %77 : vector<256x1xi1> to vector<256x128xi1>
    %79 = vector.broadcast %cst_28 : f32 to vector<256x128xf32>
    %80 = arith.select %78, %76, %79 : vector<256x128xi1>, vector<256x128xf32>
    %81 = arith.truncf %80 : vector<256x128xf32> to vector<256x128xbf16>
    %c240_i32 = arith.constant 240 : i32
    %82 = tpu.dynamic_rotate %10 by %c240_i32 dim 0 : vector<256x128xf32>, i32 -> vector<256x128xf32>
    %cst_29 = arith.constant 0.000000e+00 : f32
    %83 = vector.shape_cast %37 : vector<256x1xi1> to vector<256x1xi1>
    %84 = vector.broadcast %83 : vector<256x1xi1> to vector<256x128xi1>
    %85 = vector.broadcast %cst_29 : f32 to vector<256x128xf32>
    %86 = arith.select %84, %82, %85 : vector<256x128xi1>, vector<256x128xf32>
    %87 = arith.truncf %86 : vector<256x128xf32> to vector<256x128xbf16>
    %c239_i32 = arith.constant 239 : i32
    %88 = tpu.dynamic_rotate %10 by %c239_i32 dim 0 : vector<256x128xf32>, i32 -> vector<256x128xf32>
    %cst_30 = arith.constant 0.000000e+00 : f32
    %89 = vector.shape_cast %42 : vector<256x1xi1> to vector<256x1xi1>
    %90 = vector.broadcast %89 : vector<256x1xi1> to vector<256x128xi1>
    %91 = vector.broadcast %cst_30 : f32 to vector<256x128xf32>
    %92 = arith.select %90, %88, %91 : vector<256x128xi1>, vector<256x128xf32>
    %93 = arith.truncf %92 : vector<256x128xf32> to vector<256x128xbf16>
    %94 = tpu.concatenate %50, %56, %62, %68, %69, %75, %81, %87, %93 in 1 : vector<256x128xbf16>, vector<256x128xbf16>, vector<256x128xbf16>, vector<256x128xbf16>, vector<256x128xbf16>, vector<256x128xbf16>, vector<256x128xbf16>, vector<256x128xbf16>, vector<256x128xbf16> -> vector<256x1152xbf16>
    %cst_31 = arith.constant dense<0.000000e+00> : vector<256x128xf32>
    %95 = tpu.matmul %94, %44, %cst_31 {dimension_numbers = #tpu.dot_dimension_numbers<[1], [0], [0], [1], [0, 0, 1, 1], [], []>} : vector<256x1152xbf16>, vector<1152x128xbf16>, vector<256x128xf32> -> vector<256x128xf32>
    %c0_32 = arith.constant 0 : index
    %c0_33 = arith.constant 0 : index
    %96 = vector.load %arg5[%c0_32, %c0_33] : memref<1x128xf32, #tpu.memory_space<vmem>>, vector<1x128xf32>
    %97 = vector.broadcast %96 : vector<1x128xf32> to vector<256x128xf32>
    %98 = arith.addf %95, %97 : vector<256x128xf32>
    %cst_34 = arith.constant 0.000000e+00 : f32
    %99 = vector.broadcast %cst_34 : f32 to vector<256x128xf32>
    %100 = arith.maximumf %98, %99 : vector<256x128xf32>
    %101 = arith.truncf %100 : vector<256x128xf32> to vector<256x128xbf16>
    %c0_35 = arith.constant 0 : index
    %c0_36 = arith.constant 0 : index
    %102 = vector.load %arg6[%c0_35, %c0_36] : memref<128x128xbf16, #tpu.memory_space<vmem>>, vector<128x128xbf16>
    %cst_37 = arith.constant dense<0.000000e+00> : vector<256x128xf32>
    %103 = tpu.matmul %101, %102, %cst_37 {dimension_numbers = #tpu.dot_dimension_numbers<[1], [0], [0], [1], [0, 0, 1, 1], [], []>} : vector<256x128xbf16>, vector<128x128xbf16>, vector<256x128xf32> -> vector<256x128xf32>
    %c0_38 = arith.constant 0 : index
    %c0_39 = arith.constant 0 : index
    %c0_40 = arith.constant 0 : index
    %c0_41 = arith.constant 0 : index
    %104 = vector.load %arg1[%c0_38, %c0_39, %c0_40, %c0_41] : memref<1x16x16x128xf32, #tpu.memory_space<vmem>>, vector<1x16x16x128xf32>
    %105 = vector.shape_cast %104 : vector<1x16x16x128xf32> to vector<16x16x128xf32>
    %106 = vector.shape_cast %105 : vector<16x16x128xf32> to vector<256x128xf32>
    %c0_42 = arith.constant 0 : index
    %c0_43 = arith.constant 0 : index
    %107 = vector.load %arg7[%c0_42, %c0_43] : memref<1x128xf32, #tpu.memory_space<vmem>>, vector<1x128xf32>
    %108 = vector.broadcast %107 : vector<1x128xf32> to vector<256x128xf32>
    %109 = arith.addf %103, %108 : vector<256x128xf32>
    %110 = arith.addf %109, %106 : vector<256x128xf32>
    %cst_44 = arith.constant 0.000000e+00 : f32
    %111 = vector.broadcast %cst_44 : f32 to vector<256x128xf32>
    %112 = arith.maximumf %110, %111 : vector<256x128xf32>
    %113 = vector.shape_cast %112 : vector<256x128xf32> to vector<16x16x128xf32>
    %c0_45 = arith.constant 0 : index
    %c0_46 = arith.constant 0 : index
    %c0_47 = arith.constant 0 : index
    %c0_48 = arith.constant 0 : index
    %114 = vector.load %arg8[%c0_45, %c0_46, %c0_47, %c0_48] : memref<1x16x16x128xf32, #tpu.memory_space<vmem>>, vector<1x16x16x128xf32>
    %115 = vector.shape_cast %114 : vector<1x16x16x128xf32> to vector<16x16x128xf32>
    %116 = vector.shape_cast %113 : vector<16x16x128xf32> to vector<1x16x16x128xf32>
    tpu.vector_store %arg8[%c0_45, %c0_46, %c0_47, %c0_48], %116 {strides = array<i32>} : memref<1x16x16x128xf32, #tpu.memory_space<vmem>>, vector<1x16x16x128xf32>,
    return
  }
  func.func @transform_0(%arg0: i32) -> (i32, i32, i32, i32) {
    %c0_i32 = arith.constant 0 : i32
    %c0_i32_0 = arith.constant 0 : i32
    %c0_i32_1 = arith.constant 0 : i32
    %c0_i32_2 = arith.constant 0 : i32
    return %arg0, %c0_i32, %c0_i32_0, %c0_i32_1 : i32, i32, i32, i32
  }
  func.func @transform_1(%arg0: i32) -> (i32, i32) {
    %c0_i32 = arith.constant 0 : i32
    %c0_i32_0 = arith.constant 0 : i32
    %c0_i32_1 = arith.constant 0 : i32
    return %c0_i32, %c0_i32_0 : i32, i32
  }
  func.func @transform_2(%arg0: i32) -> (i32, i32) {
    %c0_i32 = arith.constant 0 : i32
    %c0_i32_0 = arith.constant 0 : i32
    %c0_i32_1 = arith.constant 0 : i32
    return %c0_i32, %c0_i32_0 : i32, i32
  }
  func.func @transform_3(%arg0: i32) -> (i32, i32, i32) {
    %c0_i32 = arith.constant 0 : i32
    %c0_i32_0 = arith.constant 0 : i32
    %c0_i32_1 = arith.constant 0 : i32
    %c0_i32_2 = arith.constant 0 : i32
    return %c0_i32, %c0_i32_0, %c0_i32_1 : i32, i32, i32
  }
  func.func @transform_4(%arg0: i32) -> (i32, i32) {
    %c0_i32 = arith.constant 0 : i32
    %c0_i32_0 = arith.constant 0 : i32
    %c0_i32_1 = arith.constant 0 : i32
    return %c0_i32, %c0_i32_0 : i32, i32
  }
  func.func @transform_5(%arg0: i32) -> (i32, i32) {
    %c0_i32 = arith.constant 0 : i32
    %c0_i32_0 = arith.constant 0 : i32
    %c0_i32_1 = arith.constant 0 : i32
    return %c0_i32, %c0_i32_0 : i32, i32
  }
  func.func @transform_6(%arg0: i32) -> (i32, i32) {
    %c0_i32 = arith.constant 0 : i32
    %c0_i32_0 = arith.constant 0 : i32
    %c0_i32_1 = arith.constant 0 : i32
    return %c0_i32, %c0_i32_0 : i32, i32
  }
  func.func @transform_7(%arg0: i32) -> (i32, i32, i32, i32) {
    %c0_i32 = arith.constant 0 : i32
    %c0_i32_0 = arith.constant 0 : i32
    %c0_i32_1 = arith.constant 0 : i32
    %c0_i32_2 = arith.constant 0 : i32
    return %arg0, %c0_i32, %c0_i32_0, %c0_i32_1 : i32, i32, i32, i32
  }
}

</mosaic_0001>

<bundles_post_ra>
// kernel: tpu_custom_call.1
= control target key start
LH: loop header
LB: loop body
LE: loop exit
PB: predicated region body
PF: predicated region fallthrough
CT: control target
= control target key end

     0   :  { %s5513_s0 = inlined_call_operand.hbm [shape: f32[2,16,16,128], index: 0, kind: input, shape index: {}]   ;;  %s5514_s1 = inlined_call_operand.hbm [shape: bf16[128,128], index: 1, kind: input, shape index: {}]   ;;  %s5515_s2 = inlined_call_operand.vmem [shape: f32[1,128], index: 2, kind: input, shape index: {}]   ;;  %s5516_s3 = inlined_call_operand.hbm [shape: bf16[1,1152,128], index: 3, kind: input, shape index: {}]   ;;  %s5517_s4 = inlined_call_operand.vmem [shape: f32[1,128], index: 4, kind: input, shape index: {}]   ;;  %s5518_s5 = inlined_call_operand.hbm [shape: bf16[128,128], index: 5, kind: input, shape index: {}]   ;;  %s5519_s6 = inlined_call_operand.vmem [shape: f32[1,128], index: 6, kind: input, shape index: {}]   ;;  %s5520_s7 = inlined_call_operand.hbm [shape: f32[2,16,16,128], index: 7, kind: output, shape index: {}]  }
   0x1   :  { %5553 = sst [smem:[#allocation106_spill]] %s5514_s1 }
   0x2   :  { %12 = vsyncpa [#allocation3], 0 }
   0x3   :  { %14 = vsyncpa [#allocation3 + $0x1], 0 }
   0x4   :  { %15 = vsyncpa [#allocation6], 0 }
   0x5   :  { %16 = vsyncpa [#allocation9], 0 }
   0x6   :  { %17 = vsyncpa [#allocation4], 0 }
   0x7   :  { %19 = vsyncpa [#allocation4 + $0x1], 0  ;;  %s3836_s24 = smov 0   ;;  %s3838_s25 = smov 0  }
   0x8   :  { %s3840_s26 = smov 0   ;;  %s3842_s27 = smov 0  }
   0x9 LB: > { %s3857_s28 = sadd.s32 4294967295, %s3784_s27   ;;  %s2984_s29 = sadd.s32 4294967294, %s3784_s27   ;;  %s3784_s27 = sphi %s3842_s27, %s5791_s27   ;;  %s3780_s26 = sphi %s3840_s26, %s5790_s26   ;;  %s3776_s25 = sphi %s3838_s25, %s5789_s25   ;;  %s3772_s24 = sphi %s3836_s24, %s5788_s24  }
   0xa   : > { %p45_p0 = scmp.ne.s32.totalorder %s3776_s25, %s3772_s24  ;;  %p46_p1 = scmp.eq.s32.totalorder %s3857_s28, 0 }
   0xb   : > { %p195_p2 = scmp.eq.s32.totalorder %s3857_s28, 1  ;;  %p201_p3 = scmp.eq.s32.totalorder %s2984_s29, 1 }
   0xc   : > { %p3866_p4 = por %p46_p1, %p45_p0  ;;  %p2985_p5 = scmp.ge.s32.totalorder %s3784_s27, 1 }
   0xd   : > { %p3871_p6 = por %p201_p3, %p45_p0  ;;  %p208_p7 = scmp.lt.s32.totalorder %s3784_s27, 3 }
   0xe   : > { %s5556_s1 = sld [smem:[#allocation106_spill]]  ;;  %s3786_s13 = smov [#allocation5]  }
   0xf   : > { %p3879_p8 = pnand %p2985_p5, %p208_p7  ;;  %s221_s14 = sshll.u32 %s3786_s13, 4  ;;  %s222_s14 = int_to_ptr.vmem [resolvable:$true] %s221_s14 }
  0x10   : > { %s236_s18 = sshll.u32 %s5516_s3, 4  ;;  %s3787_s19 = smov 64   ;;  %s237_s18 = int_to_ptr.hbm [resolvable:$true] %s236_s18 }
  0x11   : > { %p3486_p9 = pneg %p3879_p8  ;;  %s3788_s20 = smov 4  }
  0x12   : > { %s3789_s21 = smov [#allocation7]   ;;  %s253_s9 = sshll.u32 %s5518_s5, 4  ;;  %s254_s9 = int_to_ptr.hbm [resolvable:$true] %s253_s9 }
  0x13   : > { %p3887_p10 = pnand %p3486_p9, %p46_p1  ;;  %s238_s22 = sshll.u32 %s3789_s21, 4  ;;  %s239_s22 = int_to_ptr.vmem [resolvable:$true] %s238_s22 }
  0x14   : > { %s219_s11 = sshll.u32 %s5556_s1, 4  ;;  %s3790_s10 = smov [#allocation8]   ;;  %s220_s11 = int_to_ptr.hbm [resolvable:$true] %s219_s11 }
  0x15   : > { %3489 = dma.hbm_to_vmem [thread:$0]  (!%p3887_p10), %s220_s11, 1024, %s222_s14, [#allocation6], %s3787_s19, %s3787_s19, %s3788_s20  }
  0x16   : > { %3492 = dma.hbm_to_vmem [thread:$0]  (!%p3887_p10), %s237_s18, 9216, %s239_s22, [#allocation6], %s3787_s19, %s3787_s19, %s3788_s20  }
  0x17   : > { %s255_s13 = sshll.u32 %s3790_s10, 4  ;;  %s3903_s11 = sadd.s32 1, %s3784_s27   ;;  %s256_s13 = int_to_ptr.vmem [resolvable:$true] %s255_s13 }
  0x18   : > { %3495 = dma.hbm_to_vmem [thread:$0]  (!%p3887_p10), %s254_s9, 1024, %s256_s13, [#allocation9], %s3787_s19, %s3787_s19, %s3788_s20  }
  0x19   : > { %s29_s14 = ssub.s32 %s3784_s27, %s3903_s11  ;;  %s32_s16 = sadd.s32 1, %s3780_s26 }
  0x1a   : > { %p30_p12 = scmp.eq.s32.totalorder %s29_s14, 0  ;;  %p39_p13 = scmp.ne.s32.totalorder %s3780_s26, %s3776_s25 }
  0x1b   : > { %p40_p0 = scmp.eq.s32.totalorder %s3784_s27, 0  ;;  %p3507_p3 = scmp.lt.s32.totalorder %s3784_s27, 2 }
  0x1c   : > { %s3915_s17 = scalar_select %p30_p12, %s3780_s26, %s32_s16  }
  0x1d   : > { %p41_p5 = por %p40_p0, %p39_p13  ;;  %p3919_p7 = por %p195_p2, %p39_p13 }
  0x1e   : > { %s272_s21 = sand.u32 1, %s3780_s26   ;;  %s3356_s22 = sshll.u32 %s3784_s27, 8 }
  0x1f   : > { %s2990_s15 = sshll.u32 %s272_s21, 8  ;;  %s281_s20 = scalar_lea.hbm %s5513_s0, %s3356_s22 }
  0x20   : > { %s282_s29 = sshll.u32 %s281_s20, 4  ;;  %s276_s9 = scalar_lea.vmem [#allocation2], %s2990_s15  ;;  %s283_s29 = int_to_ptr.hbm [resolvable:$true] %s282_s29 }
  0x21   : > { %s284_s10 = sshll.u32 %s276_s9, 4  ;;  %p3930_p9 = pnand %p3507_p3, %p41_p5  ;;  %s285_s10 = int_to_ptr.vmem [resolvable:$true] %s284_s10 }
  0x22   : > { %s273_s14 = scalar_lea.sflag [#allocation3], %s272_s21  ;;  %s3680_s16 = sshra.s32 %s283_s29, 4  ;;  %s3681_s16 = int_to_ptr.hbm [resolvable:$true] %s3680_s16 }
  0x23   : > { %s3682_s1 = scalar_lea.hbm %s3681_s16, 256  ;;  %p3684_p10 = pneg %p3930_p9 }
  0x24   : > { %p3683_p2 = scmp.ne.s32.totalorder %s3681_s16, %s3682_s1  ;;  %s3687_s23 = scalar_lea.hbm %s5513_s0, 512 }
  0x25   : > { %p3688_p0 = scmp.lt.s32.totalorder %s3681_s16, %s5513_s0  ;;  %p3689_p3 = scmp.lt.s32.totalorder %s3687_s23, %s3682_s1 }
  0x26   : > { %p3685_p12 = pnand %p3684_p10, %p3683_p2 }
  0x27   : > { %p3690_p5 = por %p3689_p3, %p3688_p0 }
  0x28   : > { %p3686_p13 = pneg %p3685_p12 }
  0x2a   : > { %p3691_p11 = pnand %p3690_p5, %p3686_p13 }
  0x2c   : > { %3694 = shalt.err (!%p3691_p11)
}
  0x2d   : > { %s3791_s21 = smov 128   ;;  %s3792_s9 = smov 8  }
  0x2e   : > { %3499 = dma.hbm_to_vmem [thread:$0]  (!%p3930_p9), %s283_s29, 4096, %s285_s10, %s273_s14, %s3791_s21, %s3791_s21, %s3792_s9  }
  0x2f   : > { %296 = sbr.rel (%p3879_p8) target bundleno = 1339 (0x53b), region = 48 }
  0x34   : > { %s3947_s22 = sand.u32 1, %s3776_s25  }
  0x35   : > { %s2994_s16 = sshll.u32 %s3947_s22, 8  ;;  %s299_s1 = scalar_lea.sflag [#allocation3], %s3947_s22 }
  0x36   : > { %s3953_s15 = scalar_lea.vmem [#allocation2], %s2994_s16 }
  0x37   : > { %3755 = dma.done.wait (%p3866_p4), %s299_s1, 4096  }
  0x38   : > { %3757 = vsyncadd (%p3866_p4), %s299_s1, 4294963200 }
  0x39   : > { %3759 = dma.done.wait (%p46_p1), [#allocation6], 10240  }
  0x3a   : > { %3761 = vsyncadd (%p46_p1), [#allocation6], 4294957056 }
  0x3b   : > { %3763 = dma.done.wait (%p46_p1), [#allocation9], 1024  }
  0x3c   : > { %3765 = vsyncadd (%p46_p1), [#allocation9], 4294966272  ;;  %v3364_v0 = vld [vmem:[#allocation5 + $0x38] sm:$0xff]  ;;  %v3363_v1 = vld [vmem:[#allocation5 + $0x30] sm:$0xff]  ;;  %v3793_v49 = vmov 0.0|0.0   ;;  %v586_v63 = vlaneseq  ;;  %s5337_s20 = scalar_lea.vmem [#allocation10], %s2994_s16 }
  0x3d   : > { %465 = vmatpush.bf16.msra.mxu0 %v3364_v0  ;;  %3446 = vmatpush.bf16.msra.mxu3 %v3364_v0  ;;  %v3362_v2 = vld [vmem:[#allocation5 + $0x28] sm:$0xff]  ;;  %v3361_v3 = vld [vmem:[#allocation5 + $0x20] sm:$0xff]  ;;  %v3360_v4 = vld [vmem:[#allocation5 + $0x18] sm:$0xff]  ;;  %v1067_v50 = vunpack.c.l.b16 %v3793_v49  ;;  %s3445_s21 = sshll.u32 %s3857_s28, 8  ;;  %s2879_s30 = sshll.u32 %s5337_s20, 4  ;;  %s2880_s30 = int_to_ptr.vmem [resolvable:$true] %s2879_s30 }
  0x3e   : > { %v3359_v5 = vld [vmem:[#allocation5 + $0x10] sm:$0xff]  ;;  %v3358_v6 = vld [vmem:[#allocation5 + $0x8] sm:$0xff]  ;;  %v3357_v7 = vld [vmem:[#allocation5] sm:$0xff]  ;;  %s2878_s1 = scalar_lea.hbm %s5520_s7, %s3445_s21  ;;  %s2867_s29 = scalar_lea.sflag [#allocation4], %s3947_s22 }
  0x3f   : > { %v349_v8 = vld [vmem:[%s3953_s15] sm:$0xff]  ;;  %v350_v9 = vld [vmem:[%s3953_s15 + $0x8] sm:$0xff]  ;;  %v351_v14 = vld [vmem:[%s3953_s15 + $0x10] sm:$0xff]  ;;  %v4013_v51 = vpack.c.b16 %v1067_v50, %v1067_v50  ;;  %s2881_s12 = sshll.u32 %s2878_s1, 4  ;;  %s3730_s23 = scalar_lea.hbm %s5520_s7, 512  ;;  %s2882_s12 = int_to_ptr.hbm [resolvable:$true] %s2881_s12 }
  0x40   : > { %v373_v10 = vld [vmem:[%s3953_s15 + $0xc0] sm:$0xff]  ;;  %v374_v11 = vld [vmem:[%s3953_s15 + $0xc8] sm:$0xff]  ;;  %v381_v12 = vpack.c.bf16 %v350_v9, %v349_v8  ;;  %v352_v15 = vld [vmem:[%s3953_s15 + $0x18] sm:$0xff]  ;;  %s3724_s28 = sshra.s32 %s2882_s12, 4  ;;  %s3725_s28 = int_to_ptr.hbm [resolvable:$true] %s3724_s28 }
  0x41   : > { %466 = vmatpush.bf16.msra.mxu0 %v3363_v1  ;;  %3447 = vmatpush.bf16.msra.mxu3 %v3363_v1  ;;  %v393_v13 = vpack.c.bf16 %v374_v11, %v373_v10  ;;  %v375_v16 = vld [vmem:[%s3953_s15 + $0xd0] sm:$0xff]  ;;  %v376_v17 = vld [vmem:[%s3953_s15 + $0xd8] sm:$0xff]  ;;  %v382_v18 = vpack.c.bf16 %v352_v15, %v351_v14  ;;  %v353_v20 = vld [vmem:[%s3953_s15 + $0x20] sm:$0xff]  ;;  %s3726_s10 = scalar_lea.hbm %s3725_s28, 256  ;;  %p3731_p11 = scmp.lt.s32.totalorder %s3725_s28, %s5520_s7 }
  0x42   : > { %v394_v19 = vpack.c.bf16 %v376_v17, %v375_v16  ;;  %v354_v21 = vld [vmem:[%s3953_s15 + $0x28] sm:$0xff]  ;;  %v377_v22 = vld [vmem:[%s3953_s15 + $0xe0] sm:$0xff]  ;;  %v355_v26 = vld [vmem:[%s3953_s15 + $0x30] sm:$0xff]  ;;  %p3727_p1 = scmp.ne.s32.totalorder %s3725_s28, %s3726_s10  ;;  %p3732_p9 = scmp.lt.s32.totalorder %s3730_s23, %s3726_s10 }
  0x43   : > { %v378_v23 = vld [vmem:[%s3953_s15 + $0xe8] sm:$0xff]  ;;  %v383_v24 = vpack.c.bf16 %v354_v21, %v353_v20  ;;  %v356_v27 = vld [vmem:[%s3953_s15 + $0x38] sm:$0xff]  ;;  %v379_v28 = vld [vmem:[%s3953_s15 + $0xf0] sm:$0xff] }
  0x44   : > { %v395_v25 = vpack.c.bf16 %v378_v23, %v377_v22  ;;  %v380_v29 = vld [vmem:[%s3953_s15 + $0xf8] sm:$0xff]  ;;  %v384_v30 = vpack.c.bf16 %v356_v27, %v355_v26  ;;  %v357_v32 = vld [vmem:[%s3953_s15 + $0x40] sm:$0xff]  ;;  %v358_v33 = vld [vmem:[%s3953_s15 + $0x48] sm:$0xff]  ;;  %p3728_p4 = pnand %p3727_p1, %p3919_p7  ;;  %p3733_p2 = por %p3732_p9, %p3731_p11 }
  0x45   : > { %467 = vmatpush.bf16.msra.mxu0 %v3362_v2  ;;  %3448 = vmatpush.bf16.msra.mxu3 %v3362_v2  ;;  %v396_v31 = vpack.c.bf16 %v380_v29, %v379_v28  ;;  %v385_v34 = vpack.c.bf16 %v358_v33, %v357_v32  ;;  %v3985_v35 = vld [vmem:[#allocation7 + $0x78] sm:$0xff]  ;;  %v3988_v36 = vld [vmem:[#allocation7 + $0x70] sm:$0xff]  ;;  %v3991_v37 = vld [vmem:[#allocation7 + $0x68] sm:$0xff] }
  0x46   : > { %1853 = vmatpush.bf16.msra.mxu2 %v3985_v35  ;;  %v359_v38 = vld [vmem:[%s3953_s15 + $0x50] sm:$0xff]  ;;  %v360_v39 = vld [vmem:[%s3953_s15 + $0x58] sm:$0xff]  ;;  %v3996_v40 = vld [vmem:[#allocation7 + $0x60] sm:$0xff]  ;;  %p3729_p8 = pneg %p3728_p4 }
  0x47   : > { %v386_v41 = vpack.c.bf16 %v360_v39, %v359_v38  ;;  %v3999_v42 = vld [vmem:[#allocation7 + $0x58] sm:$0xff]  ;;  %v4002_v43 = vld [vmem:[#allocation7 + $0x50] sm:$0xff]  ;;  %v4005_v44 = vld [vmem:[#allocation7 + $0x48] sm:$0xff] }
  0x48   : > { %v361_v45 = vld [vmem:[%s3953_s15 + $0x60] sm:$0xff]  ;;  %v362_v46 = vld [vmem:[%s3953_s15 + $0x68] sm:$0xff]  ;;  %v363_v52 = vld [vmem:[%s3953_s15 + $0x70] sm:$0xff]  ;;  %p3734_p10 = pnand %p3733_p2, %p3729_p8 }
  0x49   : > { %468 = vmatpush.bf16.msra.mxu0 %v3361_v3  ;;  %3449 = vmatpush.bf16.msra.mxu3 %v3361_v3  ;;  %v4010_v47 = vld [vmem:[#allocation7 + $0x40] sm:$0xff]  ;;  %v387_v48 = vpack.c.bf16 %v362_v46, %v361_v45  ;;  %v364_v53 = vld [vmem:[%s3953_s15 + $0x78] sm:$0xff]  ;;  %v366_v56 = vld [vmem:[%s3953_s15 + $0x88] sm:$0xff] }
  0x4a   : > { %1854 = vmatpush.bf16.msra.mxu2 %v3988_v36  ;;  %v388_v54 = vpack.c.bf16 %v364_v53, %v363_v52  ;;  %v365_v55 = vld [vmem:[%s3953_s15 + $0x80] sm:$0xff]  ;;  %v3372_v57 = vld [vmem:[#allocation7 + $0x38] sm:$0xff]  ;;  %v3371_v61 = vld [vmem:[#allocation7 + $0x30] sm:$0xff] }
  0x4b   : > { %1764 = vmatpush.bf16.msra.mxu1 %v3372_v57  ;;  %v4023_v58 = vld [vmem:[%s5515_s2] ss:$0 sm:$0xff]  ;;  %v389_v59 = vpack.c.bf16 %v366_v56, %v365_v55  ;;  %v3370_v0 = vld [vmem:[#allocation7 + $0x28] sm:$0xff]  ;;  %v367_v8 = vld [vmem:[%s3953_s15 + $0x90] sm:$0xff] }
  0x4c   : > { %v368_v10 = vld [vmem:[%s3953_s15 + $0x98] sm:$0xff]  ;;  %v3367_v22 = vld [vmem:[#allocation7 + $0x10] sm:$0xff]  ;;  %v3366_v28 = vld [vmem:[#allocation7 + $0x8] sm:$0xff] }
  0x4d   : > { %469 = vmatpush.bf16.msra.mxu0 %v3360_v4  ;;  %3450 = vmatpush.bf16.msra.mxu3 %v3360_v4  ;;  %v4030_v4 = vshrl.u32 %v586_v63, 7  ;;  %v3368_v11 = vld [vmem:[#allocation7 + $0x18] sm:$0xff]  ;;  %v390_v17 = vpack.c.bf16 %v368_v10, %v367_v8  ;;  %v3395_v23 = vld [vmem:[#allocation7 + $0xf0] sm:$0xff]  ;;  %v3394_v29 = vld [vmem:[#allocation7 + $0xe8] sm:$0xff] }
  0x4e   : > { %1855 = vmatpush.bf16.msra.mxu2 %v3991_v37  ;;  %v3393_v38 = vld [vmem:[#allocation7 + $0xe0] sm:$0xff]  ;;  %v370_v52 = vld [vmem:[%s3953_s15 + $0xa8] sm:$0xff]  ;;  %v3392_v53 = vld [vmem:[#allocation7 + $0xd8] sm:$0xff] }
  0x4f   : > { %1765 = vmatpush.bf16.msra.mxu1 %v3371_v61  ;;  %vm925_vm0 = vcmp.lt.s32.totalorder %v4030_v4, 7  ;;  %v4054_v26 = vadd.s32 8, %v4030_v4  ;;  %v369_v50 = vld [vmem:[%s3953_s15 + $0xa0] sm:$0xff]  ;;  %vm768_vm2 = vcmp.lt.s32.totalorder %v4030_v4, 1  ;;  %vm589_vm3 = vcmp.ge.s32.totalorder %v4030_v4, 1 }
  0x51   : > { %470 = vmatpush.bf16.msra.mxu0 %v3359_v5  ;;  %3451 = vmatpush.bf16.msra.mxu3 %v3359_v5  ;;  %v3369_v5 = vld [vmem:[#allocation7 + $0x20] sm:$0xff]  ;;  %vm592_vm1 = vcmp.lt.s32.totalorder %v4054_v26, 15 }
  0x52   : > { %1856 = vmatpush.bf16.msra.mxu2 %v3996_v40 }
  0x53   : > { %1766 = vmatpush.bf16.msra.mxu1 %v3370_v0 }
  0x55   : > { %471 = vmatpush.bf16.msra.mxu0 %v3358_v6  ;;  %3452 = vmatpush.bf16.msra.mxu3 %v3358_v6 }
  0x56   : > { %1857 = vmatpush.bf16.msra.mxu2 %v3999_v42 }
  0x57   : > { %1767 = vmatpush.bf16.msra.mxu1 %v3369_v5 }
  0x59   : > { %472 = vmatpush.bf16.msra.mxu0 %v3357_v7  ;;  %3453 = vmatpush.bf16.msra.mxu3 %v3357_v7 }
  0x5a   : > { %1858 = vmatpush.bf16.msra.mxu2 %v4002_v43 }
  0x5b   : > { %1768 = vmatpush.bf16.msra.mxu1 %v3368_v11 }
  0x5c   : > { %473 = vmatmul.bf16.vlgmr.msra.gmra.mxu0 %v381_v12  ;;  %533 = vmatmul.bf16.vlgmr.msra.gmra.mxu3 %v393_v13  ;;  %v3396_v12 = vld [vmem:[#allocation7 + $0xf8] sm:$0xff] }
  0x5d   : > { %3454 = vmatpush.bf16.msrb.mxu3 %v3372_v57  ;;  %2031 = vmatpush.bf16.msrb.mxu0 %v3396_v12 }
  0x5e   : > { %1859 = vmatpush.bf16.msra.mxu2 %v4005_v44 }
  0x5f   : > { %1769 = vmatpush.bf16.msra.mxu1 %v3367_v22 }
  0x61   : > { %3455 = vmatpush.bf16.msrb.mxu3 %v3371_v61  ;;  %2032 = vmatpush.bf16.msrb.mxu0 %v3395_v23  ;;  %v391_v61 = vpack.c.bf16 %v370_v52, %v369_v50 }
  0x62   : > { %1860 = vmatpush.bf16.msra.mxu2 %v4010_v47 }
  0x63   : > { %1770 = vmatpush.bf16.msra.mxu1 %v3366_v28 }
  0x65   : > { %1861 = vmatmul.bf16.vlgmr.msra.gmra.mxu2 %v4013_v51  ;;  %3456 = vmatpush.bf16.msrb.mxu3 %v3370_v0 }
  0x66   : > { %2033 = vmatpush.bf16.msrb.mxu0 %v3394_v29 }
  0x69   : > { %3457 = vmatpush.bf16.msrb.mxu3 %v3369_v5  ;;  %v3391_v5 = vld [vmem:[#allocation7 + $0xd0] sm:$0xff] }
  0x6a   : > { %2034 = vmatpush.bf16.msrb.mxu0 %v3393_v38 }
  0x6c   : > { %478 = vmatmul.bf16.gmra.mxu0 %v382_v18  ;;  %538 = vmatmul.bf16.gmra.mxu3 %v394_v19 }
  0x6d   : > { %3458 = vmatpush.bf16.msrb.mxu3 %v3368_v11 }
  0x6e   : > { %2035 = vmatpush.bf16.msrb.mxu0 %v3392_v53 }
  0x71   : > { %3459 = vmatpush.bf16.msrb.mxu3 %v3367_v22  ;;  %v372_v22 = vld [vmem:[%s3953_s15 + $0xb8] sm:$0xff] }
  0x72   : > { %2036 = vmatpush.bf16.msrb.mxu0 %v3391_v5 }
  0x75   : > { %3460 = vmatpush.bf16.msrb.mxu3 %v3366_v28 }
  0x7c   : > { %483 = vmatmul.bf16.gmra.mxu0 %v383_v24  ;;  %543 = vmatmul.bf16.gmra.mxu3 %v395_v25 }
  0x8c   : > { %488 = vmatmul.bf16.gmra.mxu0 %v384_v30  ;;  %548 = vmatmul.bf16.gmra.mxu3 %v396_v31 }
  0x9c   : > { %493 = vmatmul.bf16.gmra.mxu0 %v385_v34  ;;  %v3365_v34 = vld [vmem:[#allocation7] sm:$0xff] }
  0x9d   : > { %1771 = vmatpush.bf16.msra.mxu1 %v3365_v34  ;;  %3461 = vmatpush.bf16.msrb.mxu3 %v3365_v34 }
  0xa0   : > { %1772 = vmatmul.bf16.vlgmr.msra.gmra.mxu1 %v4013_v51 }
  0xa1   : > { %3462 = vmatpush.bf16.msra.mxu3 %v3985_v35 }
  0xa5   : > { %3463 = vmatpush.bf16.msra.mxu3 %v3988_v36 }
  0xa9   : > { %3464 = vmatpush.bf16.msra.mxu3 %v3991_v37 }
  0xac   : > { %498 = vmatmul.bf16.gmra.mxu0 %v386_v41 }
  0xad   : > { %3465 = vmatpush.bf16.msra.mxu3 %v3996_v40 }
  0xb1   : > { %3466 = vmatpush.bf16.msra.mxu3 %v3999_v42 }
  0xb5   : > { %3467 = vmatpush.bf16.msra.mxu3 %v4002_v43 }
  0xb9   : > { %3468 = vmatpush.bf16.msra.mxu3 %v4005_v44 }
  0xbc   : > { %503 = vmatmul.bf16.gmra.mxu0 %v387_v48 }
  0xbd   : > { %3469 = vmatpush.bf16.msra.mxu3 %v4010_v47 }
  0xcc   : > { %508 = vmatmul.bf16.gmra.mxu0 %v388_v54 }
  0xd9   : > { %v474_v60 = vpop.f32.mrf.mxu0 }
  0xda   : > { %v475_v62 = vadd.f32 %v4023_v58, %v474_v60 }
  0xdc   : > { %513 = vmatmul.bf16.gmra.mxu0 %v389_v59  ;;  %v4028_v2 = vmax.f32 %v475_v62, 0.0 }
  0xde   : > { %v864_v9 = vpack.c.bf16 %v4028_v2, %v4028_v2  ;;  %v894_v13 = vrot.slane %v4028_v2, 1  ;;  %v737_v44 = vrot.slane %v4028_v2, 7 }
  0xdf   : > { %v4026_v1 = vpop.f32.mrf.mxu3 }
  0xe0   : > { %v1160_v18 = vunpack.c.l.b16 %v864_v9  ;;  %v3390_v9 = vld [vmem:[#allocation7 + $0xc8] sm:$0xff] }
  0xe1   : > { %v476_v3 = vpop.f32.mrf.mxu0  ;;  %2037 = vmatpush.bf16.msrb.mxu0 %v3390_v9 }
  0xe2   : > { %v477_v6 = vadd.f32 %v4023_v58, %v476_v3 }
  0xe4   : > { %v4033_v7 = vmax.f32 %v477_v6, 0.0 }
  0xe6   : > { %v895_v14 = vrot.slane %v4033_v7, 1  ;;  %v865_v15 = vpack.c.bf16 %v4033_v7, %v4033_v7  ;;  %v738_v43 = vrot.slane %v4033_v7, 7 }
  0xe7   : > { %v4044_v16 = vpop.f32.mrf.mxu3 }
  0xe8   : > { %v1161_v19 = vunpack.c.l.b16 %v865_v15  ;;  %v955_v20 = vsel %vm925_vm0, %v894_v13, %v895_v14  ;;  %v537_v7 = vadd.f32 %v4023_v58, %v4044_v16  ;;  %v797_v5 = vsel %vm768_vm2, %v737_v44, %v738_v43 }
  0xe9   : > { %v479_v21 = vpop.f32.mrf.mxu0  ;;  %v990_v41 = vpack.c.bf16 %v955_v20, %v955_v20 }
  0xea   : > { %v480_v24 = vadd.f32 %v4023_v58, %v479_v21  ;;  %v4051_v25 = vpack.c.b16 %v1161_v19, %v1160_v18  ;;  %v371_v21 = vld [vmem:[%s3953_s15 + $0xb0] sm:$0xff] }
  0xeb   : > { %v1250_v54 = vunpack.c.l.b16 %v990_v41 }
  0xec   : > { %v4056_v27 = vmax.f32 %v480_v24, 0.0  ;;  %518 = vmatmul.bf16.gmra.mxu0 %v390_v17  ;;  %1866 = vmatmul.bf16.gmra.mxu2 %v4051_v25 }
  0xee   : > { %v896_v30 = vrot.slane %v4056_v27, 1  ;;  %v866_v48 = vpack.c.bf16 %v4056_v27, %v4056_v27 }
  0xef   : > { %v4061_v31 = vpop.f32.mrf.mxu3 }
  0xf0   : > { %v954_v32 = vsel %vm925_vm0, %v895_v14, %v896_v30  ;;  %v1162_v62 = vunpack.c.l.b16 %v866_v48  ;;  %v3389_v14 = vld [vmem:[#allocation7 + $0xc0] sm:$0xff] }
  0xf1   : > { %v481_v33 = vpop.f32.mrf.mxu0  ;;  %v961_v39 = vsel %vm592_vm1, %v954_v32, 0.0  ;;  %2038 = vmatpush.bf16.msrb.mxu0 %v3389_v14  ;;  %v392_v32 = vpack.c.bf16 %v372_v22, %v371_v21 }
  0xf2   : > { %v482_v45 = vadd.f32 %v4023_v58, %v481_v33  ;;  %v991_v46 = vpack.c.bf16 %v961_v39, %v961_v39 }
  0xf4   : > { %v4070_v49 = vmax.f32 %v482_v45, 0.0  ;;  %v1251_v55 = vunpack.c.l.b16 %v991_v46 }
  0xf6   : > { %v897_v56 = vrot.slane %v4070_v49, 1  ;;  %v867_v57 = vpack.c.bf16 %v4070_v49, %v4070_v49  ;;  %v4081_v60 = vpack.c.b16 %v1251_v55, %v1250_v54 }
  0xf7   : > { %v4079_v59 = vpop.f32.mrf.mxu3 }
  0xf8   : > { %v1163_v63 = vunpack.c.l.b16 %v867_v57  ;;  %v953_v0 = vsel %vm925_vm0, %v896_v30, %v897_v56 }
  0xf9   : > { %v484_v3 = vpop.f32.mrf.mxu0  ;;  %v992_v17 = vpack.c.bf16 %v953_v0, %v953_v0 }
  0xfa   : > { %v485_v6 = vadd.f32 %v4023_v58, %v484_v3  ;;  %v4086_v8 = vpack.c.b16 %v1163_v63, %v1162_v62  ;;  %v535_v62 = vadd.f32 %v4023_v58, %v4026_v1 }
  0xfb   : > { %v1252_v23 = vunpack.c.l.b16 %v992_v17 }
  0xfc   : > { %v4089_v35 = vmax.f32 %v485_v6, 0.0  ;;  %523 = vmatmul.bf16.gmra.mxu0 %v391_v61  ;;  %1871 = vmatmul.bf16.gmra.mxu2 %v4086_v8  ;;  %v540_v6 = vadd.f32 %v4023_v58, %v4061_v31  ;;  %v4156_v14 = vmax.f32 %v535_v62, 0.0  ;;  %v739_v31 = vrot.slane %v4056_v27, 7 }
  0xfe   : > { %v898_v10 = vrot.slane %v4089_v35, 1  ;;  %v868_v37 = vpack.c.bf16 %v4089_v35, %v4089_v35  ;;  %v888_v27 = vpack.c.bf16 %v4156_v14, %v4156_v14 }
  0xff   : > { %v4094_v11 = vpop.f32.mrf.mxu3 }
 0x100   : > { %v952_v12 = vsel %vm925_vm0, %v897_v56, %v898_v10  ;;  %v1164_v33 = vunpack.c.l.b16 %v868_v37 }
 0x101   : > { %v486_v36 = vpop.f32.mrf.mxu0  ;;  %v963_v15 = vsel %vm592_vm1, %v952_v12, 0.0 }
 0x102   : > { %v487_v18 = vadd.f32 %v4023_v58, %v486_v36  ;;  %v993_v19 = vpack.c.bf16 %v963_v15, %v963_v15  ;;  %v4158_v15 = vmax.f32 %v537_v7, 0.0 }
 0x104   : > { %v4104_v20 = vmax.f32 %v487_v18, 0.0  ;;  %v1253_v24 = vunpack.c.l.b16 %v993_v19  ;;  %v835_v19 = vpack.c.bf16 %v797_v5, %v797_v5 }
 0x106   : > { %v899_v28 = vrot.slane %v4104_v20, 1  ;;  %v869_v29 = vpack.c.bf16 %v4104_v20, %v4104_v20  ;;  %v4114_v40 = vpack.c.b16 %v1253_v24, %v1252_v23  ;;  %v4167_v23 = vmax.f32 %v540_v6, 0.0 }
 0x107   : > { %v4112_v30 = vpop.f32.mrf.mxu3  ;;  %v740_v24 = vrot.slane %v4070_v49, 7 }
 0x108   : > { %v1165_v34 = vunpack.c.l.b16 %v869_v29  ;;  %v951_v38 = vsel %vm925_vm0, %v898_v10, %v899_v28  ;;  %v545_v29 = vadd.f32 %v4023_v58, %v4094_v11 }
 0x109   : > { %v489_v39 = vpop.f32.mrf.mxu0  ;;  %v994_v54 = vpack.c.bf16 %v951_v38, %v951_v38 }
 0x10a   : > { %v490_v41 = vadd.f32 %v4023_v58, %v489_v39  ;;  %v4119_v45 = vpack.c.b16 %v1165_v34, %v1164_v33  ;;  %v5522_v34 = vrot.slane %v4156_v14, 1  ;;  %v1069_v39 = vunpack.c.l.b16 %v835_v19 }
 0x10b   : > { %v1254_v63 = vunpack.c.l.b16 %v994_v54  ;;  %v4201_v54 = vmax.f32 %v545_v29, 0.0 }
 0x10c   : > { %v4122_v46 = vmax.f32 %v490_v41, 0.0  ;;  %528 = vmatmul.bf16.gmra.mxu0 %v392_v32  ;;  %1876 = vmatmul.bf16.gmra.mxu2 %v4119_v45 }
 0x10e   : > { %v900_v42 = vrot.slane %v4122_v46, 1  ;;  %v870_v57 = vpack.c.bf16 %v4122_v46, %v4122_v46 }
 0x10f   : > { %v549_v48 = vpop.f32.mrf.mxu3 }
 0x110   : > { %v950_v50 = vsel %vm925_vm0, %v899_v28, %v900_v42  ;;  %v1166_v12 = vunpack.c.l.b16 %v870_v57  ;;  %v550_v17 = vadd.f32 %v4023_v58, %v549_v48  ;;  %v542_v28 = vadd.f32 %v4023_v58, %v4079_v59 }
 0x111   : > { %v491_v52 = vpop.f32.mrf.mxu0  ;;  %v965_v53 = vsel %vm592_vm1, %v950_v50, 0.0  ;;  %v919_v59 = vrot.slane %v4158_v15, 1  ;;  %v920_v48 = vrot.slane %v4167_v23, 1 }
 0x112   : > { %v492_v55 = vadd.f32 %v4023_v58, %v491_v52  ;;  %v995_v56 = vpack.c.bf16 %v965_v53, %v965_v53  ;;  %v4182_v38 = vmax.f32 %v550_v17, 0.0  ;;  %v4193_v50 = vmax.f32 %v542_v28, 0.0 }
 0x113   : > { %v795_v53 = vsel %vm768_vm2, %v739_v31, %v740_v24 }
 0x114   : > { %v4138_v61 = vmax.f32 %v492_v55, 0.0  ;;  %v1255_v0 = vunpack.c.l.b16 %v995_v56  ;;  %v921_v29 = vrot.slane %v4193_v50, 1 }
 0x116   : > { %v901_v3 = vrot.slane %v4138_v61, 1  ;;  %v871_v47 = vpack.c.bf16 %v4138_v61, %v4138_v61  ;;  %v4151_v10 = vpack.c.b16 %v1255_v0, %v1254_v63  ;;  %v889_v63 = vpack.c.bf16 %v4158_v15, %v4158_v15 }
 0x117   : > { %v551_v9 = vpop.f32.mrf.mxu3 }
 0x118   : > { %v552_v1 = vadd.f32 %v4023_v58, %v551_v9  ;;  %v1167_v16 = vunpack.c.l.b16 %v871_v47  ;;  %v949_v36 = vsel %vm925_vm0, %v900_v42, %v901_v3  ;;  %v796_v42 = vsel %vm768_vm2, %v738_v43, %v739_v31 }
 0x119   : > { %v494_v18 = vpop.f32.mrf.mxu0  ;;  %v924_v43 = vrot.slane %v4182_v38, 1  ;;  %v1185_v9 = vunpack.c.l.b16 %v889_v63 }
 0x11a   : > { %v4162_v37 = vmax.f32 %v552_v1, 0.0  ;;  %v495_v21 = vadd.f32 %v4023_v58, %v494_v18  ;;  %v4165_v22 = vpack.c.b16 %v1167_v16, %v1166_v12  ;;  %v930_v1 = vsel %vm925_vm0, %v919_v59, %v920_v48 }
 0x11b   : > { %v931_v12 = vsel %vm925_vm0, %v5522_v34, %v919_v59  ;;  %v985_v31 = vsel %vm592_vm1, %v930_v1, 0.0 }
 0x11c   : > { %v767_v32 = vrot.slane %v4162_v37, 7  ;;  %v4175_v33 = vmax.f32 %v495_v21, 0.0  ;;  %1881 = vmatmul.bf16.gmra.mxu2 %v4165_v22  ;;  %v1029_v57 = vrot.slane %v4162_v37, 1  ;;  %v1014_v21 = vpack.c.bf16 %v931_v12, %v931_v12 }
 0x11e   : > { %v902_v11 = vrot.slane %v4175_v33, 1  ;;  %v798_v41 = vsel %vm768_vm2, %v767_v32, %v737_v44  ;;  %v996_v44 = vpack.c.bf16 %v949_v36, %v949_v36  ;;  %v872_v0 = vpack.c.bf16 %v4175_v33, %v4175_v33 }
 0x11f   : > { %v803_v52 = vsel %vm589_vm3, %v798_v41, 0.0  ;;  %v1030_v28 = vsel %vm925_vm0, %v924_v43, %v1029_v57  ;;  %v922_v41 = vrot.slane %v4201_v54, 1 }
 0x120   : > { %v834_v55 = vpack.c.bf16 %v803_v52, %v803_v52  ;;  %v948_v56 = vsel %vm925_vm0, %v901_v3, %v902_v11  ;;  %v1184_v3 = vunpack.c.l.b16 %v888_v27  ;;  %v1256_v17 = vunpack.c.l.b16 %v996_v44 }
 0x121   : > { %v496_v62 = vpop.f32.mrf.mxu0  ;;  %v967_v7 = vsel %vm592_vm1, %v948_v56, 0.0  ;;  %v1015_v52 = vpack.c.bf16 %v985_v31, %v985_v31  ;;  %v1031_v56 = vsel %vm925_vm0, %v1029_v57, %v894_v13  ;;  %v1168_v44 = vunpack.c.l.b16 %v872_v0 }
 0x122   : > { %v497_v47 = vadd.f32 %v4023_v58, %v496_v62  ;;  %v1068_v5 = vunpack.c.l.b16 %v834_v55  ;;  %v997_v6 = vpack.c.bf16 %v967_v7, %v967_v7  ;;  %v4224_v19 = vpack.c.b16 %v1185_v9, %v1184_v3 }
 0x123   : > { %v1274_v55 = vunpack.c.l.b16 %v1014_v21  ;;  %v1033_v63 = vsel %vm592_vm1, %v1031_v56, 0.0  ;;  %v1275_v3 = vunpack.c.l.b16 %v1015_v52  ;;  %v837_v13 = vpack.c.bf16 %v795_v53, %v795_v53 }
 0x124   : > { %v4222_v16 = vmax.f32 %v497_v47, 0.0  ;;  %v1099_v36 = vpack.c.b16 %v1069_v39, %v1068_v5  ;;  %v1257_v18 = vunpack.c.l.b16 %v997_v6  ;;  %v890_v47 = vpack.c.bf16 %v4167_v23, %v4167_v23 }
 0x125   : > { %v805_v6 = vsel %vm589_vm3, %v796_v42, 0.0  ;;  %v891_v57 = vpack.c.bf16 %v4193_v50, %v4193_v50  ;;  %v1034_v0 = vpack.c.bf16 %v1030_v28, %v1030_v28  ;;  %v1035_v1 = vpack.c.bf16 %v1033_v63, %v1033_v63 }
 0x126   : > { %v903_v27 = vrot.slane %v4222_v16, 1  ;;  %1777 = vmatmul.bf16.gmra.mxu1 %v1099_v36  ;;  %2039 = vmatmul.bf16.vlgmr.msrb.gmra.mxu0 %v1099_v36  ;;  %v873_v39 = vpack.c.bf16 %v4222_v16, %v4222_v16  ;;  %v4236_v59 = vpack.c.b16 %v1257_v18, %v1256_v17  ;;  %v836_v36 = vpack.c.bf16 %v805_v6, %v805_v6 }
 0x127   : > { %v928_v42 = vsel %vm925_vm0, %v921_v29, %v922_v41  ;;  %v1186_v17 = vunpack.c.l.b16 %v890_v47  ;;  %v1187_v18 = vunpack.c.l.b16 %v891_v57  ;;  %v741_v53 = vrot.slane %v4089_v35, 7 }
 0x128   : > { %v1169_v62 = vunpack.c.l.b16 %v873_v39  ;;  %v947_v7 = vsel %vm925_vm0, %v902_v11, %v903_v27  ;;  %v4256_v11 = vpack.c.b16 %v1275_v3, %v1274_v55  ;;  %v1071_v21 = vunpack.c.l.b16 %v837_v13 }
 0x129   : > { %v499_v5 = vpop.f32.mrf.mxu0  ;;  %v4267_v39 = vpack.c.b16 %v1187_v18, %v1186_v17  ;;  %v929_v28 = vsel %vm925_vm0, %v920_v48, %v921_v29  ;;  %v1324_v52 = vunpack.c.l.b16 %v1034_v0  ;;  %v1325_v55 = vunpack.c.l.b16 %v1035_v1 }
 0x12a   : > { %v500_v2 = vadd.f32 %v4023_v58, %v499_v5  ;;  %v4252_v9 = vpack.c.b16 %v1169_v62, %v1168_v44  ;;  %5561 = vst [vmem:[#allocation15_spill] sm:$0xff] %v4256_v11  ;;  %v1070_v56 = vunpack.c.l.b16 %v836_v36  ;;  %v998_v62 = vpack.c.bf16 %v947_v7, %v947_v7 }
 0x12b   : > { %v742_v63 = vrot.slane %v4104_v20, 7  ;;  %v987_v5 = vsel %vm592_vm1, %v928_v42, 0.0  ;;  %v547_v6 = vadd.f32 %v4023_v58, %v4112_v30  ;;  %v1016_v7 = vpack.c.bf16 %v929_v28, %v929_v28 }
 0x12c   : > { %v4258_v12 = vmax.f32 %v500_v2, 0.0  ;;  %1886 = vmatmul.bf16.gmra.mxu2 %v4252_v9  ;;  %v4283_v29 = vpack.c.b16 %v1071_v21, %v1070_v56  ;;  %v1017_v2 = vpack.c.bf16 %v987_v5, %v987_v5  ;;  %v4289_v13 = vpack.c.b16 %v1325_v55, %v1324_v52 }
 0x12d   : > { %v1258_v30 = vunpack.c.l.b16 %v998_v62  ;;  %v793_v36 = vsel %vm768_vm2, %v741_v53, %v742_v63  ;;  %v1276_v49 = vunpack.c.l.b16 %v1016_v7  ;;  %v4299_v17 = vmax.f32 %v547_v6, 0.0 }
 0x12e   : > { %v904_v31 = vrot.slane %v4258_v12, 1  ;;  %5562 = vst [vmem:[#allocation16_spill] sm:$0xff] %v4283_v29  ;;  %v874_v57 = vpack.c.bf16 %v4258_v12, %v4258_v12  ;;  %v1277_v42 = vunpack.c.l.b16 %v1017_v2  ;;  %v892_v62 = vpack.c.bf16 %v4201_v54, %v4201_v54 }
 0x12f   : > { %5563 = vst [vmem:[#allocation17_spill] sm:$0xff] %v4289_v13  ;;  %v839_v5 = vpack.c.bf16 %v793_v36, %v793_v36  ;;  %v893_v7 = vpack.c.bf16 %v4299_v17, %v4299_v17 }
 0x130   : > { %v946_v44 = vsel %vm925_vm0, %v903_v27, %v904_v31  ;;  %v794_v27 = vsel %vm768_vm2, %v740_v24, %v741_v53  ;;  %v4310_v52 = vpack.c.b16 %v1277_v42, %v1276_v49  ;;  %v923_v53 = vrot.slane %v4299_v17, 1 }
 0x131   : > { %v501_v35 = vpop.f32.mrf.mxu0  ;;  %v969_v47 = vsel %vm592_vm1, %v946_v44, 0.0  ;;  %v807_v28 = vsel %vm589_vm3, %v794_v27, 0.0  ;;  %v1170_v55 = vunpack.c.l.b16 %v874_v57  ;;  %v5521_v27 = vrot.slane %v4299_v17, 7 }
 0x132   : > { %v502_v48 = vadd.f32 %v4023_v58, %v501_v35  ;;  %v999_v3 = vpack.c.bf16 %v969_v47, %v969_v47  ;;  %5564 = vst [vmem:[#allocation18_spill] sm:$0xff] %v4310_v52  ;;  %v1020_v35 = vrot.slane %v4182_v38, 7  ;;  %v1073_v57 = vunpack.c.l.b16 %v839_v5 }
 0x134   : > { %v4293_v0 = vmax.f32 %v502_v48, 0.0  ;;  %v1259_v1 = vunpack.c.l.b16 %v999_v3  ;;  %v838_v3 = vpack.c.bf16 %v807_v28, %v807_v28  ;;  %v1022_v36 = vsel %vm768_vm2, %v5521_v27, %v1020_v35  ;;  %v4426_v27 = vpop.f32.mrf.mxu2 }
 0x135   : > { %v1021_v28 = vsel %vm768_vm2, %v1020_v35, %v767_v32  ;;  %5571 = vst [vmem:[#allocation25_spill] sm:$0xff] %v4426_v27 }
 0x136   : > { %v905_v24 = vrot.slane %v4293_v0, 1  ;;  %1782 = vmatmul.bf16.gmra.mxu1 %v4283_v29  ;;  %2044 = vmatmul.bf16.gmra.mxu0 %v4283_v29  ;;  %v875_v18 = vpack.c.bf16 %v4293_v0, %v4293_v0  ;;  %v4306_v21 = vpack.c.b16 %v1259_v1, %v1258_v30  ;;  %v1188_v30 = vunpack.c.l.b16 %v892_v62 }
 0x137   : > { %v1189_v1 = vunpack.c.l.b16 %v893_v7  ;;  %v1072_v42 = vunpack.c.l.b16 %v838_v3  ;;  %v927_v62 = vsel %vm925_vm0, %v922_v41, %v923_v53  ;;  %v743_v7 = vrot.slane %v4122_v46, 7 }
 0x138   : > { %v1171_v56 = vunpack.c.l.b16 %v875_v18  ;;  %v945_v44 = vsel %vm925_vm0, %v904_v31, %v905_v24  ;;  %v926_v31 = vsel %vm925_vm0, %v923_v53, %v924_v43  ;;  %v1023_v43 = vsel %vm589_vm3, %v1022_v36, 0.0 }
 0x139   : > { %v504_v47 = vpop.f32.mrf.mxu0  ;;  %v1000_v18 = vpack.c.bf16 %v945_v44, %v945_v44  ;;  %v1025_v44 = vpack.c.bf16 %v1023_v43, %v1023_v43  ;;  %v989_v3 = vsel %vm592_vm1, %v926_v31, 0.0  ;;  %v744_v53 = vrot.slane %v4138_v61, 7 }
 0x13a   : > { %v505_v6 = vadd.f32 %v4023_v58, %v504_v47  ;;  %v4319_v48 = vpack.c.b16 %v1171_v56, %v1170_v55  ;;  %v4340_v55 = vpack.c.b16 %v1189_v1, %v1188_v30  ;;  %v1026_v56 = vpack.c.bf16 %v1021_v28, %v1021_v28 }
 0x13b   : > { %v1312_v41 = vunpack.c.l.b16 %v1025_v44  ;;  %v1018_v36 = vpack.c.bf16 %v927_v62, %v927_v62  ;;  %v1019_v28 = vpack.c.bf16 %v989_v3, %v989_v3  ;;  %v792_v62 = vsel %vm768_vm2, %v742_v63, %v743_v7 }
 0x13c   : > { %v4324_v2 = vmax.f32 %v505_v6, 0.0  ;;  %1891 = vmatmul.bf16.gmra.mxu2 %v4319_v48  ;;  %v4350_v6 = vpack.c.b16 %v1073_v57, %v1072_v42  ;;  %v1313_v35 = vunpack.c.l.b16 %v1026_v56  ;;  %v809_v20 = vsel %vm589_vm3, %v792_v62, 0.0 }
 0x13d   : > { %v1278_v31 = vunpack.c.l.b16 %v1018_v36  ;;  %v840_v36 = vpack.c.bf16 %v809_v20, %v809_v20 }
 0x13e   : > { %v906_v49 = vrot.slane %v4324_v2, 1  ;;  %5565 = vst [vmem:[#allocation19_spill] sm:$0xff] %v4350_v6  ;;  %v876_v57 = vpack.c.bf16 %v4324_v2, %v4324_v2  ;;  %v4363_v56 = vpack.c.b16 %v1313_v35, %v1312_v41  ;;  %v791_v35 = vsel %vm768_vm2, %v743_v7, %v744_v53  ;;  %v3404_v7 = vld [vmem:[#allocation7 + $0x138] sm:$0xff] }
 0x13f   : > { %2120 = vmatpush.bf16.msrb.mxu1 %v3404_v7 }
 0x140   : > { %v944_v47 = vsel %vm925_vm0, %v905_v24, %v906_v49  ;;  %v1260_v24 = vunpack.c.l.b16 %v1000_v18  ;;  %5566 = vst [vmem:[#allocation20_spill] sm:$0xff] %v4363_v56 }
 0x141   : > { %v506_v5 = vpop.f32.mrf.mxu0  ;;  %v971_v32 = vsel %vm592_vm1, %v944_v47, 0.0  ;;  %v1279_v47 = vunpack.c.l.b16 %v1019_v28 }
 0x142   : > { %v507_v30 = vadd.f32 %v4023_v58, %v506_v5  ;;  %v1001_v1 = vpack.c.bf16 %v971_v32, %v971_v32  ;;  %v1172_v5 = vunpack.c.l.b16 %v876_v57 }
 0x143   : > { %v4376_v44 = vpack.c.b16 %v1279_v47, %v1278_v31  ;;  %v1074_v47 = vunpack.c.l.b16 %v840_v36 }
 0x144   : > { %v4361_v42 = vmax.f32 %v507_v30, 0.0  ;;  %v1261_v43 = vunpack.c.l.b16 %v1001_v1 }
 0x145   : > { %5567 = vst [vmem:[#allocation21_spill] sm:$0xff] %v4376_v44  ;;  %v4549_v44 = vpop.f32.mrf.mxu1 }
 0x146   : > { %v907_v46 = vrot.slane %v4361_v42, 1  ;;  %1787 = vmatmul.bf16.gmra.mxu1 %v4350_v6  ;;  %2049 = vmatmul.bf16.gmra.mxu0 %v4350_v6  ;;  %v877_v61 = vpack.c.bf16 %v4361_v42, %v4361_v42  ;;  %v4370_v18 = vpack.c.b16 %v1261_v43, %v1260_v24  ;;  %v841_v24 = vpack.c.bf16 %v791_v35, %v791_v35 }
 0x147   : > { %v745_v35 = vrot.slane %v4175_v33, 7  ;;  %v750_v6 = vrot.slane %v4361_v42, 7  ;;  %5580 = vst [vmem:[#allocation34_spill] sm:$0xff] %v4549_v44 }
 0x148   : > { %v1173_v32 = vunpack.c.l.b16 %v877_v61  ;;  %v943_v3 = vsel %vm925_vm0, %v906_v49, %v907_v46  ;;  %v1075_v57 = vunpack.c.l.b16 %v841_v24 }
 0x149   : > { %v509_v30 = vpop.f32.mrf.mxu0  ;;  %v1002_v43 = vpack.c.bf16 %v943_v3, %v943_v3  ;;  %v790_v7 = vsel %vm768_vm2, %v744_v53, %v745_v35 }
 0x14a   : > { %v510_v1 = vadd.f32 %v4023_v58, %v509_v30  ;;  %v4383_v41 = vpack.c.b16 %v1173_v32, %v1172_v5  ;;  %v1027_v32 = vpack.c.bf16 %v4182_v38, %v4182_v38  ;;  %v746_v30 = vrot.slane %v4222_v16, 7 }
 0x14b   : > { %v1262_v20 = vunpack.c.l.b16 %v1002_v43 }
 0x14c   : > { %5568 = vst [vmem:[#allocation22_spill] sm:$0xff] %v4383_v41  ;;  %v4387_v63 = vmax.f32 %v510_v1, 0.0  ;;  %1896 = vmatmul.bf16.gmra.mxu2 %v4383_v41  ;;  %v4400_v1 = vpack.c.b16 %v1075_v57, %v1074_v47  ;;  %v789_v16 = vsel %vm768_vm2, %v745_v35, %v746_v30  ;;  %v1028_v57 = vpack.c.bf16 %v4162_v37, %v4162_v37 }
 0x14d   : > { %v1318_v47 = vunpack.c.l.b16 %v1027_v32  ;;  %v843_v53 = vpack.c.bf16 %v789_v16, %v789_v16 }
 0x14e   : > { %v908_v28 = vrot.slane %v4387_v63, 1  ;;  %5569 = vst [vmem:[#allocation23_spill] sm:$0xff] %v4400_v1 }
 0x150   : > { %v942_v49 = vsel %vm925_vm0, %v907_v46, %v908_v28  ;;  %v878_v46 = vpack.c.bf16 %v4387_v63, %v4387_v63 }
 0x151   : > { %v511_v31 = vpop.f32.mrf.mxu0  ;;  %v973_v61 = vsel %vm592_vm1, %v942_v49, 0.0 }
 0x152   : > { %v512_v62 = vadd.f32 %v4023_v58, %v511_v31  ;;  %v1003_v5 = vpack.c.bf16 %v973_v61, %v973_v61  ;;  %v1174_v49 = vunpack.c.l.b16 %v878_v46 }
 0x154   : > { %v4404_v3 = vmax.f32 %v512_v62, 0.0  ;;  %v1263_v24 = vunpack.c.l.b16 %v1003_v5  ;;  %v1319_v62 = vunpack.c.l.b16 %v1028_v57  ;;  %v3411_v57 = vld [vmem:[#allocation7 + $0x170] sm:$0xff] }
 0x156   : > { %v909_v36 = vrot.slane %v4404_v3, 1  ;;  %1792 = vmatmul.bf16.gmra.mxu1 %v4400_v1  ;;  %2054 = vmatmul.bf16.gmra.mxu0 %v4400_v1  ;;  %v879_v33 = vpack.c.bf16 %v4404_v3, %v4404_v3  ;;  %v4411_v38 = vpack.c.b16 %v1263_v24, %v1262_v20  ;;  %v811_v24 = vsel %vm589_vm3, %v790_v7, 0.0  ;;  %v4447_v1 = vpop.f32.mrf.mxu2 }
 0x157   : > { %v4428_v35 = vpack.c.b16 %v1319_v62, %v1318_v47  ;;  %v842_v32 = vpack.c.bf16 %v811_v24, %v811_v24  ;;  %v748_v24 = vrot.slane %v4293_v0, 7  ;;  %5574 = vst [vmem:[#allocation28_spill] sm:$0xff] %v4447_v1  ;;  %v3403_v0 = vld [vmem:[#allocation7 + $0x130] sm:$0xff] }
 0x158   : > { %v1175_v43 = vunpack.c.l.b16 %v879_v33  ;;  %v941_v31 = vsel %vm925_vm0, %v908_v28, %v909_v36  ;;  %v3412_v28 = vld [vmem:[#allocation7 + $0x178] sm:$0xff]  ;;  %v1077_v33 = vunpack.c.l.b16 %v843_v53  ;;  %2121 = vmatpush.bf16.msrb.mxu1 %v3403_v0  ;;  %v3407_v0 = vld [vmem:[#allocation7 + $0x150] sm:$0xff] }
 0x159   : > { %v514_v61 = vpop.f32.mrf.mxu0  ;;  %5572 = vst [vmem:[#allocation26_spill] sm:$0xff] %v4428_v35  ;;  %2209 = vmatpush.bf16.msrb.mxu2 %v3412_v28  ;;  %v1004_v7 = vpack.c.bf16 %v941_v31, %v941_v31  ;;  %v3410_v31 = vld [vmem:[#allocation7 + $0x168] sm:$0xff] }
 0x15a   : > { %v515_v5 = vadd.f32 %v4023_v58, %v514_v61  ;;  %v4422_v20 = vpack.c.b16 %v1175_v43, %v1174_v49  ;;  %v1076_v61 = vunpack.c.l.b16 %v842_v32 }
 0x15b   : > { %v1264_v32 = vunpack.c.l.b16 %v1004_v7 }
 0x15c   : > { %5570 = vst [vmem:[#allocation24_spill] sm:$0xff] %v4422_v20  ;;  %v4430_v37 = vmax.f32 %v515_v5, 0.0  ;;  %1901 = vmatmul.bf16.gmra.mxu2 %v4422_v20  ;;  %v747_v5 = vrot.slane %v4258_v12, 7  ;;  %v4441_v28 = vpack.c.b16 %v1077_v33, %v1076_v61 }
 0x15d   : > { %2210 = vmatpush.bf16.msrb.mxu2 %v3411_v57 }
 0x15e   : > { %v910_v46 = vrot.slane %v4430_v37, 1  ;;  %5573 = vst [vmem:[#allocation27_spill] sm:$0xff] %v4441_v28  ;;  %v880_v53 = vpack.c.bf16 %v4430_v37, %v4430_v37  ;;  %v788_v57 = vsel %vm768_vm2, %v746_v30, %v747_v5  ;;  %v787_v61 = vsel %vm768_vm2, %v747_v5, %v748_v24  ;;  %v3408_v5 = vld [vmem:[#allocation7 + $0x158] sm:$0xff] }
 0x15f   : > { %v845_v30 = vpack.c.bf16 %v787_v61, %v787_v61 }
 0x160   : > { %v940_v49 = vsel %vm925_vm0, %v909_v36, %v910_v46  ;;  %v1176_v7 = vunpack.c.l.b16 %v880_v53 }
 0x161   : > { %v516_v43 = vpop.f32.mrf.mxu0  ;;  %v975_v16 = vsel %vm592_vm1, %v940_v49, 0.0  ;;  %2211 = vmatpush.bf16.msrb.mxu2 %v3410_v31 }
 0x162   : > { %v517_v47 = vadd.f32 %v4023_v58, %v516_v43  ;;  %v1005_v62 = vpack.c.bf16 %v975_v16, %v975_v16  ;;  %v3409_v16 = vld [vmem:[#allocation7 + $0x160] sm:$0xff] }
 0x164   : > { %v4445_v36 = vmax.f32 %v517_v47, 0.0  ;;  %v1265_v34 = vunpack.c.l.b16 %v1005_v62 }
 0x165   : > { %2212 = vmatpush.bf16.msrb.mxu2 %v3409_v16 }
 0x166   : > { %v911_v49 = vrot.slane %v4445_v36, 1  ;;  %1797 = vmatmul.bf16.gmra.mxu1 %v4441_v28  ;;  %2059 = vmatmul.bf16.gmra.mxu0 %v4441_v28  ;;  %v881_v12 = vpack.c.bf16 %v4445_v36, %v4445_v36  ;;  %v4454_v33 = vpack.c.b16 %v1265_v34, %v1264_v32  ;;  %v813_v34 = vsel %vm589_vm3, %v788_v57, 0.0 }
 0x167   : > { %v844_v31 = vpack.c.bf16 %v813_v34, %v813_v34  ;;  %v749_v34 = vrot.slane %v4324_v2, 7 }
 0x168   : > { %v1177_v43 = vunpack.c.l.b16 %v881_v12  ;;  %v939_v47 = vsel %vm925_vm0, %v910_v46, %v911_v49  ;;  %v1079_v46 = vunpack.c.l.b16 %v845_v30 }
 0x169   : > { %v519_v62 = vpop.f32.mrf.mxu0  ;;  %2213 = vmatpush.bf16.msrb.mxu2 %v3408_v5  ;;  %v1078_v61 = vunpack.c.l.b16 %v844_v31 }
 0x16a   : > { %v520_v1 = vadd.f32 %v4023_v58, %v519_v62  ;;  %v4463_v28 = vpack.c.b16 %v1177_v43, %v1176_v7  ;;  %v1006_v43 = vpack.c.bf16 %v939_v47, %v939_v47  ;;  %v3406_v47 = vld [vmem:[#allocation7 + $0x148] sm:$0xff] }
 0x16b   : > { %v4480_v29 = vpack.c.b16 %v1079_v46, %v1078_v61  ;;  %v785_v61 = vsel %vm768_vm2, %v749_v34, %v750_v6 }
 0x16c   : > { %5575 = vst [vmem:[#allocation29_spill] sm:$0xff] %v4463_v28  ;;  %v4467_v53 = vmax.f32 %v520_v1, 0.0  ;;  %1906 = vmatmul.bf16.gmra.mxu2 %v4463_v28  ;;  %v1266_v5 = vunpack.c.l.b16 %v1006_v43 }
 0x16d   : > { %5576 = vst [vmem:[#allocation30_spill] sm:$0xff] %v4480_v29  ;;  %2214 = vmatpush.bf16.msrb.mxu2 %v3407_v0  ;;  %v786_v0 = vsel %vm768_vm2, %v748_v24, %v749_v34  ;;  %v847_v24 = vpack.c.bf16 %v785_v61, %v785_v61 }
 0x16e   : > { %v912_v32 = vrot.slane %v4467_v53, 1  ;;  %v882_v30 = vpack.c.bf16 %v4467_v53, %v4467_v53  ;;  %v815_v35 = vsel %vm589_vm3, %v786_v0, 0.0 }
 0x16f   : > { %v4471_v12 = vpop.f32.mrf.mxu2  ;;  %v846_v34 = vpack.c.bf16 %v815_v35, %v815_v35  ;;  %v752_v35 = vrot.slane %v4404_v3, 7 }
 0x170   : > { %v938_v7 = vsel %vm925_vm0, %v911_v49, %v912_v32 }
 0x171   : > { %v521_v57 = vpop.f32.mrf.mxu0  ;;  %v977_v1 = vsel %vm592_vm1, %v938_v7, 0.0  ;;  %2215 = vmatpush.bf16.msrb.mxu2 %v3406_v47  ;;  %v1080_v27 = vunpack.c.l.b16 %v846_v34 }
 0x172   : > { %v522_v16 = vadd.f32 %v4023_v58, %v521_v57  ;;  %v1007_v62 = vpack.c.bf16 %v977_v1, %v977_v1  ;;  %v1178_v57 = vunpack.c.l.b16 %v882_v30  ;;  %v3402_v1 = vld [vmem:[#allocation7 + $0x128] sm:$0xff] }
 0x173   : > { %2122 = vmatpush.bf16.msrb.mxu1 %v3402_v1 }
 0x174   : > { %v4484_v49 = vmax.f32 %v522_v16, 0.0  ;;  %v1267_v31 = vunpack.c.l.b16 %v1007_v62  ;;  %v3405_v16 = vld [vmem:[#allocation7 + $0x140] sm:$0xff] }
 0x175   : > { %2216 = vmatpush.bf16.msrb.mxu2 %v3405_v16  ;;  %v751_v16 = vrot.slane %v4387_v63, 7 }
 0x176   : > { %v913_v7 = vrot.slane %v4484_v49, 1  ;;  %1802 = vmatmul.bf16.gmra.mxu1 %v4480_v29  ;;  %2064 = vmatmul.bf16.gmra.mxu0 %v4480_v29  ;;  %v883_v2 = vpack.c.bf16 %v4484_v49, %v4484_v49  ;;  %v4491_v42 = vpack.c.b16 %v1267_v31, %v1266_v5 }
 0x177   : > { %v4493_v46 = vpop.f32.mrf.mxu2 }
 0x178   : > { %v1179_v43 = vunpack.c.l.b16 %v883_v2  ;;  %v937_v62 = vsel %vm925_vm0, %v912_v32, %v913_v7  ;;  %v1081_v32 = vunpack.c.l.b16 %v847_v24 }
 0x179   : > { %v524_v29 = vpop.f32.mrf.mxu0 }
 0x17a   : > { %v525_v5 = vadd.f32 %v4023_v58, %v524_v29  ;;  %v4502_v31 = vpack.c.b16 %v1179_v43, %v1178_v57  ;;  %v1008_v57 = vpack.c.bf16 %v937_v62, %v937_v62 }
 0x17c   : > { %5577 = vst [vmem:[#allocation31_spill] sm:$0xff] %v4502_v31  ;;  %v4506_v30 = vmax.f32 %v525_v5, 0.0  ;;  %1911 = vmatmul.bf16.gmra.mxu2 %v4502_v31  ;;  %v4519_v5 = vpack.c.b16 %v1081_v32, %v1080_v27  ;;  %v784_v27 = vsel %vm768_vm2, %v750_v6, %v751_v16  ;;  %v3401_v31 = vld [vmem:[#allocation7 + $0x120] sm:$0xff] }
 0x17d   : > { %v817_v6 = vsel %vm589_vm3, %v784_v27, 0.0  ;;  %2123 = vmatpush.bf16.msrb.mxu1 %v3401_v31  ;;  %v754_v31 = vrot.slane %v4445_v36, 7  ;;  %v5581_v36 = vrot.slane %v4156_v14, 1 }
 0x17e   : > { %v914_v47 = vrot.slane %v4506_v30, 1  ;;  %5578 = vst [vmem:[#allocation32_spill] sm:$0xff] %v4519_v5  ;;  %v884_v24 = vpack.c.bf16 %v4506_v30, %v4506_v30 }
 0x17f   : > { %v4510_v2 = vpop.f32.mrf.mxu2 }
 0x180   : > { %v936_v29 = vsel %vm925_vm0, %v913_v7, %v914_v47  ;;  %v1268_v7 = vunpack.c.l.b16 %v1008_v57  ;;  %v1180_v32 = vunpack.c.l.b16 %v884_v24  ;;  %v783_v57 = vsel %vm768_vm2, %v751_v16, %v752_v35 }
 0x181   : > { %v526_v43 = vpop.f32.mrf.mxu0  ;;  %v979_v0 = vsel %vm592_vm1, %v936_v29, 0.0 }
 0x182   : > { %v527_v61 = vadd.f32 %v4023_v58, %v526_v43  ;;  %v1009_v1 = vpack.c.bf16 %v979_v0, %v979_v0 }
 0x184   : > { %v4523_v13 = vmax.f32 %v527_v61, 0.0  ;;  %v1269_v62 = vunpack.c.l.b16 %v1009_v1  ;;  %v3557_v61 = vld [vmem:[%s5515_s2] ss:$0 sm:$0xff] }
 0x186   : > { %v915_v34 = vrot.slane %v4523_v13, 1  ;;  %1807 = vmatmul.bf16.gmra.mxu1 %v4519_v5  ;;  %2069 = vmatmul.bf16.gmra.mxu0 %v4519_v5  ;;  %v885_v58 = vpack.c.bf16 %v4523_v13, %v4523_v13  ;;  %v4530_v63 = vpack.c.b16 %v1269_v62, %v1268_v7  ;;  %v849_v62 = vpack.c.bf16 %v783_v57, %v783_v57 }
 0x187   : > { %v4534_v3 = vpop.f32.mrf.mxu2 }
 0x188   : > { %v1181_v29 = vunpack.c.l.b16 %v885_v58  ;;  %v935_v43 = vsel %vm925_vm0, %v914_v47, %v915_v34  ;;  %v848_v58 = vpack.c.bf16 %v817_v6, %v817_v6  ;;  %v5542_v47 = vrot.slane %v4523_v13, 7 }
 0x189   : > { %v529_v0 = vpop.f32.mrf.mxu0  ;;  %v1083_v52 = vunpack.c.l.b16 %v849_v62  ;;  %v1010_v11 = vpack.c.bf16 %v935_v43, %v935_v43  ;;  %v753_v43 = vrot.slane %v4430_v37, 7 }
 0x18a   : > { %v530_v1 = vadd.f32 %v3557_v61, %v529_v0  ;;  %v4543_v7 = vpack.c.b16 %v1181_v29, %v1180_v32  ;;  %v1082_v0 = vunpack.c.l.b16 %v848_v58 }
 0x18c   : > { %5579 = vst [vmem:[#allocation33_spill] sm:$0xff] %v4543_v7  ;;  %v576_v24 = vmax.f32 %v530_v1, 0.0  ;;  %1916 = vmatmul.bf16.gmra.mxu2 %v4543_v7  ;;  %v4562_v44 = vpack.c.b16 %v1083_v52, %v1082_v0 }
 0x18e   : > { %v759_v16 = vrot.slane %v576_v24, 7  ;;  %v916_v5 = vrot.slane %v576_v24, 1  ;;  %v886_v7 = vpack.c.bf16 %v576_v24, %v576_v24 }
 0x18f   : > { %v4559_v1 = vpop.f32.mrf.mxu2 }
 0x190   : > { %v934_v32 = vsel %vm925_vm0, %v915_v34, %v916_v5  ;;  %v776_v27 = vsel %vm768_vm2, %v5542_v47, %v759_v16  ;;  %v1270_v34 = vunpack.c.l.b16 %v1010_v11  ;;  %v782_v11 = vsel %vm768_vm2, %v752_v35, %v753_v43 }
 0x191   : > { %v531_v29 = vpop.f32.mrf.mxu0  ;;  %v981_v57 = vsel %vm592_vm1, %v934_v32, 0.0  ;;  %v825_v28 = vsel %vm589_vm3, %v776_v27, 0.0  ;;  %v1182_v37 = vunpack.c.l.b16 %v886_v7  ;;  %v4579_v27 = vpop.f32.mrf.mxu1 }
 0x192   : > { %v532_v6 = vadd.f32 %v3557_v61, %v531_v29  ;;  %v1011_v62 = vpack.c.bf16 %v981_v57, %v981_v57  ;;  %v856_v52 = vpack.c.bf16 %v825_v28, %v825_v28  ;;  %5582 = vst [vmem:[#allocation35_spill] sm:$0xff] %v4579_v27 }
 0x194   : > { %v577_v58 = vmax.f32 %v532_v6, 0.0  ;;  %v1271_v20 = vunpack.c.l.b16 %v1011_v62  ;;  %v1090_v6 = vunpack.c.l.b16 %v856_v52 }
 0x196   : > { %v760_v47 = vrot.slane %v577_v58, 7  ;;  %v887_v41 = vpack.c.bf16 %v577_v58, %v577_v58  ;;  %v917_v32 = vrot.slane %v577_v58, 1  ;;  %1812 = vmatmul.bf16.gmra.mxu1 %v4562_v44  ;;  %2074 = vmatmul.bf16.gmra.mxu0 %v4562_v44  ;;  %v4569_v61 = vpack.c.b16 %v1271_v20, %v1270_v34 }
 0x197   : > { %v781_v20 = vsel %vm768_vm2, %v753_v43, %v754_v31  ;;  %v819_v34 = vsel %vm589_vm3, %v782_v11, 0.0  ;;  %v4591_v58 = vpop.f32.mrf.mxu2  ;;  %v762_v11 = vrot.slane %v4158_v15, 7 }
 0x198   : > { %v1183_v24 = vunpack.c.l.b16 %v887_v41  ;;  %v775_v29 = vsel %vm768_vm2, %v759_v16, %v760_v47  ;;  %v932_v0 = vsel %vm925_vm0, %v917_v32, %v5581_v36  ;;  %v933_v28 = vsel %vm925_vm0, %v916_v5, %v917_v32 }
 0x199   : > { %v857_v57 = vpack.c.bf16 %v775_v29, %v775_v29  ;;  %v983_v41 = vsel %vm592_vm1, %v932_v0, 0.0  ;;  %v1012_v7 = vpack.c.bf16 %v933_v28, %v933_v28  ;;  %v851_v43 = vpack.c.bf16 %v781_v20, %v781_v20 }
 0x19a   : > { %v4587_v35 = vpack.c.b16 %v1183_v24, %v1182_v37  ;;  %v1013_v16 = vpack.c.bf16 %v983_v41, %v983_v41  ;;  %v761_v5 = vrot.slane %v4156_v14, 7  ;;  %v850_v32 = vpack.c.bf16 %v819_v34, %v819_v34  ;;  %v4606_v24 = vld [vmem:[%s5517_s4] ss:$0 sm:$0xff]  ;;  %v3400_v34 = vld [vmem:[#allocation7 + $0x118] sm:$0xff] }
 0x19b   : > { %v1091_v62 = vunpack.c.l.b16 %v857_v57  ;;  %v1272_v29 = vunpack.c.l.b16 %v1012_v7  ;;  %v1085_v0 = vunpack.c.l.b16 %v851_v43  ;;  %v755_v41 = vrot.slane %v4467_v53, 7  ;;  %2124 = vmatpush.bf16.msrb.mxu1 %v3400_v34 }
 0x19c   : > { %2217 = vmatmul.bf16.vlgmr.msrb.gmra.mxu2 %v4081_v60  ;;  %v1273_v36 = vunpack.c.l.b16 %v1013_v16  ;;  %v774_v52 = vsel %vm768_vm2, %v760_v47, %v761_v5  ;;  %v1084_v57 = vunpack.c.l.b16 %v850_v32  ;;  %v773_v15 = vsel %vm768_vm2, %v761_v5, %v762_v11  ;;  %v3399_v5 = vld [vmem:[#allocation7 + $0x110] sm:$0xff] }
 0x19d   : > { %v4595_v26 = vpack.c.b16 %v1091_v62, %v1090_v6  ;;  %v827_v14 = vsel %vm589_vm3, %v774_v52, 0.0  ;;  %v756_v16 = vrot.slane %v4484_v49, 7  ;;  %v859_v53 = vpack.c.bf16 %v773_v15, %v773_v15 }
 0x19e   : > { %v4597_v37 = vpack.c.b16 %v1273_v36, %v1272_v29  ;;  %v4614_v47 = vpack.c.b16 %v1085_v0, %v1084_v57  ;;  %v858_v6 = vpack.c.bf16 %v827_v14, %v827_v14  ;;  %v780_v29 = vsel %vm768_vm2, %v754_v31, %v755_v41 }
 0x19f   : > { %5583 = vst [vmem:[#allocation36_spill] sm:$0xff] %v4595_v26  ;;  %1832 = vmatmul.bf16.vlgmr.msrb.gmra.mxu3 %v4595_v26  ;;  %v4619_v62 = vpop.f32.mrf.mxu2  ;;  %v779_v49 = vsel %vm768_vm2, %v755_v41, %v756_v16  ;;  %v763_v32 = vrot.slane %v4167_v23, 7  ;;  %v1093_v57 = vunpack.c.l.b16 %v859_v53  ;;  %2125 = vmatpush.bf16.msrb.mxu1 %v3399_v5  ;;  %v764_v41 = vrot.slane %v4193_v50, 7 }
 0x1a0   : > { %5585 = vst [vmem:[#allocation38_spill] sm:$0xff] %v4614_v47  ;;  %v1092_v36 = vunpack.c.l.b16 %v858_v6  ;;  %v853_v31 = vpack.c.bf16 %v779_v49, %v779_v49  ;;  %v3398_v6 = vld [vmem:[#allocation7 + $0x108] sm:$0xff]  ;;  %v757_v5 = vrot.slane %v4506_v30, 7 }
 0x1a1   : > { %v772_v15 = vsel %vm768_vm2, %v762_v11, %v763_v32 }
 0x1a2   : > { %v1087_v53 = vunpack.c.l.b16 %v853_v31  ;;  %v829_v50 = vsel %vm589_vm3, %v772_v15, 0.0  ;;  %v778_v31 = vsel %vm768_vm2, %v756_v16, %v757_v5  ;;  %v5590_v15 = vrot.slane %v4523_v13, 7 }
 0x1a3   : > { %v1778_v20 = vpop.f32.mrf.mxu1  ;;  %v4610_v28 = vpop.f32.mrf.mxu0  ;;  %2126 = vmatpush.bf16.msrb.mxu1 %v3398_v6 }
 0x1a4   : > { %5584 = vst [vmem:[#allocation37_spill] sm:$0xff] %v4610_v28  ;;  %v1779_v7 = vadd.f32 %v4606_v24, %v1778_v20  ;;  %v4637_v20 = vpack.c.b16 %v1093_v57, %v1092_v36  ;;  %v771_v36 = vsel %vm768_vm2, %v763_v32, %v764_v41  ;;  %v3397_v57 = vld [vmem:[#allocation7 + $0x100] sm:$0xff]  ;;  %v777_v6 = vsel %vm768_vm2, %v757_v5, %v5590_v15 }
 0x1a5   : > { %v855_v16 = vpack.c.bf16 %v777_v6, %v777_v6  ;;  %v5625_v28 = vld [vmem:[#allocation31_spill] sm:$0xff] }
 0x1a6   : > { %1817 = vmatmul.bf16.gmra.mxu1 %v4614_v47  ;;  %2079 = vmatmul.bf16.gmra.mxu0 %v4614_v47  ;;  %v4624_v43 = vadd.f32 %v4471_v12, %v1779_v7  ;;  %v821_v12 = vsel %vm589_vm3, %v780_v29, 0.0  ;;  %5587 = vst [vmem:[#allocation40_spill] sm:$0xff] %v4637_v20 }
 0x1a7   : > { %v852_v7 = vpack.c.bf16 %v821_v12, %v821_v12  ;;  %v4646_v34 = vpop.f32.mrf.mxu2  ;;  %v860_v12 = vpack.c.bf16 %v829_v50, %v829_v50  ;;  %2127 = vmatpush.bf16.msrb.mxu1 %v3397_v57  ;;  %v3388_v57 = vld [vmem:[#allocation7 + $0xb8] sm:$0xff] }
 0x1a8   : > { %1942 = vmatpush.bf16.msrb.mxu3 %v3388_v57 }
 0x1a9   : > { %v1086_v29 = vunpack.c.l.b16 %v852_v7  ;;  %v1094_v7 = vunpack.c.l.b16 %v860_v12  ;;  %v1089_v12 = vunpack.c.l.b16 %v855_v16 }
 0x1ab   : > { %v1780_v52 = vpop.f32.mrf.mxu1  ;;  %v4631_v0 = vpop.f32.mrf.mxu0  ;;  %v4656_v11 = vpack.c.b16 %v1087_v53, %v1086_v29  ;;  %v765_v29 = vrot.slane %v4201_v54, 7 }
 0x1ac   : > { %5586 = vst [vmem:[#allocation39_spill] sm:$0xff] %v4631_v0  ;;  %v1781_v14 = vadd.f32 %v4606_v24, %v1780_v52  ;;  %2222 = vmatmul.bf16.gmra.mxu2 %v4114_v40 }
 0x1ad   : > { %5589 = vst [vmem:[#allocation42_spill] sm:$0xff] %v4656_v11  ;;  %v770_v54 = vsel %vm768_vm2, %v764_v41, %v765_v29 }
 0x1ae   : > { %v4641_v23 = vadd.f32 %v4493_v46, %v1781_v14  ;;  %v861_v14 = vpack.c.bf16 %v771_v36, %v771_v36 }
 0x1af   : > { %1837 = vmatmul.bf16.gmra.mxu3 %v4637_v20  ;;  %v4669_v53 = vpop.f32.mrf.mxu2 }
 0x1b0   : > { %v1095_v30 = vunpack.c.l.b16 %v861_v14 }
 0x1b3   : > { %v1783_v49 = vpop.f32.mrf.mxu1  ;;  %v4652_v46 = vpop.f32.mrf.mxu0 }
 0x1b4   : > { %5588 = vst [vmem:[#allocation41_spill] sm:$0xff] %v4652_v46  ;;  %v1784_v52 = vadd.f32 %v4606_v24, %v1783_v49 }
 0x1b6   : > { %1822 = vmatmul.bf16.gmra.mxu1 %v4656_v11  ;;  %2084 = vmatmul.bf16.gmra.mxu0 %v4656_v11  ;;  %v4661_v32 = vadd.f32 %v4510_v2, %v1784_v52  ;;  %v823_v2 = vsel %vm589_vm3, %v778_v31, 0.0  ;;  %v4678_v52 = vpack.c.b16 %v1095_v30, %v1094_v7  ;;  %v5593_v31 = vrot.slane %v4299_v17, 7 }
 0x1b7   : > { %v854_v13 = vpack.c.bf16 %v823_v2, %v823_v2  ;;  %v831_v7 = vsel %vm589_vm3, %v770_v54, 0.0  ;;  %v1889_v6 = vpop.f32.mrf.mxu2 }
 0x1b8   : > { %5592 = vst [vmem:[#allocation44_spill] sm:$0xff] %v4678_v52  ;;  %v769_v15 = vsel %vm768_vm2, %v765_v29, %v5593_v31  ;;  %v862_v41 = vpack.c.bf16 %v831_v7, %v831_v7  ;;  %v3387_v29 = vld [vmem:[#allocation7 + $0xb0] sm:$0xff] }
 0x1b9   : > { %v1088_v14 = vunpack.c.l.b16 %v854_v13  ;;  %1943 = vmatpush.bf16.msrb.mxu3 %v3387_v29 }
 0x1ba   : > { %v1096_v4 = vunpack.c.l.b16 %v862_v41  ;;  %v3385_v41 = vld [vmem:[#allocation7 + $0xa0] sm:$0xff] }
 0x1bb   : > { %v1785_v36 = vpop.f32.mrf.mxu1  ;;  %v4672_v50 = vpop.f32.mrf.mxu0  ;;  %v4695_v2 = vpack.c.b16 %v1089_v12, %v1088_v14 }
 0x1bc   : > { %5591 = vst [vmem:[#allocation43_spill] sm:$0xff] %v4672_v50  ;;  %v1786_v49 = vadd.f32 %v4606_v24, %v1785_v36  ;;  %2227 = vmatmul.bf16.gmra.mxu2 %v4151_v10 }
 0x1bd   : > { %5595 = vst [vmem:[#allocation46_spill] sm:$0xff] %v4695_v2 }
 0x1be   : > { %v4681_v5 = vadd.f32 %v4534_v3, %v1786_v49  ;;  %v863_v49 = vpack.c.bf16 %v769_v15, %v769_v15 }
 0x1bf   : > { %1842 = vmatmul.bf16.gmra.mxu3 %v4678_v52  ;;  %v1892_v14 = vpop.f32.mrf.mxu2 }
 0x1c0   : > { %v1097_v16 = vunpack.c.l.b16 %v863_v49 }
 0x1c2   : > { %v4706_v12 = vpack.c.b16 %v1097_v16, %v1096_v4 }
 0x1c3   : > { %v1788_v30 = vpop.f32.mrf.mxu1  ;;  %v4692_v3 = vpop.f32.mrf.mxu0 }
 0x1c4   : > { %5594 = vst [vmem:[#allocation45_spill] sm:$0xff] %v4692_v3  ;;  %v1789_v36 = vadd.f32 %v4606_v24, %v1788_v30 }
 0x1c5   : > { %5597 = vst [vmem:[#allocation48_spill] sm:$0xff] %v4706_v12 }
 0x1c6   : > { %1827 = vmatmul.bf16.gmra.mxu1 %v4695_v2  ;;  %2089 = vmatmul.bf16.gmra.mxu0 %v4695_v2  ;;  %v4700_v17 = vadd.f32 %v4559_v1, %v1789_v36  ;;  %v3386_v1 = vld [vmem:[#allocation7 + $0xa8] sm:$0xff] }
 0x1c7   : > { %1944 = vmatpush.bf16.msrb.mxu3 %v3386_v1  ;;  %v1894_v49 = vpop.f32.mrf.mxu2  ;;  %v5613_v2 = vld [vmem:[#allocation24_spill] sm:$0xff] }
 0x1cb   : > { %v1790_v13 = vpop.f32.mrf.mxu1  ;;  %v4702_v54 = vpop.f32.mrf.mxu0  ;;  %1945 = vmatpush.bf16.msrb.mxu3 %v3385_v41 }
 0x1cc   : > { %5596 = vst [vmem:[#allocation47_spill] sm:$0xff] %v4702_v54  ;;  %v1791_v57 = vadd.f32 %v4606_v24, %v1790_v13  ;;  %2232 = vmatmul.bf16.gmra.mxu2 %v4236_v59  ;;  %v3384_v13 = vld [vmem:[#allocation7 + $0x98] sm:$0xff] }
 0x1ce   : > { %v4709_v31 = vadd.f32 %v4591_v58, %v1791_v57 }
 0x1cf   : > { %1847 = vmatmul.bf16.gmra.mxu3 %v4706_v12 }
 0x1d0   : > { %1946 = vmatpush.bf16.msrb.mxu3 %v3384_v13 }
 0x1d3   : > { %v1793_v15 = vpop.f32.mrf.mxu1  ;;  %v4712_v7 = vpop.f32.mrf.mxu0 }
 0x1d4   : > { %5598 = vst [vmem:[#allocation49_spill] sm:$0xff] %v4712_v7  ;;  %v1794_v30 = vadd.f32 %v4606_v24, %v1793_v15 }
 0x1d6   : > { %2094 = vmatmul.bf16.gmra.mxu0 %v4595_v26  ;;  %2128 = vmatmul.bf16.vlgmr.msrb.gmra.mxu1 %v4051_v25  ;;  %v4718_v36 = vadd.f32 %v4619_v62, %v1794_v30  ;;  %v1897_v25 = vpop.f32.mrf.mxu2  ;;  %v3383_v30 = vld [vmem:[#allocation7 + $0x90] sm:$0xff] }
 0x1d7   : > { %1947 = vmatpush.bf16.msrb.mxu3 %v3383_v30 }
 0x1db   : > { %v1795_v58 = vpop.f32.mrf.mxu1  ;;  %v4720_v29 = vpop.f32.mrf.mxu0 }
 0x1dc   : > { %5599 = vst [vmem:[#allocation50_spill] sm:$0xff] %v4720_v29  ;;  %v1796_v4 = vadd.f32 %v4606_v24, %v1795_v58  ;;  %2237 = vmatmul.bf16.gmra.mxu2 %v4306_v21 }
 0x1de   : > { %v4725_v16 = vadd.f32 %v4646_v34, %v1796_v4  ;;  %v3428_v34 = vld [vmem:[#allocation7 + $0x1f8] sm:$0xff]  ;;  %v1899_v4 = vpop.f32.mrf.mxu2 }
 0x1df   : > { %1921 = vmatmul.bf16.vlgmr.msra.gmra.mxu3 %v4587_v35  ;;  %2387 = vmatpush.bf16.msra.mxu0 %v3428_v34 }
 0x1e3   : > { %v1798_v62 = vpop.f32.mrf.mxu1  ;;  %v4728_v57 = vpop.f32.mrf.mxu0 }
 0x1e4   : > { %5600 = vst [vmem:[#allocation51_spill] sm:$0xff] %v4728_v57  ;;  %v1799_v1 = vadd.f32 %v4606_v24, %v1798_v62  ;;  %v3427_v62 = vld [vmem:[#allocation7 + $0x1f0] sm:$0xff] }
 0x1e5   : > { %2388 = vmatpush.bf16.msra.mxu0 %v3427_v62 }
 0x1e6   : > { %2099 = vmatmul.bf16.gmra.mxu0 %v4637_v20  ;;  %2133 = vmatmul.bf16.gmra.mxu1 %v4086_v8  ;;  %v4734_v15 = vadd.f32 %v4669_v53, %v1799_v1  ;;  %v3382_v53 = vld [vmem:[#allocation7 + $0x88] sm:$0xff]  ;;  %v1902_v20 = vpop.f32.mrf.mxu2 }
 0x1e7   : > { %v3426_v1 = vld [vmem:[#allocation7 + $0x1e8] sm:$0xff]  ;;  %1948 = vmatpush.bf16.msrb.mxu3 %v3382_v53 }
 0x1e9   : > { %2389 = vmatpush.bf16.msra.mxu0 %v3426_v1  ;;  %v3423_v1 = vld [vmem:[#allocation7 + $0x1d0] sm:$0xff] }
 0x1eb   : > { %v1800_v41 = vpop.f32.mrf.mxu1  ;;  %v4736_v58 = vpop.f32.mrf.mxu0 }
 0x1ec   : > { %5601 = vst [vmem:[#allocation52_spill] sm:$0xff] %v4736_v58  ;;  %v1801_v13 = vadd.f32 %v4606_v24, %v1800_v41  ;;  %2242 = vmatmul.bf16.gmra.mxu2 %v4370_v18  ;;  %v3425_v58 = vld [vmem:[#allocation7 + $0x1e0] sm:$0xff] }
 0x1ed   : > { %2390 = vmatpush.bf16.msra.mxu0 %v3425_v58 }
 0x1ee   : > { %v4740_v57 = vadd.f32 %v1889_v6, %v1801_v13  ;;  %v3381_v6 = vld [vmem:[#allocation7 + $0x80] sm:$0xff]  ;;  %v3424_v13 = vld [vmem:[#allocation7 + $0x1d8] sm:$0xff]  ;;  %v1904_v58 = vpop.f32.mrf.mxu2 }
 0x1ef   : > { %1926 = vmatmul.bf16.gmra.mxu3 %v4224_v19 }
 0x1f0   : > { %1949 = vmatpush.bf16.msrb.mxu3 %v3381_v6 }
 0x1f1   : > { %2391 = vmatpush.bf16.msra.mxu0 %v3424_v13  ;;  %v3421_v13 = vld [vmem:[#allocation7 + $0x1c0] sm:$0xff] }
 0x1f3   : > { %v1803_v30 = vpop.f32.mrf.mxu1  ;;  %v4744_v29 = vpop.f32.mrf.mxu0 }
 0x1f4   : > { %v1804_v34 = vadd.f32 %v4606_v24, %v1803_v30  ;;  %5602 = vst [vmem:[#allocation53_spill] sm:$0xff] %v4744_v29 }
 0x1f5   : > { %2392 = vmatpush.bf16.msra.mxu0 %v3423_v1 }
 0x1f6   : > { %2104 = vmatmul.bf16.gmra.mxu0 %v4678_v52  ;;  %2138 = vmatmul.bf16.gmra.mxu1 %v4119_v45  ;;  %v4748_v41 = vadd.f32 %v1892_v14, %v1804_v34  ;;  %v3420_v14 = vld [vmem:[#allocation7 + $0x1b8] sm:$0xff]  ;;  %v3422_v34 = vld [vmem:[#allocation7 + $0x1c8] sm:$0xff]  ;;  %v1907_v1 = vpop.f32.mrf.mxu2 }
 0x1f7   : > { %2298 = vmatpush.bf16.msra.mxu3 %v3420_v14 }
 0x1f9   : > { %2393 = vmatpush.bf16.msra.mxu0 %v3422_v34 }
 0x1fb   : > { %v1805_v62 = vpop.f32.mrf.mxu1  ;;  %v4752_v30 = vpop.f32.mrf.mxu0 }
 0x1fc   : > { %v1806_v53 = vadd.f32 %v4606_v24, %v1805_v62  ;;  %2247 = vmatmul.bf16.gmra.mxu2 %v4411_v38  ;;  %5603 = vst [vmem:[#allocation54_spill] sm:$0xff] %v4752_v30 }
 0x1fd   : > { %2394 = vmatpush.bf16.msra.mxu0 %v3421_v13 }
 0x1fe   : > { %v4754_v29 = vadd.f32 %v1894_v49, %v1806_v53  ;;  %v3436_v49 = vld [vmem:[#allocation7 + $0x238] sm:$0xff] }
 0x1ff   : > { %1931 = vmatmul.bf16.gmra.mxu3 %v4267_v39  ;;  %2476 = vmatpush.bf16.msra.mxu1 %v3436_v49 }
 0x203   : > { %v1808_v52 = vpop.f32.mrf.mxu1  ;;  %v4762_v53 = vpop.f32.mrf.mxu0 }
 0x204   : > { %v1809_v6 = vadd.f32 %v4606_v24, %v1808_v52  ;;  %5604 = vst [vmem:[#allocation55_spill] sm:$0xff] %v4762_v53 }
 0x206   : > { %2109 = vmatmul.bf16.gmra.mxu0 %v4706_v12  ;;  %2143 = vmatmul.bf16.gmra.mxu1 %v4165_v22  ;;  %v4760_v62 = vadd.f32 %v1897_v25, %v1809_v6  ;;  %v1909_v25 = vpop.f32.mrf.mxu2 }
 0x20b   : > { %v1810_v30 = vpop.f32.mrf.mxu1  ;;  %v4769_v52 = vpop.f32.mrf.mxu0 }
 0x20c   : > { %v1811_v14 = vadd.f32 %v4606_v24, %v1810_v30  ;;  %2252 = vmatmul.bf16.gmra.mxu2 %v4454_v33  ;;  %5605 = vst [vmem:[#allocation56_spill] sm:$0xff] %v4769_v52  ;;  %v3419_v52 = vld [vmem:[#allocation7 + $0x1b0] sm:$0xff] }
 0x20d   : > { %2299 = vmatpush.bf16.msra.mxu3 %v3419_v52 }
 0x20e   : > { %v4766_v34 = vadd.f32 %v1899_v4, %v1811_v14  ;;  %v1912_v14 = vpop.f32.mrf.mxu2 }
 0x20f   : > { %1936 = vmatmul.bf16.gmra.mxu3 %v4340_v55 }
 0x213   : > { %v1813_v12 = vpop.f32.mrf.mxu1  ;;  %v4776_v30 = vpop.f32.mrf.mxu0 }
 0x214   : > { %v1814_v6 = vadd.f32 %v4606_v24, %v1813_v12  ;;  %5606 = vst [vmem:[#allocation57_spill] sm:$0xff] %v4776_v30  ;;  %v3435_v30 = vld [vmem:[#allocation7 + $0x230] sm:$0xff] }
 0x215   : > { %2477 = vmatpush.bf16.msra.mxu1 %v3435_v30  ;;  %v5609_v30 = vld [vmem:[#allocation22_spill] sm:$0xff] }
 0x216   : > { %2114 = vmatmul.bf16.gmra.mxu0 %v4363_v56  ;;  %2148 = vmatmul.bf16.gmra.mxu1 %v4252_v9  ;;  %v4774_v13 = vadd.f32 %v1902_v20, %v1814_v6 }
 0x21b   : > { %v1815_v49 = vpop.f32.mrf.mxu1  ;;  %v4786_v6 = vpop.f32.mrf.mxu0 }
 0x21c   : > { %v1816_v4 = vadd.f32 %v4606_v24, %v1815_v49  ;;  %2257 = vmatmul.bf16.gmra.mxu2 %v4491_v42  ;;  %5607 = vst [vmem:[#allocation58_spill] sm:$0xff] %v4786_v6 }
 0x21e   : > { %v4780_v53 = vadd.f32 %v1904_v58, %v1816_v4  ;;  %v1914_v58 = vpop.f32.mrf.mxu2 }
 0x21f   : > { %1950 = vmatmul.bf16.vlgmr.msrb.gmra.mxu3 %v4013_v51 }
 0x222   : > { %v4783_v12 = vpop.f32.mrf.mxu3 }
 0x223   : > { %v1818_v56 = vpop.f32.mrf.mxu1 }
 0x224   : > { %v1819_v20 = vadd.f32 %v4606_v24, %v1818_v56  ;;  %v4799_v56 = vpop.f32.mrf.mxu0 }
 0x225   : > { %5608 = vst [vmem:[#allocation59_spill] sm:$0xff] %v4799_v56 }
 0x226   : > { %2153 = vmatmul.bf16.gmra.mxu1 %v4319_v48  ;;  %2395 = vmatmul.bf16.vlgmr.msra.gmra.mxu0 %v4086_v8  ;;  %v4790_v49 = vadd.f32 %v1907_v1, %v1819_v20  ;;  %v1917_v6 = vpop.f32.mrf.mxu2 }
 0x22a   : > { %v4792_v4 = vpop.f32.mrf.mxu3 }
 0x22b   : > { %v1820_v7 = vpop.f32.mrf.mxu1  ;;  %v1836_v27 = vadd.f32 %v4606_v24, %v4792_v4 }
 0x22c   : > { %v1821_v52 = vadd.f32 %v4606_v24, %v1820_v7  ;;  %2262 = vmatmul.bf16.gmra.mxu2 %v4530_v63  ;;  %v4808_v7 = vpop.f32.mrf.mxu0 }
 0x22d   : > { %5610 = vst [vmem:[#allocation22_spill] sm:$0xff] %v4808_v7 }
 0x22e   : > { %v4796_v54 = vadd.f32 %v1909_v25, %v1821_v52 }
 0x22f   : > { %1955 = vmatmul.bf16.gmra.mxu3 %v4081_v60  ;;  %v1919_v60 = vpop.f32.mrf.mxu2 }
 0x232   : > { %v4801_v8 = vpop.f32.mrf.mxu3 }
 0x233   : > { %v1823_v1 = vpop.f32.mrf.mxu1 }
 0x234   : > { %v1824_v20 = vadd.f32 %v4606_v24, %v1823_v1  ;;  %v3418_v1 = vld [vmem:[#allocation7 + $0x1a8] sm:$0xff] }
 0x235   : > { %2300 = vmatpush.bf16.msra.mxu3 %v3418_v1 }
 0x236   : > { %2158 = vmatmul.bf16.gmra.mxu1 %v5609_v30  ;;  %2400 = vmatmul.bf16.gmra.mxu0 %v4119_v45  ;;  %v4806_v26 = vadd.f32 %v1912_v14, %v1824_v20  ;;  %v4819_v14 = vpop.f32.mrf.mxu0 }
 0x237   : > { %5611 = vst [vmem:[#allocation60_spill] sm:$0xff] %v4819_v14  ;;  %v4822_v7 = vpop.f32.mrf.mxu2 }
 0x238   : > { %5612 = vst [vmem:[#allocation61_spill] sm:$0xff] %v4822_v7 }
 0x23a   : > { %v4810_v25 = vpop.f32.mrf.mxu3 }
 0x23b   : > { %v1825_v52 = vpop.f32.mrf.mxu1 }
 0x23c   : > { %v1826_v56 = vadd.f32 %v4606_v24, %v1825_v52  ;;  %2267 = vmatmul.bf16.gmra.mxu2 %v4569_v61 }
 0x23e   : > { %v4814_v3 = vadd.f32 %v1914_v58, %v1826_v56  ;;  %v3434_v58 = vld [vmem:[#allocation7 + $0x228] sm:$0xff]  ;;  %v4832_v14 = vpop.f32.mrf.mxu0 }
 0x23f   : > { %1960 = vmatmul.bf16.gmra.mxu3 %v4114_v40  ;;  %2478 = vmatpush.bf16.msra.mxu1 %v3434_v58  ;;  %5614 = vst [vmem:[#allocation24_spill] sm:$0xff] %v4832_v14  ;;  %v4837_v7 = vpop.f32.mrf.mxu2  ;;  %v3417_v14 = vld [vmem:[#allocation7 + $0x1a0] sm:$0xff] }
 0x240   : > { %5615 = vst [vmem:[#allocation62_spill] sm:$0xff] %v4837_v7  ;;  %v1834_v7 = vadd.f32 %v4606_v24, %v4783_v12  ;;  %2301 = vmatpush.bf16.msra.mxu3 %v3417_v14 }
 0x242   : > { %v4817_v50 = vpop.f32.mrf.mxu3 }
 0x243   : > { %v1828_v45 = vpop.f32.mrf.mxu1 }
 0x244   : > { %v1829_v20 = vadd.f32 %v4606_v24, %v1828_v45 }
 0x246   : > { %2163 = vmatmul.bf16.gmra.mxu1 %v5613_v2  ;;  %2405 = vmatmul.bf16.gmra.mxu0 %v4165_v22  ;;  %v4826_v52 = vadd.f32 %v1917_v6, %v1829_v20  ;;  %v5617_v20 = vld [vmem:[#allocation29_spill] sm:$0xff]  ;;  %v4845_v58 = vpop.f32.mrf.mxu0 }
 0x247   : > { %5618 = vst [vmem:[#allocation29_spill] sm:$0xff] %v4845_v58 }
 0x24a   : > { %v4828_v56 = vpop.f32.mrf.mxu3 }
 0x24b   : > { %v1830_v1 = vpop.f32.mrf.mxu1 }
 0x24c   : > { %v1831_v46 = vadd.f32 %v4606_v24, %v1830_v1  ;;  %2272 = vmatmul.bf16.gmra.mxu2 %v4597_v37  ;;  %v4847_v1 = vpop.f32.mrf.mxu2 }
 0x24d   : > { %5619 = vst [vmem:[#allocation64_spill] sm:$0xff] %v4847_v1 }
 0x24e   : > { %v4834_v45 = vadd.f32 %v1919_v60, %v1831_v46  ;;  %v5621_v60 = vld [vmem:[#allocation15_spill] sm:$0xff] }
 0x24f   : > { %1965 = vmatmul.bf16.gmra.mxu3 %v4151_v10 }
 0x252   : > { %v4839_v22 = vpop.f32.mrf.mxu3 }
 0x253   : > { %v4841_v6 = vpop.f32.mrf.mxu1 }
 0x254   : > { %5616 = vst [vmem:[#allocation63_spill] sm:$0xff] %v4841_v6  ;;  %v4857_v6 = vpop.f32.mrf.mxu0  ;;  %v4863_v1 = vpop.f32.mrf.mxu2 }
 0x255   : > { %5622 = vst [vmem:[#allocation15_spill] sm:$0xff] %v4857_v6 }
 0x256   : > { %2168 = vmatmul.bf16.gmra.mxu1 %v5617_v20  ;;  %2410 = vmatmul.bf16.gmra.mxu0 %v4252_v9  ;;  %5624 = vst [vmem:[#allocation67_spill] sm:$0xff] %v4863_v1 }
 0x25a   : > { %v4849_v0 = vpop.f32.mrf.mxu3 }
 0x25b   : > { %v4851_v46 = vpop.f32.mrf.mxu1 }
 0x25c   : > { %5620 = vst [vmem:[#allocation65_spill] sm:$0xff] %v4851_v46  ;;  %2277 = vmatmul.bf16.gmra.mxu2 %v5621_v60  ;;  %v3433_v46 = vld [vmem:[#allocation7 + $0x220] sm:$0xff] }
 0x25d   : > { %2479 = vmatpush.bf16.msra.mxu1 %v3433_v46  ;;  %v5632_v46 = vld [vmem:[#allocation33_spill] sm:$0xff] }
 0x25f   : > { %1970 = vmatmul.bf16.gmra.mxu3 %v4236_v59 }
 0x262   : > { %v1922_v9 = vpop.f32.mrf.mxu3 }
 0x263   : > { %v4859_v11 = vadd.f32 %v1922_v9, %v1834_v7  ;;  %v4861_v58 = vpop.f32.mrf.mxu1  ;;  %v4873_v7 = vpop.f32.mrf.mxu0  ;;  %v5628_v9 = vld [vmem:[#allocation18_spill] sm:$0xff] }
 0x264   : > { %5623 = vst [vmem:[#allocation66_spill] sm:$0xff] %v4861_v58  ;;  %v4876_v58 = vpop.f32.mrf.mxu2 }
 0x265   : > { %5627 = vst [vmem:[#allocation68_spill] sm:$0xff] %v4873_v7  ;;  %v1841_v7 = vadd.f32 %v4606_v24, %v4810_v25 }
 0x266   : > { %2173 = vmatmul.bf16.gmra.mxu1 %v5625_v28  ;;  %2415 = vmatmul.bf16.gmra.mxu0 %v4319_v48  ;;  %5629 = vst [vmem:[#allocation18_spill] sm:$0xff] %v4876_v58  ;;  %v1839_v48 = vadd.f32 %v4606_v24, %v4801_v8 }
 0x26a   : > { %v1924_v12 = vpop.f32.mrf.mxu3 }
 0x26b   : > { %v4869_v14 = vadd.f32 %v1924_v12, %v1836_v27  ;;  %v4871_v6 = vpop.f32.mrf.mxu1  ;;  %v4885_v27 = vpop.f32.mrf.mxu0 }
 0x26c   : > { %5626 = vst [vmem:[#allocation31_spill] sm:$0xff] %v4871_v6  ;;  %2282 = vmatmul.bf16.gmra.mxu2 %v5628_v9  ;;  %v4889_v12 = vpop.f32.mrf.mxu2 }
 0x26d   : > { %5631 = vst [vmem:[#allocation70_spill] sm:$0xff] %v4885_v27 }
 0x26e   : > { %5633 = vst [vmem:[#allocation33_spill] sm:$0xff] %v4889_v12 }
 0x26f   : > { %1975 = vmatmul.bf16.gmra.mxu3 %v4306_v21 }
 0x272   : > { %v1927_v1 = vpop.f32.mrf.mxu3 }
 0x273   : > { %v4881_v47 = vadd.f32 %v1927_v1, %v1839_v48  ;;  %v4883_v4 = vpop.f32.mrf.mxu1  ;;  %v5635_v1 = vld [vmem:[#allocation21_spill] sm:$0xff]  ;;  %v3416_v48 = vld [vmem:[#allocation7 + $0x198] sm:$0xff]  ;;  %v4899_v27 = vpop.f32.mrf.mxu0 }
 0x274   : > { %5630 = vst [vmem:[#allocation69_spill] sm:$0xff] %v4883_v4  ;;  %2302 = vmatpush.bf16.msra.mxu3 %v3416_v48  ;;  %v4903_v12 = vpop.f32.mrf.mxu2 }
 0x275   : > { %5636 = vst [vmem:[#allocation21_spill] sm:$0xff] %v4899_v27 }
 0x276   : > { %2178 = vmatmul.bf16.gmra.mxu1 %v5632_v46  ;;  %2420 = vmatmul.bf16.gmra.mxu0 %v5609_v30  ;;  %v1844_v30 = vadd.f32 %v4606_v24, %v4817_v50  ;;  %5637 = vst [vmem:[#allocation72_spill] sm:$0xff] %v4903_v12 }
 0x27a   : > { %v1929_v58 = vpop.f32.mrf.mxu3 }
 0x27b   : > { %v4893_v6 = vadd.f32 %v1929_v58, %v1841_v7  ;;  %v4895_v8 = vpop.f32.mrf.mxu1  ;;  %v3432_v7 = vld [vmem:[#allocation7 + $0x218] sm:$0xff]  ;;  %v4913_v27 = vpop.f32.mrf.mxu0 }
 0x27c   : > { %5634 = vst [vmem:[#allocation71_spill] sm:$0xff] %v4895_v8  ;;  %2287 = vmatmul.bf16.gmra.mxu2 %v5635_v1  ;;  %v1846_v8 = vadd.f32 %v4606_v24, %v4828_v56  ;;  %2480 = vmatpush.bf16.msra.mxu1 %v3432_v7 }
 0x27d   : > { %5640 = vst [vmem:[#allocation75_spill] sm:$0xff] %v4913_v27 }
 0x27f   : > { %1980 = vmatmul.bf16.gmra.mxu3 %v4370_v18 }
 0x282   : > { %v1932_v4 = vpop.f32.mrf.mxu3 }
 0x283   : > { %v4905_v25 = vadd.f32 %v1932_v4, %v1844_v30  ;;  %v4907_v58 = vpop.f32.mrf.mxu1  ;;  %v4919_v4 = vpop.f32.mrf.mxu2  ;;  %v5643_v30 = vld [vmem:[#allocation17_spill] sm:$0xff] }
 0x284   : > { %5639 = vst [vmem:[#allocation74_spill] sm:$0xff] %v4907_v58  ;;  %v4929_v7 = vpop.f32.mrf.mxu0 }
 0x285   : > { %5638 = vst [vmem:[#allocation73_spill] sm:$0xff] %v4905_v25 }
 0x286   : > { %2183 = vmatmul.bf16.gmra.mxu1 %v4587_v35  ;;  %2425 = vmatmul.bf16.gmra.mxu0 %v5613_v2  ;;  %5642 = vst [vmem:[#allocation77_spill] sm:$0xff] %v4919_v4  ;;  %v1849_v2 = vadd.f32 %v4606_v24, %v4839_v22 }
 0x287   : > { %5645 = vst [vmem:[#allocation79_spill] sm:$0xff] %v4929_v7  ;;  %v3415_v7 = vld [vmem:[#allocation7 + $0x190] sm:$0xff] }
 0x288   : > { %2303 = vmatpush.bf16.msra.mxu3 %v3415_v7 }
 0x28a   : > { %v1934_v50 = vpop.f32.mrf.mxu3 }
 0x28b   : > { %v4915_v48 = vadd.f32 %v1934_v50, %v1846_v8  ;;  %v4917_v12 = vpop.f32.mrf.mxu1  ;;  %v3444_v8 = vld [vmem:[#allocation8 + $0x38] sm:$0xff]  ;;  %v1851_v50 = vadd.f32 %v4606_v24, %v4849_v0 }
 0x28c   : > { %5641 = vst [vmem:[#allocation76_spill] sm:$0xff] %v4917_v12  ;;  %2292 = vmatmul.bf16.gmra.mxu2 %v5643_v30  ;;  %v5648_v12 = vld [vmem:[#allocation25_spill] sm:$0xff] }
 0x28d   : > { %2681 = vmatpush.bf16.msra.mxu2 %v3444_v8 }
 0x28f   : > { %1985 = vmatmul.bf16.gmra.mxu3 %v4411_v38 }
 0x292   : > { %v1937_v58 = vpop.f32.mrf.mxu3 }
 0x293   : > { %v4925_v25 = vadd.f32 %v1937_v58, %v1849_v2  ;;  %v4927_v56 = vpop.f32.mrf.mxu1  ;;  %v5646_v58 = vld [vmem:[#allocation34_spill] sm:$0xff] }
 0x294   : > { %5644 = vst [vmem:[#allocation78_spill] sm:$0xff] %v4927_v56  ;;  %v1774_v2 = vadd.f32 %v4606_v24, %v5646_v58  ;;  %v4941_v56 = vpop.f32.mrf.mxu0 }
 0x295   : > { %5647 = vst [vmem:[#allocation34_spill] sm:$0xff] %v4941_v56 }
 0x296   : > { %2188 = vmatmul.bf16.gmra.mxu1 %v4224_v19  ;;  %2430 = vmatmul.bf16.gmra.mxu0 %v5617_v20  ;;  %v1863_v30 = vadd.f32 %v5648_v12, %v1774_v2  ;;  %v3430_v12 = vld [vmem:[#allocation7 + $0x208] sm:$0xff] }
 0x29a   : > { %v1939_v27 = vpop.f32.mrf.mxu3 }
 0x29b   : > { %v4935_v4 = vadd.f32 %v1939_v27, %v1851_v50  ;;  %v4937_v22 = vpop.f32.mrf.mxu1  ;;  %v3431_v27 = vld [vmem:[#allocation7 + $0x210] sm:$0xff] }
 0x29c   : > { %v4951_v50 = vpop.f32.mrf.mxu0  ;;  %2481 = vmatpush.bf16.msra.mxu1 %v3431_v27 }
 0x29d   : > { %5650 = vst [vmem:[#allocation80_spill] sm:$0xff] %v4951_v50 }
 0x29f   : > { %1990 = vmatmul.bf16.gmra.mxu3 %v4454_v33 }
 0x2a0   : > { %2482 = vmatpush.bf16.msra.mxu1 %v3430_v12 }
 0x2a2   : > { %v1951_v20 = vpop.f32.mrf.mxu3 }
 0x2a3   : > { %v4945_v8 = vadd.f32 %v1951_v20, %v1863_v30  ;;  %v4947_v0 = vpop.f32.mrf.mxu1 }
 0x2a4   : > { %5649 = vst [vmem:[#allocation25_spill] sm:$0xff] %v4947_v0  ;;  %v4958_v30 = vpop.f32.mrf.mxu0  ;;  %v3443_v0 = vld [vmem:[#allocation8 + $0x30] sm:$0xff] }
 0x2a5   : > { %5652 = vst [vmem:[#allocation82_spill] sm:$0xff] %v4958_v30  ;;  %2682 = vmatpush.bf16.msra.mxu2 %v3443_v0  ;;  %v5656_v0 = vld [vmem:[#allocation26_spill] sm:$0xff] }
 0x2a6   : > { %2193 = vmatmul.bf16.gmra.mxu1 %v4267_v39  ;;  %2435 = vmatmul.bf16.gmra.mxu0 %v5625_v28  ;;  %v3429_v28 = vld [vmem:[#allocation7 + $0x200] sm:$0xff] }
 0x2a7   : > { %2483 = vmatpush.bf16.msra.mxu1 %v3429_v28 }
 0x2aa   : > { %v4953_v58 = vpop.f32.mrf.mxu3 }
 0x2ab   : > { %v4955_v56 = vpop.f32.mrf.mxu1 }
 0x2ac   : > { %5651 = vst [vmem:[#allocation81_spill] sm:$0xff] %v4955_v56  ;;  %v4972_v30 = vpop.f32.mrf.mxu0 }
 0x2ad   : > { %5654 = vst [vmem:[#allocation84_spill] sm:$0xff] %v4972_v30 }
 0x2af   : > { %1995 = vmatmul.bf16.gmra.mxu3 %v4491_v42 }
 0x2b2   : > { %v1956_v7 = vpop.f32.mrf.mxu3 }
 0x2b3   : > { %v4961_v2 = vadd.f32 %v1956_v7, %v4624_v43  ;;  %v4963_v20 = vpop.f32.mrf.mxu1  ;;  %v3414_v43 = vld [vmem:[#allocation7 + $0x188] sm:$0xff] }
 0x2b4   : > { %5653 = vst [vmem:[#allocation83_spill] sm:$0xff] %v4963_v20  ;;  %2304 = vmatpush.bf16.msra.mxu3 %v3414_v43 }
 0x2b6   : > { %2198 = vmatmul.bf16.gmra.mxu1 %v4340_v55  ;;  %2440 = vmatmul.bf16.gmra.mxu0 %v5632_v46  ;;  %v4980_v46 = vpop.f32.mrf.mxu0 }
 0x2b7   : > { %5655 = vst [vmem:[#allocation85_spill] sm:$0xff] %v4980_v46  ;;  %v3442_v46 = vld [vmem:[#allocation8 + $0x28] sm:$0xff] }
 0x2b8   : > { %2683 = vmatpush.bf16.msra.mxu2 %v3442_v46 }
 0x2ba   : > { %v1958_v27 = vpop.f32.mrf.mxu3 }
 0x2bb   : > { %v4968_v50 = vadd.f32 %v1958_v27, %v4641_v23  ;;  %v4970_v12 = vpop.f32.mrf.mxu1 }
 0x2be   : > { %v4990_v43 = vpop.f32.mrf.mxu0 }
 0x2bf   : > { %2000 = vmatmul.bf16.gmra.mxu3 %v4530_v63 }
 0x2c2   : > { %v1961_v7 = vpop.f32.mrf.mxu3 }
 0x2c3   : > { %v4976_v20 = vadd.f32 %v1961_v7, %v4661_v32  ;;  %v4978_v56 = vpop.f32.mrf.mxu1 }
 0x2c6   : > { %2203 = vmatmul.bf16.gmra.mxu1 %v5656_v0  ;;  %2445 = vmatmul.bf16.gmra.mxu0 %v4587_v35  ;;  %v4999_v35 = vpop.f32.mrf.mxu0 }
 0x2ca   : > { %v1963_v23 = vpop.f32.mrf.mxu3 }
 0x2cb   : > { %v4985_v28 = vadd.f32 %v1963_v23, %v4681_v5  ;;  %v4987_v27 = vpop.f32.mrf.mxu1 }
 0x2cc   : > { %5657 = vst [vmem:[#allocation26_spill] sm:$0xff] %v4987_v27 }
 0x2cf   : > { %2005 = vmatmul.bf16.gmra.mxu3 %v4569_v61 }
 0x2d2   : > { %v1966_v32 = vpop.f32.mrf.mxu3 }
 0x2d3   : > { %v4993_v7 = vadd.f32 %v1966_v32, %v4700_v17  ;;  %v4995_v30 = vpop.f32.mrf.mxu1  ;;  %v3413_v17 = vld [vmem:[#allocation7 + $0x180] sm:$0xff] }
 0x2d4   : > { %5658 = vst [vmem:[#allocation86_spill] sm:$0xff] %v4995_v30  ;;  %2305 = vmatpush.bf16.msra.mxu3 %v3413_v17 }
 0x2d6   : > { %2450 = vmatmul.bf16.gmra.mxu0 %v4224_v19  ;;  %2484 = vmatmul.bf16.vlgmr.msra.gmra.mxu1 %v4114_v40  ;;  %v5012_v40 = vpop.f32.mrf.mxu0 }
 0x2da   : > { %v1968_v5 = vpop.f32.mrf.mxu3 }
 0x2db   : > { %v5002_v23 = vadd.f32 %v1968_v5, %v4709_v31  ;;  %v5004_v27 = vpop.f32.mrf.mxu1 }
 0x2dc   : > { %5659 = vst [vmem:[#allocation87_spill] sm:$0xff] %v5004_v27 }
 0x2de   : > { %v5021_v27 = vpop.f32.mrf.mxu0 }
 0x2df   : > { %2010 = vmatmul.bf16.gmra.mxu3 %v4597_v37 }
 0x2e2   : > { %v1971_v32 = vpop.f32.mrf.mxu3 }
 0x2e3   : > { %v5008_v30 = vadd.f32 %v1971_v32, %v4718_v36  ;;  %v5010_v19 = vpop.f32.mrf.mxu1 }
 0x2e4   : > { %5660 = vst [vmem:[#allocation88_spill] sm:$0xff] %v5010_v19  ;;  %v3441_v19 = vld [vmem:[#allocation8 + $0x20] sm:$0xff] }
 0x2e5   : > { %2684 = vmatpush.bf16.msra.mxu2 %v3441_v19 }
 0x2e6   : > { %2455 = vmatmul.bf16.gmra.mxu0 %v4267_v39  ;;  %2489 = vmatmul.bf16.gmra.mxu1 %v4151_v10  ;;  %v5031_v10 = vpop.f32.mrf.mxu0 }
 0x2ea   : > { %v1973_v31 = vpop.f32.mrf.mxu3 }
 0x2eb   : > { %v5017_v46 = vadd.f32 %v1973_v31, %v4725_v16  ;;  %v5019_v5 = vpop.f32.mrf.mxu1 }
 0x2ec   : > { %5661 = vst [vmem:[#allocation89_spill] sm:$0xff] %v5019_v5 }
 0x2ef   : > { %2015 = vmatmul.bf16.gmra.mxu3 %v5621_v60 }
 0x2f2   : > { %v1976_v36 = vpop.f32.mrf.mxu3 }
 0x2f3   : > { %v5025_v17 = vadd.f32 %v1976_v36, %v4734_v15  ;;  %v5027_v32 = vpop.f32.mrf.mxu1  ;;  %v5039_v15 = vpop.f32.mrf.mxu0 }
 0x2f4   : > { %5662 = vst [vmem:[#allocation90_spill] sm:$0xff] %v5027_v32 }
 0x2f6   : > { %2460 = vmatmul.bf16.gmra.mxu0 %v4340_v55  ;;  %2494 = vmatmul.bf16.gmra.mxu1 %v4236_v59 }
 0x2fa   : > { %v1978_v39 = vpop.f32.mrf.mxu3 }
 0x2fb   : > { %v5034_v16 = vadd.f32 %v1978_v39, %v4740_v57  ;;  %v5036_v31 = vpop.f32.mrf.mxu1  ;;  %v5051_v19 = vpop.f32.mrf.mxu0 }
 0x2fc   : > { %5663 = vst [vmem:[#allocation91_spill] sm:$0xff] %v5036_v31 }
 0x2ff   : > { %2020 = vmatmul.bf16.gmra.mxu3 %v5628_v9 }
 0x302   : > { %v1981_v36 = vpop.f32.mrf.mxu3 }
 0x303   : > { %v5042_v32 = vadd.f32 %v1981_v36, %v4748_v41  ;;  %v5044_v55 = vpop.f32.mrf.mxu1  ;;  %v3440_v36 = vld [vmem:[#allocation8 + $0x18] sm:$0xff] }
 0x304   : > { %5664 = vst [vmem:[#allocation92_spill] sm:$0xff] %v5044_v55  ;;  %v5059_v55 = vpop.f32.mrf.mxu0  ;;  %2685 = vmatpush.bf16.msra.mxu2 %v3440_v36 }
 0x306   : > { %2465 = vmatmul.bf16.gmra.mxu0 %v5656_v0  ;;  %2499 = vmatmul.bf16.gmra.mxu1 %v4306_v21 }
 0x30a   : > { %v1983_v59 = vpop.f32.mrf.mxu3 }
 0x30b   : > { %v5049_v57 = vadd.f32 %v1983_v59, %v4754_v29  ;;  %v5054_v39 = vpop.f32.mrf.mxu1  ;;  %v5667_v59 = vld [vmem:[#allocation16_spill] sm:$0xff] }
 0x30c   : > { %5665 = vst [vmem:[#allocation93_spill] sm:$0xff] %v5054_v39 }
 0x30f   : > { %2025 = vmatmul.bf16.gmra.mxu3 %v5635_v1 }
 0x312   : > { %v1986_v31 = vpop.f32.mrf.mxu3 }
 0x313   : > { %v5057_v41 = vadd.f32 %v1986_v31, %v4760_v62  ;;  %v5063_v21 = vpop.f32.mrf.mxu1 }
 0x314   : > { %5666 = vst [vmem:[#allocation94_spill] sm:$0xff] %v5063_v21  ;;  %v5670_v21 = vld [vmem:[#allocation19_spill] sm:$0xff] }
 0x316   : > { %2504 = vmatmul.bf16.gmra.mxu1 %v4370_v18  ;;  %2470 = vmatmul.bf16.gmra.mxu0 %v4013_v51 }
 0x31a   : > { %v1988_v29 = vpop.f32.mrf.mxu3 }
 0x31b   : > { %v5066_v0 = vadd.f32 %v1988_v29, %v4766_v34  ;;  %v5072_v31 = vpop.f32.mrf.mxu1 }
 0x31c   : > { %5668 = vst [vmem:[#allocation16_spill] sm:$0xff] %v5072_v31 }
 0x31f   : > { %2306 = vmatmul.bf16.vlgmr.msra.gmra.mxu3 %v5667_v59  ;;  %v3439_v59 = vld [vmem:[#allocation8 + $0x10] sm:$0xff] }
 0x320   : > { %2686 = vmatpush.bf16.msra.mxu2 %v3439_v59 }
 0x322   : > { %v1991_v39 = vpop.f32.mrf.mxu3 }
 0x323   : > { %v5070_v62 = vadd.f32 %v1991_v39, %v4774_v13  ;;  %v5078_v36 = vpop.f32.mrf.mxu1 }
 0x324   : > { %5669 = vst [vmem:[#allocation95_spill] sm:$0xff] %v5078_v36 }
 0x326   : > { %2509 = vmatmul.bf16.gmra.mxu1 %v4411_v38 }
 0x32a   : > { %v1993_v18 = vpop.f32.mrf.mxu3 }
 0x32b   : > { %v5076_v5 = vadd.f32 %v1993_v18, %v4780_v53  ;;  %v5085_v13 = vpop.f32.mrf.mxu1  ;;  %v5673_v53 = vld [vmem:[#allocation23_spill] sm:$0xff] }
 0x32c   : > { %5671 = vst [vmem:[#allocation19_spill] sm:$0xff] %v5085_v13 }
 0x32f   : > { %2311 = vmatmul.bf16.gmra.mxu3 %v5670_v21 }
 0x332   : > { %v1996_v34 = vpop.f32.mrf.mxu3 }
 0x333   : > { %v5082_v29 = vadd.f32 %v1996_v34, %v4790_v49  ;;  %v5091_v18 = vpop.f32.mrf.mxu1  ;;  %v5097_v49 = vpop.f32.mrf.mxu2 }
 0x334   : > { %5674 = vst [vmem:[#allocation23_spill] sm:$0xff] %v5091_v18 }
 0x336   : > { %2514 = vmatmul.bf16.gmra.mxu1 %v4454_v33 }
 0x33a   : > { %v1998_v39 = vpop.f32.mrf.mxu3 }
 0x33b   : > { %v5088_v38 = vadd.f32 %v1998_v39, %v4796_v54  ;;  %v5102_v59 = vpop.f32.mrf.mxu1  ;;  %v5678_v54 = vld [vmem:[#allocation27_spill] sm:$0xff] }
 0x33c   : > { %5677 = vst [vmem:[#allocation99_spill] sm:$0xff] %v5102_v59  ;;  %v5682_v59 = vld [vmem:[#allocation30_spill] sm:$0xff] }
 0x33d   : > { %5672 = vst [vmem:[#allocation96_spill] sm:$0xff] %v5088_v38  ;;  %v5701_v38 = vld [vmem:[#allocation61_spill] sm:$0xff] }
 0x33f   : > { %2316 = vmatmul.bf16.gmra.mxu3 %v5673_v53  ;;  %v5105_v53 = vpop.f32.mrf.mxu2 }
 0x342   : > { %v2001_v36 = vpop.f32.mrf.mxu3 }
 0x343   : > { %v5094_v21 = vadd.f32 %v2001_v36, %v4806_v26  ;;  %v3438_v26 = vld [vmem:[#allocation8 + $0x8] sm:$0xff]  ;;  %v5110_v36 = vpop.f32.mrf.mxu1 }
 0x344   : > { %5680 = vst [vmem:[#allocation100_spill] sm:$0xff] %v5110_v36  ;;  %2687 = vmatpush.bf16.msra.mxu2 %v3438_v26 }
 0x345   : > { %5675 = vst [vmem:[#allocation97_spill] sm:$0xff] %v5094_v21 }
 0x346   : > { %2519 = vmatmul.bf16.gmra.mxu1 %v4491_v42 }
 0x34a   : > { %v2003_v33 = vpop.f32.mrf.mxu3 }
 0x34b   : > { %v5100_v34 = vadd.f32 %v2003_v33, %v4814_v3  ;;  %v5116_v33 = vpop.f32.mrf.mxu2 }
 0x34d   : > { %5676 = vst [vmem:[#allocation98_spill] sm:$0xff] %v5100_v34 }
 0x34f   : > { %2321 = vmatmul.bf16.gmra.mxu3 %v5678_v54  ;;  %v5119_v54 = vpop.f32.mrf.mxu1 }
 0x350   : > { %5683 = vst [vmem:[#allocation30_spill] sm:$0xff] %v5119_v54 }
 0x352   : > { %v2006_v39 = vpop.f32.mrf.mxu3 }
 0x353   : > { %v5108_v18 = vadd.f32 %v2006_v39, %v4826_v52  ;;  %v5125_v39 = vpop.f32.mrf.mxu2 }
 0x355   : > { %5679 = vst [vmem:[#allocation27_spill] sm:$0xff] %v5108_v18 }
 0x356   : > { %2524 = vmatmul.bf16.gmra.mxu1 %v4530_v63 }
 0x357   : > { %v2485_v63 = vpop.f32.mrf.mxu1 }
 0x35a   : > { %v2008_v42 = vpop.f32.mrf.mxu3 }
 0x35b   : > { %v5114_v3 = vadd.f32 %v2008_v42, %v4834_v45  ;;  %v5686_v45 = vld [vmem:[#allocation32_spill] sm:$0xff]  ;;  %v5131_v42 = vpop.f32.mrf.mxu2 }
 0x35d   : > { %5681 = vst [vmem:[#allocation101_spill] sm:$0xff] %v5114_v3 }
 0x35f   : > { %2326 = vmatmul.bf16.gmra.mxu3 %v5682_v59  ;;  %v2487_v31 = vpop.f32.mrf.mxu1 }
 0x362   : > { %v2011_v13 = vpop.f32.mrf.mxu3 }
 0x363   : > { %v5122_v52 = vadd.f32 %v2011_v13, %v4859_v11  ;;  %v3437_v11 = vld [vmem:[#allocation8] sm:$0xff]  ;;  %v5137_v13 = vpop.f32.mrf.mxu2 }
 0x364   : > { %2688 = vmatpush.bf16.msra.mxu2 %v3437_v11 }
 0x365   : > { %5684 = vst [vmem:[#allocation102_spill] sm:$0xff] %v5122_v52 }
 0x366   : > { %2529 = vmatmul.bf16.gmra.mxu1 %v4569_v61 }
 0x36a   : > { %v2013_v26 = vpop.f32.mrf.mxu3 }
 0x36b   : > { %v5128_v36 = vadd.f32 %v2013_v26, %v4869_v14  ;;  %v5142_v14 = vpop.f32.mrf.mxu1 }
 0x36d   : > { %5685 = vst [vmem:[#allocation103_spill] sm:$0xff] %v5128_v36 }
 0x36f   : > { %2331 = vmatmul.bf16.gmra.mxu3 %v5686_v45  ;;  %v5689_v45 = vld [vmem:[#allocation73_spill] sm:$0xff] }
 0x372   : > { %v2016_v59 = vpop.f32.mrf.mxu3 }
 0x373   : > { %v5134_v54 = vadd.f32 %v2016_v59, %v4881_v47  ;;  %v5148_v47 = vpop.f32.mrf.mxu2 }
 0x375   : > { %5687 = vst [vmem:[#allocation32_spill] sm:$0xff] %v5134_v54 }
 0x376   : > { %2534 = vmatmul.bf16.gmra.mxu1 %v4597_v37  ;;  %v2492_v37 = vpop.f32.mrf.mxu1 }
 0x37a   : > { %v2018_v61 = vpop.f32.mrf.mxu3 }
 0x37b   : > { %v5140_v52 = vadd.f32 %v2018_v61, %v4893_v6  ;;  %v5154_v54 = vpop.f32.mrf.mxu2  ;;  %v5692_v6 = vld [vmem:[#allocation38_spill] sm:$0xff] }
 0x37d   : > { %5688 = vst [vmem:[#allocation104_spill] sm:$0xff] %v5140_v52 }
 0x37e   : > { %v5157_v61 = vpop.f32.mrf.mxu1 }
 0x37f   : > { %2336 = vmatmul.bf16.gmra.mxu3 %v4562_v44 }
 0x382   : > { %v2021_v26 = vpop.f32.mrf.mxu3 }
 0x383   : > { %v5146_v36 = vadd.f32 %v2021_v26, %v5689_v45  ;;  %v5694_v26 = vld [vmem:[#allocation35_spill] sm:$0xff]  ;;  %v5165_v45 = vpop.f32.mrf.mxu2 }
 0x385   : > { %5690 = vst [vmem:[#allocation73_spill] sm:$0xff] %v5146_v36 }
 0x386   : > { %2539 = vmatmul.bf16.gmra.mxu1 %v5621_v60  ;;  %v1776_v60 = vadd.f32 %v4606_v24, %v5694_v26  ;;  %v5173_v18 = vpop.f32.mrf.mxu1  ;;  %v5700_v24 = vld [vmem:[#allocation39_spill] sm:$0xff] }
 0x38a   : > { %v2023_v59 = vpop.f32.mrf.mxu3 }
 0x38b   : > { %v5152_v11 = vadd.f32 %v2023_v59, %v4915_v48  ;;  %v5695_v48 = vld [vmem:[#allocation37_spill] sm:$0xff]  ;;  %v5179_v21 = vpop.f32.mrf.mxu2 }
 0x38c   : > { %v2041_v59 = vadd.f32 %v5695_v48, %v4945_v8 }
 0x38d   : > { %5691 = vst [vmem:[#allocation105_spill] sm:$0xff] %v5152_v11  ;;  %v5696_v11 = vld [vmem:[#allocation28_spill] sm:$0xff] }
 0x38e   : > { %v1865_v3 = vadd.f32 %v5696_v11, %v1776_v60  ;;  %v5702_v11 = vld [vmem:[#allocation65_spill] sm:$0xff] }
 0x38f   : > { %2341 = vmatmul.bf16.gmra.mxu3 %v5692_v6 }
 0x392   : > { %v2026_v44 = vpop.f32.mrf.mxu3 }
 0x393   : > { %v5160_v52 = vadd.f32 %v2026_v44, %v4925_v25  ;;  %v1954_v25 = vadd.f32 %v4953_v58, %v1865_v3  ;;  %v5698_v44 = vld [vmem:[#allocation42_spill] sm:$0xff] }
 0x395   : > { %5693 = vst [vmem:[#allocation38_spill] sm:$0xff] %v5160_v52  ;;  %v2043_v26 = vadd.f32 %v5700_v24, %v1954_v25  ;;  %v5190_v24 = vpop.f32.mrf.mxu2 }
 0x396   : > { %2544 = vmatmul.bf16.gmra.mxu1 %v5628_v9  ;;  %v5699_v9 = vld [vmem:[#allocation63_spill] sm:$0xff] }
 0x397   : > { %v2130_v52 = vadd.f32 %v5699_v9, %v2041_v59  ;;  %v2132_v60 = vadd.f32 %v5702_v11, %v2043_v26  ;;  %v5704_v59 = vld [vmem:[#allocation41_spill] sm:$0xff]  ;;  %v5706_v26 = vld [vmem:[#allocation66_spill] sm:$0xff] }
 0x398   : > { %v2046_v25 = vadd.f32 %v5704_v59, %v4961_v2 }
 0x399   : > { %v2219_v8 = vadd.f32 %v5701_v38, %v2130_v52  ;;  %v5705_v52 = vld [vmem:[#allocation46_spill] sm:$0xff] }
 0x39a   : > { %v2028_v36 = vpop.f32.mrf.mxu3 }
 0x39b   : > { %v5171_v6 = vadd.f32 %v2028_v36, %v4935_v4  ;;  %v5183_v4 = vpop.f32.mrf.mxu1  ;;  %v5703_v36 = vld [vmem:[#allocation62_spill] sm:$0xff] }
 0x39c   : > { %v2221_v3 = vadd.f32 %v5703_v36, %v2132_v60 }
 0x39d   : > { %5697 = vst [vmem:[#allocation35_spill] sm:$0xff] %v5171_v6 }
 0x39f   : > { %2346 = vmatmul.bf16.gmra.mxu3 %v5698_v44 }
 0x3a2   : > { %v2307_v34 = vpop.f32.mrf.mxu3 }
 0x3a3   : > { %v2308_v48 = vadd.f32 %v2307_v34, %v2219_v8  ;;  %v2135_v8 = vadd.f32 %v5706_v26, %v2046_v25  ;;  %v5204_v25 = vpop.f32.mrf.mxu0 }
 0x3a5   : > { %v2397_v58 = vadd.f32 %v4990_v43, %v2308_v48  ;;  %v5707_v43 = vld [vmem:[#allocation43_spill] sm:$0xff] }
 0x3a6   : > { %2549 = vmatmul.bf16.gmra.mxu1 %v5635_v1  ;;  %v5195_v1 = vpop.f32.mrf.mxu1  ;;  %v2048_v48 = vadd.f32 %v5707_v43, %v4968_v50 }
 0x3a7   : > { %v2486_v6 = vadd.f32 %v2485_v63, %v2397_v58  ;;  %v5709_v63 = vld [vmem:[#allocation31_spill] sm:$0xff]  ;;  %v5202_v58 = vpop.f32.mrf.mxu2 }
 0x3a9   : > { %v2565_v11 = vmax.f32 %v2486_v6, 0.0 }
 0x3aa   : > { %v2309_v44 = vpop.f32.mrf.mxu3 }
 0x3ab   : > { %v2310_v9 = vadd.f32 %v2309_v44, %v2221_v3  ;;  %v5708_v3 = vld [vmem:[#allocation64_spill] sm:$0xff] }
 0x3ac   : > { %v2224_v44 = vadd.f32 %v5708_v3, %v2135_v8 }
 0x3ad   : > { %v2399_v38 = vadd.f32 %v4999_v35, %v2310_v9  ;;  %v2137_v35 = vadd.f32 %v5709_v63, %v2048_v48 }
 0x3ae   : > { %v5208_v6 = vpop.f32.mrf.mxu1 }
 0x3af   : > { %v2488_v34 = vadd.f32 %v2487_v31, %v2399_v38  ;;  %2351 = vmatmul.bf16.gmra.mxu3 %v5705_v52  ;;  %v5710_v31 = vld [vmem:[#allocation17_spill] sm:$0xff]  ;;  %v5711_v38 = vld [vmem:[#allocation67_spill] sm:$0xff]  ;;  %v5216_v3 = vpop.f32.mrf.mxu2 }
 0x3b0   : > { %v2226_v50 = vadd.f32 %v5711_v38, %v2137_v35  ;;  %v5712_v52 = vld [vmem:[#allocation45_spill] sm:$0xff]  ;;  %v5220_v35 = vpop.f32.mrf.mxu0 }
 0x3b1   : > { %v2566_v60 = vmax.f32 %v2488_v34, 0.0  ;;  %v2051_v26 = vadd.f32 %v5712_v52, %v4976_v20  ;;  %v5718_v52 = vld [vmem:[#allocation33_spill] sm:$0xff] }
 0x3b2   : > { %v2312_v36 = vpop.f32.mrf.mxu3 }
 0x3b3   : > { %v2597_v2 = vpack.c.bf16 %v2566_v60, %v2565_v11  ;;  %v2313_v59 = vadd.f32 %v2312_v36, %v2224_v44  ;;  %v5713_v60 = vld [vmem:[#allocation36_spill] sm:$0xff]  ;;  %v5714_v36 = vld [vmem:[#allocation69_spill] sm:$0xff] }
 0x3b5   : > { %2689 = vmatmul.bf16.vlgmr.msra.gmra.mxu2 %v2597_v2  ;;  %v2402_v9 = vadd.f32 %v5012_v40, %v2313_v59  ;;  %v2140_v2 = vadd.f32 %v5714_v36, %v2051_v26  ;;  %v5715_v40 = vld [vmem:[#allocation47_spill] sm:$0xff] }
 0x3b6   : > { %2554 = vmatmul.bf16.gmra.mxu1 %v5710_v31  ;;  %v2053_v44 = vadd.f32 %v5715_v40, %v4985_v28  ;;  %v5716_v31 = vld [vmem:[#allocation18_spill] sm:$0xff] }
 0x3b7   : > { %v2491_v43 = vadd.f32 %v5142_v14, %v2402_v9  ;;  %v2229_v38 = vadd.f32 %v5716_v31, %v2140_v2  ;;  %v2507_v9 = vpop.f32.mrf.mxu1 }
 0x3b9   : > { %v2567_v59 = vmax.f32 %v2491_v43, 0.0  ;;  %v5719_v43 = vld [vmem:[#allocation49_spill] sm:$0xff] }
 0x3ba   : > { %v2314_v34 = vpop.f32.mrf.mxu3 }
 0x3bb   : > { %v2315_v8 = vadd.f32 %v2314_v34, %v2226_v50 }
 0x3bd   : > { %v2404_v48 = vadd.f32 %v5021_v27, %v2315_v8  ;;  %v5227_v8 = vpop.f32.mrf.mxu2 }
 0x3bf   : > { %v2493_v11 = vadd.f32 %v2492_v37, %v2404_v48  ;;  %2356 = vmatmul.bf16.gmra.mxu3 %v5713_v60  ;;  %v5717_v37 = vld [vmem:[#allocation71_spill] sm:$0xff]  ;;  %v2056_v48 = vadd.f32 %v5719_v43, %v4993_v7  ;;  %v5231_v60 = vpop.f32.mrf.mxu0  ;;  %v5235_v40 = vpop.f32.mrf.mxu1  ;;  %v5725_v43 = vld [vmem:[#allocation77_spill] sm:$0xff] }
 0x3c0   : > { %v2142_v50 = vadd.f32 %v5717_v37, %v2053_v44 }
 0x3c1   : > { %v2568_v63 = vmax.f32 %v2493_v11, 0.0 }
 0x3c2   : > { %v2317_v20 = vpop.f32.mrf.mxu3  ;;  %v2231_v26 = vadd.f32 %v5718_v52, %v2142_v50 }
 0x3c3   : > { %v2598_v14 = vpack.c.bf16 %v2568_v63, %v2567_v59  ;;  %v2318_v27 = vadd.f32 %v2317_v20, %v2229_v38  ;;  %v5721_v59 = vld [vmem:[#allocation74_spill] sm:$0xff] }
 0x3c4   : > { %v2145_v63 = vadd.f32 %v5721_v59, %v2056_v48  ;;  %v5722_v20 = vld [vmem:[#allocation50_spill] sm:$0xff] }
 0x3c5   : > { %2694 = vmatmul.bf16.gmra.mxu2 %v2598_v14  ;;  %v2407_v34 = vadd.f32 %v5031_v10, %v2318_v27  ;;  %v5720_v10 = vld [vmem:[#allocation40_spill] sm:$0xff]  ;;  %v2058_v31 = vadd.f32 %v5722_v20, %v5002_v23  ;;  %v5726_v23 = vld [vmem:[#allocation51_spill] sm:$0xff] }
 0x3c6   : > { %2559 = vmatmul.bf16.gmra.mxu1 %v4013_v51  ;;  %v5723_v27 = vld [vmem:[#allocation72_spill] sm:$0xff] }
 0x3c7   : > { %v2496_v36 = vadd.f32 %v5157_v61, %v2407_v34  ;;  %v2234_v37 = vadd.f32 %v5723_v27, %v2145_v63  ;;  %v5243_v61 = vpop.f32.mrf.mxu2  ;;  %v5724_v34 = vld [vmem:[#allocation76_spill] sm:$0xff] }
 0x3c8   : > { %v2147_v52 = vadd.f32 %v5724_v34, %v2058_v31  ;;  %v5727_v20 = vld [vmem:[#allocation44_spill] sm:$0xff]  ;;  %v5728_v31 = vld [vmem:[#allocation78_spill] sm:$0xff] }
 0x3c9   : > { %v2569_v38 = vmax.f32 %v2496_v36, 0.0  ;;  %v2061_v36 = vadd.f32 %v5726_v23, %v5008_v30 }
 0x3ca   : > { %v2319_v28 = vpop.f32.mrf.mxu3  ;;  %v2236_v48 = vadd.f32 %v5725_v43, %v2147_v52 }
 0x3cb   : > { %v2320_v11 = vadd.f32 %v2319_v28, %v2231_v26  ;;  %v2512_v26 = vpop.f32.mrf.mxu1 }
 0x3cd   : > { %v2409_v2 = vadd.f32 %v5039_v15, %v2320_v11 }
 0x3cf   : > { %v2498_v44 = vadd.f32 %v5173_v18, %v2409_v2  ;;  %2361 = vmatmul.bf16.gmra.mxu3 %v5720_v10  ;;  %v2423_v18 = vpop.f32.mrf.mxu0  ;;  %v5252_v59 = vpop.f32.mrf.mxu2 }
 0x3d1   : > { %v2570_v7 = vmax.f32 %v2498_v44, 0.0 }
 0x3d2   : > { %v2322_v14 = vpop.f32.mrf.mxu3 }
 0x3d3   : > { %v2599_v50 = vpack.c.bf16 %v2570_v7, %v2569_v38  ;;  %v2323_v15 = vadd.f32 %v2322_v14, %v2234_v37  ;;  %v2150_v38 = vadd.f32 %v5728_v31, %v2061_v36  ;;  %v5729_v7 = vld [vmem:[#allocation52_spill] sm:$0xff]  ;;  %v2515_v30 = vpop.f32.mrf.mxu1 }
 0x3d4   : > { %v2063_v14 = vadd.f32 %v5729_v7, %v5017_v46  ;;  %v5730_v46 = vld [vmem:[#allocation53_spill] sm:$0xff] }
 0x3d5   : > { %2699 = vmatmul.bf16.gmra.mxu2 %v2599_v50  ;;  %v2412_v28 = vadd.f32 %v5051_v19, %v2323_v15 }
 0x3d6   : > { %v2152_v34 = vadd.f32 %v4937_v22, %v2063_v14  ;;  %v5732_v22 = vld [vmem:[#allocation25_spill] sm:$0xff] }
 0x3d7   : > { %v2501_v44 = vadd.f32 %v5183_v4, %v2412_v28  ;;  %v2426_v19 = vpop.f32.mrf.mxu0  ;;  %v2239_v4 = vadd.f32 %v5097_v49, %v2150_v38 }
 0x3d8   : > { %v2241_v28 = vadd.f32 %v5105_v53, %v2152_v34 }
 0x3d9   : > { %v2571_v27 = vmax.f32 %v2501_v44, 0.0 }
 0x3da   : > { %v2324_v11 = vpop.f32.mrf.mxu3 }
 0x3db   : > { %v2325_v2 = vadd.f32 %v2324_v11, %v2236_v48  ;;  %v2066_v11 = vadd.f32 %v5730_v46, %v5025_v17  ;;  %v2517_v36 = vpop.f32.mrf.mxu1 }
 0x3dd   : > { %v2414_v10 = vadd.f32 %v5059_v55, %v2325_v2 }
 0x3df   : > { %v2503_v63 = vadd.f32 %v5195_v1, %v2414_v10  ;;  %2366 = vmatmul.bf16.gmra.mxu3 %v5727_v20  ;;  %v5261_v1 = vpop.f32.mrf.mxu2  ;;  %v2428_v43 = vpop.f32.mrf.mxu0  ;;  %v5731_v10 = vld [vmem:[#allocation48_spill] sm:$0xff] }
 0x3e1   : > { %v2572_v37 = vmax.f32 %v2503_v63, 0.0  ;;  %v2155_v63 = vadd.f32 %v5732_v22, %v2066_v11  ;;  %v5736_v11 = vld [vmem:[#allocation20_spill] sm:$0xff] }
 0x3e2   : > { %v2327_v50 = vpop.f32.mrf.mxu3 }
 0x3e3   : > { %v2600_v15 = vpack.c.bf16 %v2572_v37, %v2571_v27  ;;  %v2328_v55 = vadd.f32 %v2327_v50, %v2239_v4  ;;  %v2244_v17 = vadd.f32 %v5116_v33, %v2155_v63  ;;  %v2520_v37 = vpop.f32.mrf.mxu1 }
 0x3e5   : > { %2704 = vmatmul.bf16.gmra.mxu2 %v2600_v15  ;;  %v2417_v52 = vadd.f32 %v5204_v25, %v2328_v55  ;;  %v5733_v25 = vld [vmem:[#allocation54_spill] sm:$0xff] }
 0x3e6   : > { %v2068_v20 = vadd.f32 %v5733_v25, %v5034_v16  ;;  %v5735_v16 = vld [vmem:[#allocation55_spill] sm:$0xff] }
 0x3e7   : > { %v2506_v49 = vadd.f32 %v5208_v6, %v2417_v52  ;;  %v5273_v7 = vpop.f32.mrf.mxu2  ;;  %v2431_v27 = vpop.f32.mrf.mxu0  ;;  %v2071_v55 = vadd.f32 %v5735_v16, %v5042_v32 }
 0x3e9   : > { %v2573_v53 = vmax.f32 %v2506_v49, 0.0 }
 0x3ea   : > { %v2329_v48 = vpop.f32.mrf.mxu3 }
 0x3eb   : > { %v2330_v23 = vadd.f32 %v2329_v48, %v2241_v28 }
 0x3ed   : > { %v2419_v2 = vadd.f32 %v5220_v35, %v2330_v23  ;;  %v5734_v35 = vld [vmem:[#allocation81_spill] sm:$0xff]  ;;  %v5737_v23 = vld [vmem:[#allocation83_spill] sm:$0xff] }
 0x3ee   : > { %v2160_v49 = vadd.f32 %v5737_v23, %v2071_v55 }
 0x3ef   : > { %v2508_v44 = vadd.f32 %v2507_v9, %v2419_v2  ;;  %2371 = vmatmul.bf16.gmra.mxu3 %v5731_v10  ;;  %v2157_v9 = vadd.f32 %v5734_v35, %v2068_v20  ;;  %v5281_v52 = vpop.f32.mrf.mxu2  ;;  %v2433_v48 = vpop.f32.mrf.mxu0 }
 0x3f0   : > { %v2522_v2 = vpop.f32.mrf.mxu1  ;;  %v2249_v32 = vadd.f32 %v5131_v42, %v2160_v49 }
 0x3f1   : > { %v2574_v31 = vmax.f32 %v2508_v44, 0.0  ;;  %v2246_v4 = vadd.f32 %v5125_v39, %v2157_v9 }
 0x3f2   : > { %v2332_v38 = vpop.f32.mrf.mxu3 }
 0x3f3   : > { %v2601_v14 = vpack.c.bf16 %v2574_v31, %v2573_v53  ;;  %v2333_v6 = vadd.f32 %v2332_v38, %v2244_v17 }
 0x3f5   : > { %2709 = vmatmul.bf16.gmra.mxu2 %v2601_v14  ;;  %v2422_v50 = vadd.f32 %v5231_v60, %v2333_v6  ;;  %v5738_v60 = vld [vmem:[#allocation56_spill] sm:$0xff] }
 0x3f6   : > { %v2073_v39 = vadd.f32 %v5738_v60, %v5049_v57  ;;  %v5739_v57 = vld [vmem:[#allocation57_spill] sm:$0xff] }
 0x3f7   : > { %v2511_v33 = vadd.f32 %v5235_v40, %v2422_v50  ;;  %v2076_v17 = vadd.f32 %v5739_v57, %v5057_v41  ;;  %v5740_v50 = vld [vmem:[#allocation58_spill] sm:$0xff] }
 0x3f8   : > { %v2162_v40 = vadd.f32 %v4970_v12, %v2073_v39  ;;  %v2525_v31 = vpop.f32.mrf.mxu1 }
 0x3f9   : > { %v2575_v44 = vmax.f32 %v2511_v33, 0.0  ;;  %v2165_v9 = vadd.f32 %v4978_v56, %v2076_v17 }
 0x3fa   : > { %v2334_v15 = vpop.f32.mrf.mxu3  ;;  %v2251_v53 = vadd.f32 %v5137_v13, %v2162_v40 }
 0x3fb   : > { %v2335_v34 = vadd.f32 %v2334_v15, %v2246_v4  ;;  %v2254_v55 = vadd.f32 %v5148_v47, %v2165_v9  ;;  %v5747_v9 = vld [vmem:[#allocation88_spill] sm:$0xff] }
 0x3fd   : > { %v2424_v28 = vadd.f32 %v2423_v18, %v2335_v34  ;;  %v5290_v18 = vpop.f32.mrf.mxu2 }
 0x3ff   : > { %v2513_v46 = vadd.f32 %v2512_v26, %v2424_v28  ;;  %2376 = vmatmul.bf16.gmra.mxu3 %v5736_v11  ;;  %v2436_v26 = vpop.f32.mrf.mxu0  ;;  %v5742_v28 = vld [vmem:[#allocation59_spill] sm:$0xff] }
 0x400   : > { %v2527_v34 = vpop.f32.mrf.mxu1 }
 0x401   : > { %v2576_v10 = vmax.f32 %v2513_v46, 0.0  ;;  %v2081_v46 = vadd.f32 %v5742_v28, %v5070_v62 }
 0x402   : > { %v2337_v22 = vpop.f32.mrf.mxu3 }
 0x403   : > { %v2602_v63 = vpack.c.bf16 %v2576_v10, %v2575_v44  ;;  %v2338_v25 = vadd.f32 %v2337_v22, %v2249_v32  ;;  %v5743_v44 = vld [vmem:[#allocation86_spill] sm:$0xff] }
 0x404   : > { %v2170_v10 = vadd.f32 %v5743_v44, %v2081_v46  ;;  %v5744_v22 = vld [vmem:[#allocation22_spill] sm:$0xff] }
 0x405   : > { %2714 = vmatmul.bf16.gmra.mxu2 %v2602_v63  ;;  %v2427_v20 = vadd.f32 %v2426_v19, %v2338_v25  ;;  %v5297_v12 = vpop.f32.mrf.mxu2  ;;  %v2078_v19 = vadd.f32 %v5740_v50, %v5066_v0  ;;  %v2083_v32 = vadd.f32 %v5744_v22, %v5076_v5  ;;  %v5746_v5 = vld [vmem:[#allocation60_spill] sm:$0xff] }
 0x406   : > { %v2259_v25 = vadd.f32 %v5165_v45, %v2170_v10 }
 0x407   : > { %v2516_v6 = vadd.f32 %v2515_v30, %v2427_v20  ;;  %v2438_v15 = vpop.f32.mrf.mxu0  ;;  %v5745_v20 = vld [vmem:[#allocation87_spill] sm:$0xff] }
 0x408   : > { %v2530_v47 = vpop.f32.mrf.mxu1 }
 0x409   : > { %v2577_v4 = vmax.f32 %v2516_v6, 0.0 }
 0x40a   : > { %v2339_v38 = vpop.f32.mrf.mxu3 }
 0x40b   : > { %v2340_v14 = vadd.f32 %v2339_v38, %v2251_v53  ;;  %v2172_v53 = vadd.f32 %v5745_v20, %v2083_v32 }
 0x40d   : > { %v2429_v35 = vadd.f32 %v2428_v43, %v2340_v14  ;;  %v5741_v43 = vld [vmem:[#allocation26_spill] sm:$0xff]  ;;  %v5306_v11 = vpop.f32.mrf.mxu2  ;;  %v2261_v57 = vadd.f32 %v5179_v21, %v2172_v53  ;;  %v2086_v14 = vadd.f32 %v5746_v5, %v5082_v29 }
 0x40f   : > { %v2518_v42 = vadd.f32 %v2517_v36, %v2429_v35  ;;  %2381 = vmatmul.bf16.gmra.mxu3 %v4013_v51  ;;  %v2167_v36 = vadd.f32 %v5741_v43, %v2078_v19  ;;  %v2441_v23 = vpop.f32.mrf.mxu0  ;;  %v2175_v50 = vadd.f32 %v5747_v9, %v2086_v14 }
 0x411   : > { %v2578_v13 = vmax.f32 %v2518_v42, 0.0  ;;  %v2256_v56 = vadd.f32 %v5154_v54, %v2167_v36  ;;  %v2264_v43 = vadd.f32 %v5190_v24, %v2175_v50  ;;  %v5751_v24 = vld [vmem:[#allocation97_spill] sm:$0xff] }
 0x412   : > { %v2342_v16 = vpop.f32.mrf.mxu3 }
 0x413   : > { %v2603_v41 = vpack.c.bf16 %v2578_v13, %v2577_v4  ;;  %v2343_v30 = vadd.f32 %v2342_v16, %v2254_v55  ;;  %v5748_v13 = vld [vmem:[#allocation96_spill] sm:$0xff] }
 0x414   : > { %v5749_v16 = vld [vmem:[#allocation24_spill] sm:$0xff] }
 0x415   : > { %2719 = vmatmul.bf16.gmra.mxu2 %v2603_v41  ;;  %v2432_v51 = vadd.f32 %v2431_v27, %v2343_v30  ;;  %v5313_v38 = vpop.f32.mrf.mxu2  ;;  %v2088_v55 = vadd.f32 %v5749_v16, %v5748_v13 }
 0x417   : > { %v2521_v49 = vadd.f32 %v2520_v37, %v2432_v51  ;;  %v2443_v37 = vpop.f32.mrf.mxu0 }
 0x419   : > { %v2579_v27 = vmax.f32 %v2521_v49, 0.0  ;;  %v5752_v49 = vld [vmem:[#allocation29_spill] sm:$0xff] }
 0x41a   : > { %v2344_v33 = vpop.f32.mrf.mxu3 }
 0x41b   : > { %v2345_v0 = vadd.f32 %v2344_v33, %v2256_v56 }
 0x41d   : > { %v2434_v60 = vadd.f32 %v2433_v48, %v2345_v0  ;;  %v2532_v48 = vpop.f32.mrf.mxu1  ;;  %v5319_v19 = vpop.f32.mrf.mxu2 }
 0x41f   : > { %v2523_v39 = vadd.f32 %v2522_v2, %v2434_v60  ;;  %v2446_v4 = vpop.f32.mrf.mxu0  ;;  %v2091_v60 = vadd.f32 %v5752_v49, %v5751_v24  ;;  %v5761_v49 = vld [vmem:[#allocation70_spill] sm:$0xff] }
 0x421   : > { %v2580_v63 = vmax.f32 %v2523_v39, 0.0  ;;  %v3558_v39 = vld [vmem:[%s3953_s15] sm:$0xff] }
 0x422   : > { %v2347_v54 = vpop.f32.mrf.mxu3 }
 0x423   : > { %v2604_v40 = vpack.c.bf16 %v2580_v63, %v2579_v27  ;;  %v2348_v62 = vadd.f32 %v2347_v54, %v2259_v25 }
 0x425   : > { %2724 = vmatmul.bf16.gmra.mxu2 %v2604_v40  ;;  %v2437_v2 = vadd.f32 %v2436_v26, %v2348_v62  ;;  %v2535_v21 = vpop.f32.mrf.mxu1  ;;  %v5754_v40 = vld [vmem:[#allocation98_spill] sm:$0xff]  ;;  %v5755_v62 = vld [vmem:[#allocation15_spill] sm:$0xff] }
 0x426   : > { %v2093_v20 = vadd.f32 %v5755_v62, %v5754_v40 }
 0x427   : > { %v2526_v35 = vadd.f32 %v2525_v31, %v2437_v2  ;;  %v5327_v31 = vld [vmem:[%s5519_s6] ss:$0 sm:$0xff]  ;;  %v2448_v46 = vpop.f32.mrf.mxu0 }
 0x429   : > { %v2581_v41 = vmax.f32 %v2526_v35, 0.0 }
 0x42a   : > { %v2349_v17 = vpop.f32.mrf.mxu3 }
 0x42b   : > { %v2350_v6 = vadd.f32 %v2349_v17, %v2261_v57  ;;  %v3559_v17 = vld [vmem:[%s3953_s15 + $0x8] sm:$0xff] }
 0x42d   : > { %v2439_v42 = vadd.f32 %v2438_v15, %v2350_v6  ;;  %v5750_v15 = vld [vmem:[#allocation89_spill] sm:$0xff]  ;;  %v2537_v22 = vpop.f32.mrf.mxu1 }
 0x42f   : > { %v2528_v45 = vadd.f32 %v2527_v34, %v2439_v42  ;;  %v2177_v34 = vadd.f32 %v5750_v15, %v2088_v55  ;;  %v2451_v6 = vpop.f32.mrf.mxu0  ;;  %v5756_v42 = vld [vmem:[#allocation91_spill] sm:$0xff] }
 0x431   : > { %v2582_v26 = vmax.f32 %v2528_v45, 0.0  ;;  %v2266_v28 = vadd.f32 %v5202_v58, %v2177_v34  ;;  %v5753_v58 = vld [vmem:[#allocation90_spill] sm:$0xff]  ;;  %v2182_v45 = vadd.f32 %v5756_v42, %v2093_v20 }
 0x432   : > { %v2352_v30 = vpop.f32.mrf.mxu3  ;;  %v2180_v54 = vadd.f32 %v5753_v58, %v2091_v60  ;;  %v5762_v58 = vld [vmem:[#allocation93_spill] sm:$0xff] }
 0x433   : > { %v2605_v29 = vpack.c.bf16 %v2582_v26, %v2581_v41  ;;  %v2353_v36 = vadd.f32 %v2352_v30, %v2264_v43  ;;  %v2271_v55 = vadd.f32 %v5227_v8, %v2182_v45  ;;  %v5757_v26 = vld [vmem:[#allocation27_spill] sm:$0xff]  ;;  %v5758_v30 = vld [vmem:[#allocation68_spill] sm:$0xff]  ;;  %v3560_v43 = vld [vmem:[%s3953_s15 + $0x10] sm:$0xff] }
 0x434   : > { %v2269_v5 = vadd.f32 %v5216_v3, %v2180_v54  ;;  %v2096_v3 = vadd.f32 %v5758_v30, %v5757_v26  ;;  %v5760_v8 = vld [vmem:[#allocation101_spill] sm:$0xff] }
 0x435   : > { %2729 = vmatmul.bf16.gmra.mxu2 %v2605_v29  ;;  %v2442_v56 = vadd.f32 %v2441_v23, %v2353_v36  ;;  %v2540_v9 = vpop.f32.mrf.mxu1  ;;  %v2098_v60 = vadd.f32 %v5761_v49, %v5760_v8 }
 0x437   : > { %v2531_v32 = vadd.f32 %v2530_v47, %v2442_v56  ;;  %v2453_v56 = vpop.f32.mrf.mxu0  ;;  %v2187_v54 = vadd.f32 %v5762_v58, %v2098_v60  ;;  %v5769_v60 = vld [vmem:[#allocation32_spill] sm:$0xff]  ;;  %v5771_v58 = vld [vmem:[#allocation95_spill] sm:$0xff] }
 0x438   : > { %v2690_v51 = vpop.f32.mrf.mxu2 }
 0x439   : > { %v2691_v33 = vadd.f32 %v5327_v31, %v2690_v51  ;;  %v2583_v53 = vmax.f32 %v2531_v32, 0.0 }
 0x43a   : > { %v2354_v0 = vpop.f32.mrf.mxu3 }
 0x43b   : > { %v2770_v44 = vadd.f32 %v3558_v39, %v2691_v33  ;;  %v2355_v10 = vadd.f32 %v2354_v0, %v2266_v28  ;;  %v5759_v28 = vld [vmem:[#allocation92_spill] sm:$0xff] }
 0x43d   : > { %v2802_v27 = vmax.f32 %v2770_v44, 0.0  ;;  %v2444_v63 = vadd.f32 %v2443_v37, %v2355_v10  ;;  %v2542_v0 = vpop.f32.mrf.mxu1 }
 0x43f   : > { %2834 = vst [vmem:[%s5337_s20] sm:$0xff] %v2802_v27  ;;  %v2533_v23 = vadd.f32 %v2532_v48, %v2444_v63  ;;  %v3561_v27 = vld [vmem:[%s3953_s15 + $0x18] sm:$0xff] }
 0x440   : > { %v2692_v25 = vpop.f32.mrf.mxu2 }
 0x441   : > { %v2584_v2 = vmax.f32 %v2533_v23, 0.0  ;;  %v2693_v57 = vadd.f32 %v5327_v31, %v2692_v25  ;;  %v2456_v25 = vpop.f32.mrf.mxu0 }
 0x442   : > { %v2357_v47 = vpop.f32.mrf.mxu3 }
 0x443   : > { %v2771_v37 = vadd.f32 %v3559_v17, %v2693_v57  ;;  %v2606_v14 = vpack.c.bf16 %v2584_v2, %v2583_v53  ;;  %v2358_v35 = vadd.f32 %v2357_v47, %v2269_v5  ;;  %v2276_v53 = vadd.f32 %v5252_v59, %v2187_v54  ;;  %v5763_v47 = vld [vmem:[#allocation102_spill] sm:$0xff]  ;;  %v5764_v17 = vld [vmem:[#allocation21_spill] sm:$0xff] }
 0x445   : > { %v2803_v48 = vmax.f32 %v2771_v37, 0.0  ;;  %2734 = vmatmul.bf16.gmra.mxu2 %v2606_v14  ;;  %v2447_v13 = vadd.f32 %v2446_v4, %v2358_v35  ;;  %v2185_v4 = vadd.f32 %v5759_v28, %v2096_v3  ;;  %v2545_v2 = vpop.f32.mrf.mxu1  ;;  %v3562_v37 = vld [vmem:[%s3953_s15 + $0x20] sm:$0xff] }
 0x447   : > { %2835 = vst [vmem:[%s5337_s20 + $0x8] sm:$0xff] %v2803_v48  ;;  %v2536_v15 = vadd.f32 %v2535_v21, %v2447_v13 }
 0x448   : > { %v2695_v50 = vpop.f32.mrf.mxu2 }
 0x449   : > { %v2696_v16 = vadd.f32 %v5327_v31, %v2695_v50  ;;  %v2585_v39 = vmax.f32 %v2536_v15, 0.0  ;;  %v5765_v50 = vld [vmem:[#allocation94_spill] sm:$0xff]  ;;  %v2458_v3 = vpop.f32.mrf.mxu0 }
 0x44a   : > { %v2359_v41 = vpop.f32.mrf.mxu3 }
 0x44b   : > { %v2772_v29 = vadd.f32 %v3560_v43, %v2696_v16  ;;  %v2360_v36 = vadd.f32 %v2359_v41, %v2271_v55  ;;  %v5766_v16 = vld [vmem:[#allocation103_spill] sm:$0xff] }
 0x44c   : > { %v5767_v55 = vld [vmem:[#allocation75_spill] sm:$0xff] }
 0x44d   : > { %v2804_v34 = vmax.f32 %v2772_v29, 0.0  ;;  %v2449_v51 = vadd.f32 %v2448_v46, %v2360_v36  ;;  %v2274_v46 = vadd.f32 %v5243_v61, %v2185_v4  ;;  %v2101_v61 = vadd.f32 %v5764_v17, %v5763_v47  ;;  %v3563_v29 = vld [vmem:[%s3953_s15 + $0x28] sm:$0xff]  ;;  %v3565_v17 = vld [vmem:[%s3953_s15 + $0x38] sm:$0xff] }
 0x44e   : > { %v2103_v59 = vadd.f32 %v5767_v55, %v5766_v16 }
 0x44f   : > { %2836 = vst [vmem:[%s5337_s20 + $0x10] sm:$0xff] %v2804_v34  ;;  %v2538_v33 = vadd.f32 %v2537_v22, %v2449_v51  ;;  %v2547_v34 = vpop.f32.mrf.mxu1 }
 0x450   : > { %v2697_v24 = vpop.f32.mrf.mxu2 }
 0x451   : > { %v2586_v44 = vmax.f32 %v2538_v33, 0.0  ;;  %v2698_v10 = vadd.f32 %v5327_v31, %v2697_v24  ;;  %v5768_v33 = vld [vmem:[#allocation16_spill] sm:$0xff] }
 0x452   : > { %v2362_v32 = vpop.f32.mrf.mxu3  ;;  %v2192_v28 = vadd.f32 %v5768_v33, %v2103_v59  ;;  %v5775_v59 = vld [vmem:[#allocation73_spill] sm:$0xff] }
 0x453   : > { %v2773_v21 = vadd.f32 %v3561_v27, %v2698_v10  ;;  %v2607_v63 = vpack.c.bf16 %v2586_v44, %v2585_v39  ;;  %v2363_v23 = vadd.f32 %v2362_v32, %v2274_v46  ;;  %v5770_v39 = vld [vmem:[#allocation79_spill] sm:$0xff]  ;;  %v2461_v27 = vpop.f32.mrf.mxu0  ;;  %v5778_v33 = vld [vmem:[#allocation105_spill] sm:$0xff] }
 0x454   : > { %v2281_v8 = vadd.f32 %v5273_v7, %v2192_v28  ;;  %v2106_v44 = vadd.f32 %v5770_v39, %v5769_v60  ;;  %v5772_v7 = vld [vmem:[#allocation104_spill] sm:$0xff] }
 0x455   : > { %v2805_v22 = vmax.f32 %v2773_v21, 0.0  ;;  %2739 = vmatmul.bf16.gmra.mxu2 %v2607_v63  ;;  %v2452_v62 = vadd.f32 %v2451_v6, %v2363_v23  ;;  %v2190_v6 = vadd.f32 %v5765_v50, %v2101_v61  ;;  %v3567_v60 = vld [vmem:[%s3953_s15 + $0x48] sm:$0xff] }
 0x456   : > { %v2195_v54 = vadd.f32 %v5771_v58, %v2106_v44 }
 0x457   : > { %2837 = vst [vmem:[%s5337_s20 + $0x18] sm:$0xff] %v2805_v22  ;;  %v2541_v48 = vadd.f32 %v2540_v9, %v2452_v62  ;;  %v2279_v36 = vadd.f32 %v5261_v1, %v2190_v6  ;;  %v3564_v1 = vld [vmem:[%s3953_s15 + $0x30] sm:$0xff]  ;;  %v2550_v22 = vpop.f32.mrf.mxu1 }
 0x458   : > { %v2700_v40 = vpop.f32.mrf.mxu2 }
 0x459   : > { %v2701_v20 = vadd.f32 %v5327_v31, %v2700_v40  ;;  %v2587_v41 = vmax.f32 %v2541_v48, 0.0  ;;  %v5773_v40 = vld [vmem:[#allocation34_spill] sm:$0xff]  ;;  %v5774_v48 = vld [vmem:[#allocation19_spill] sm:$0xff] }
 0x45a   : > { %v2364_v57 = vpop.f32.mrf.mxu3  ;;  %v2108_v62 = vadd.f32 %v5773_v40, %v5772_v7  ;;  %v5782_v7 = vld [vmem:[#allocation84_spill] sm:$0xff] }
 0x45b   : > { %v2774_v5 = vadd.f32 %v3562_v37, %v2701_v20  ;;  %v2365_v14 = vadd.f32 %v2364_v57, %v2276_v53 }
 0x45d   : > { %v2806_v35 = vmax.f32 %v2774_v5, 0.0  ;;  %v2454_v42 = vadd.f32 %v2453_v56, %v2365_v14 }
 0x45f   : > { %2838 = vst [vmem:[%s5337_s20 + $0x20] sm:$0xff] %v2806_v35  ;;  %v2543_v45 = vadd.f32 %v2542_v0, %v2454_v42  ;;  %v2197_v35 = vadd.f32 %v5774_v48, %v2108_v62  ;;  %v2463_v42 = vpop.f32.mrf.mxu0 }
 0x460   : > { %v2702_v13 = vpop.f32.mrf.mxu2 }
 0x461   : > { %v2588_v26 = vmax.f32 %v2543_v45, 0.0  ;;  %v2703_v30 = vadd.f32 %v5327_v31, %v2702_v13  ;;  %v2552_v45 = vpop.f32.mrf.mxu1  ;;  %v2286_v16 = vadd.f32 %v5290_v18, %v2197_v35  ;;  %v5779_v18 = vld [vmem:[#allocation82_spill] sm:$0xff] }
 0x462   : > { %v2367_v43 = vpop.f32.mrf.mxu3  ;;  %v2113_v28 = vadd.f32 %v5779_v18, %v5778_v33 }
 0x463   : > { %v2775_v9 = vadd.f32 %v3563_v29, %v2703_v30  ;;  %v2608_v15 = vpack.c.bf16 %v2588_v26, %v2587_v41  ;;  %v2368_v56 = vadd.f32 %v2367_v43, %v2279_v36  ;;  %v5776_v41 = vld [vmem:[#allocation80_spill] sm:$0xff]  ;;  %v3566_v26 = vld [vmem:[%s3953_s15 + $0x40] sm:$0xff] }
 0x465   : > { %v2807_v51 = vmax.f32 %v2775_v9, 0.0  ;;  %2744 = vmatmul.bf16.gmra.mxu2 %v2608_v15  ;;  %v2457_v0 = vadd.f32 %v2456_v25, %v2368_v56  ;;  %v5777_v15 = vld [vmem:[#allocation23_spill] sm:$0xff] }
 0x467   : > { %2839 = vst [vmem:[%s5337_s20 + $0x28] sm:$0xff] %v2807_v51  ;;  %v2546_v21 = vadd.f32 %v2545_v2, %v2457_v0  ;;  %v2284_v2 = vadd.f32 %v5281_v52, %v2195_v54  ;;  %v2111_v52 = vadd.f32 %v5776_v41, %v5775_v59  ;;  %v2466_v51 = vpop.f32.mrf.mxu0 }
 0x468   : > { %v2705_v4 = vpop.f32.mrf.mxu2 }
 0x469   : > { %v2706_v24 = vadd.f32 %v5327_v31, %v2705_v4  ;;  %v2589_v20 = vmax.f32 %v2546_v21, 0.0 }
 0x46a   : > { %v2369_v49 = vpop.f32.mrf.mxu3 }
 0x46b   : > { %v2776_v10 = vadd.f32 %v3564_v1, %v2706_v24  ;;  %v2370_v32 = vadd.f32 %v2369_v49, %v2281_v8  ;;  %v2555_v8 = vpop.f32.mrf.mxu1 }
 0x46d   : > { %v2808_v46 = vmax.f32 %v2776_v10, 0.0  ;;  %v2459_v63 = vadd.f32 %v2458_v3, %v2370_v32 }
 0x46f   : > { %2840 = vst [vmem:[%s5337_s20 + $0x30] sm:$0xff] %v2808_v46  ;;  %v2548_v23 = vadd.f32 %v2547_v34, %v2459_v63  ;;  %v2200_v34 = vadd.f32 %v5777_v15, %v2111_v52  ;;  %v2468_v58 = vpop.f32.mrf.mxu0 }
 0x470   : > { %v2707_v25 = vpop.f32.mrf.mxu2 }
 0x471   : > { %v2590_v53 = vmax.f32 %v2548_v23, 0.0  ;;  %v2708_v57 = vadd.f32 %v5327_v31, %v2707_v25  ;;  %v2289_v44 = vadd.f32 %v5297_v12, %v2200_v34  ;;  %v5781_v25 = vld [vmem:[#allocation38_spill] sm:$0xff]  ;;  %v3568_v12 = vld [vmem:[%s3953_s15 + $0x50] sm:$0xff]  ;;  %v3570_v34 = vld [vmem:[%s3953_s15 + $0x60] sm:$0xff] }
 0x472   : > { %v2372_v47 = vpop.f32.mrf.mxu3  ;;  %v2116_v40 = vadd.f32 %v5782_v7, %v5781_v25 }
 0x473   : > { %v2777_v61 = vadd.f32 %v3565_v17, %v2708_v57  ;;  %v2609_v37 = vpack.c.bf16 %v2590_v53, %v2589_v20  ;;  %v2373_v14 = vadd.f32 %v2372_v47, %v2284_v2  ;;  %v2557_v53 = vpop.f32.mrf.mxu1  ;;  %v5783_v2 = vld [vmem:[#allocation100_spill] sm:$0xff] }
 0x475   : > { %v2809_v5 = vmax.f32 %v2777_v61, 0.0  ;;  %2749 = vmatmul.bf16.gmra.mxu2 %v2609_v37  ;;  %v2462_v6 = vadd.f32 %v2461_v27, %v2373_v14  ;;  %v5780_v27 = vld [vmem:[#allocation99_spill] sm:$0xff]  ;;  %v2205_v37 = vadd.f32 %v5783_v2, %v2116_v40 }
 0x476   : > { %v2202_v21 = vadd.f32 %v5780_v27, %v2113_v28  ;;  %v5784_v14 = vld [vmem:[#allocation35_spill] sm:$0xff]  ;;  %v3572_v27 = vld [vmem:[%s3953_s15 + $0x70] sm:$0xff] }
 0x477   : > { %2841 = vst [vmem:[%s5337_s20 + $0x38] sm:$0xff] %v2809_v5  ;;  %v2551_v43 = vadd.f32 %v2550_v22, %v2462_v6  ;;  %v3574_v40 = vld [vmem:[%s3953_s15 + $0x80] sm:$0xff] }
 0x478   : > { %v2710_v50 = vpop.f32.mrf.mxu2  ;;  %v2291_v23 = vadd.f32 %v5306_v11, %v2202_v21  ;;  %v5785_v11 = vld [vmem:[#allocation85_spill] sm:$0xff] }
 0x479   : > { %v2711_v13 = vadd.f32 %v5327_v31, %v2710_v50  ;;  %v2591_v4 = vmax.f32 %v2551_v43, 0.0  ;;  %v2118_v48 = vadd.f32 %v5785_v11, %v5784_v14  ;;  %v2471_v50 = vpop.f32.mrf.mxu0 }
 0x47a   : > { %v2374_v55 = vpop.f32.mrf.mxu3 }
 0x47b   : > { %v2778_v30 = vadd.f32 %v3566_v26, %v2711_v13  ;;  %v2375_v3 = vadd.f32 %v2374_v55, %v2286_v16  ;;  %v3569_v13 = vld [vmem:[%s3953_s15 + $0x58] sm:$0xff]  ;;  %v2294_v55 = vadd.f32 %v5313_v38, %v2205_v37  ;;  %v2560_v41 = vpop.f32.mrf.mxu1  ;;  %v3576_v37 = vld [vmem:[%s3953_s15 + $0x90] sm:$0xff] }
 0x47d   : > { %v2810_v29 = vmax.f32 %v2778_v30, 0.0  ;;  %v2464_v9 = vadd.f32 %v2463_v42, %v2375_v3  ;;  %v5786_v30 = vld [vmem:[#allocation30_spill] sm:$0xff] }
 0x47e   : > { %v2207_v3 = vadd.f32 %v5786_v30, %v2118_v48 }
 0x47f   : > { %2842 = vst [vmem:[%s5337_s20 + $0x40] sm:$0xff] %v2810_v29  ;;  %v2553_v36 = vadd.f32 %v2552_v45, %v2464_v9 }
 0x480   : > { %v2712_v56 = vpop.f32.mrf.mxu2 }
 0x481   : > { %v2592_v0 = vmax.f32 %v2553_v36, 0.0  ;;  %v2713_v24 = vadd.f32 %v5327_v31, %v2712_v56  ;;  %v2296_v36 = vadd.f32 %v5319_v19, %v2207_v3  ;;  %v2473_v56 = vpop.f32.mrf.mxu0 }
 0x482   : > { %v2377_v49 = vpop.f32.mrf.mxu3 }
 0x483   : > { %v2779_v39 = vadd.f32 %v3567_v60, %v2713_v24  ;;  %v2610_v1 = vpack.c.bf16 %v2592_v0, %v2591_v4  ;;  %v2378_v32 = vadd.f32 %v2377_v49, %v2289_v44  ;;  %v2562_v4 = vpop.f32.mrf.mxu1  ;;  %v3571_v60 = vld [vmem:[%s3953_s15 + $0x68] sm:$0xff] }
 0x485   : > { %v2811_v10 = vmax.f32 %v2779_v39, 0.0  ;;  %2754 = vmatmul.bf16.gmra.mxu2 %v2610_v1  ;;  %v2467_v63 = vadd.f32 %v2466_v51, %v2378_v32 }
 0x487   : > { %2843 = vst [vmem:[%s5337_s20 + $0x48] sm:$0xff] %v2811_v10  ;;  %v2556_v57 = vadd.f32 %v2555_v8, %v2467_v63 }
 0x488   : > { %v2715_v46 = vpop.f32.mrf.mxu2 }
 0x489   : > { %v2716_v22 = vadd.f32 %v5327_v31, %v2715_v46  ;;  %v2593_v35 = vmax.f32 %v2556_v57, 0.0  ;;  %v3575_v57 = vld [vmem:[%s3953_s15 + $0x88] sm:$0xff] }
 0x48a   : > { %v2379_v54 = vpop.f32.mrf.mxu3 }
 0x48b   : > { %v2780_v62 = vadd.f32 %v3568_v12, %v2716_v22  ;;  %v2380_v20 = vadd.f32 %v2379_v54, %v2291_v23  ;;  %v3573_v23 = vld [vmem:[%s3953_s15 + $0x78] sm:$0xff] }
 0x48d   : > { %v2812_v47 = vmax.f32 %v2780_v62, 0.0  ;;  %v2469_v17 = vadd.f32 %v2468_v58, %v2380_v20 }
 0x48f   : > { %2844 = vst [vmem:[%s5337_s20 + $0x50] sm:$0xff] %v2812_v47  ;;  %v2558_v61 = vadd.f32 %v2557_v53, %v2469_v17 }
 0x490   : > { %v2717_v5 = vpop.f32.mrf.mxu2 }
 0x491   : > { %v2594_v42 = vmax.f32 %v2558_v61, 0.0  ;;  %v2718_v45 = vadd.f32 %v5327_v31, %v2717_v5 }
 0x492   : > { %v2382_v6 = vpop.f32.mrf.mxu3 }
 0x493   : > { %v2781_v16 = vadd.f32 %v3569_v13, %v2718_v45  ;;  %v2611_v59 = vpack.c.bf16 %v2594_v42, %v2593_v35  ;;  %v2383_v26 = vadd.f32 %v2382_v6, %v2294_v55  ;;  %v3577_v35 = vld [vmem:[%s3953_s15 + $0x98] sm:$0xff]  ;;  %v3578_v13 = vld [vmem:[%s3953_s15 + $0xa0] sm:$0xff] }
 0x495   : > { %v2813_v52 = vmax.f32 %v2781_v16, 0.0  ;;  %2759 = vmatmul.bf16.gmra.mxu2 %v2611_v59  ;;  %v2472_v29 = vadd.f32 %v2471_v50, %v2383_v26 }
 0x497   : > { %2845 = vst [vmem:[%s5337_s20 + $0x58] sm:$0xff] %v2813_v52  ;;  %v2561_v33 = vadd.f32 %v2560_v41, %v2472_v29  ;;  %v3579_v52 = vld [vmem:[%s3953_s15 + $0xa8] sm:$0xff]  ;;  %v3580_v29 = vld [vmem:[%s3953_s15 + $0xb0] sm:$0xff] }
 0x498   : > { %v2720_v43 = vpop.f32.mrf.mxu2 }
 0x499   : > { %v2721_v9 = vadd.f32 %v5327_v31, %v2720_v43  ;;  %v2595_v8 = vmax.f32 %v2561_v33, 0.0 }
 0x49a   : > { %v2384_v15 = vpop.f32.mrf.mxu3 }
 0x49b   : > { %v2782_v51 = vadd.f32 %v3570_v34, %v2721_v9  ;;  %v2385_v38 = vadd.f32 %v2384_v15, %v2296_v36 }
 0x49d   : > { %v2814_v18 = vmax.f32 %v2782_v51, 0.0  ;;  %v2474_v28 = vadd.f32 %v2473_v56, %v2385_v38  ;;  %v3581_v51 = vld [vmem:[%s3953_s15 + $0xb8] sm:$0xff] }
 0x49f   : > { %2846 = vst [vmem:[%s5337_s20 + $0x60] sm:$0xff] %v2814_v18  ;;  %v2563_v0 = vadd.f32 %v2562_v4, %v2474_v28  ;;  %v3582_v28 = vld [vmem:[%s3953_s15 + $0xc0] sm:$0xff] }
 0x4a0   : > { %v2722_v24 = vpop.f32.mrf.mxu2 }
 0x4a1   : > { %v2596_v49 = vmax.f32 %v2563_v0, 0.0  ;;  %v2723_v19 = vadd.f32 %v5327_v31, %v2722_v24 }
 0x4a3   : > { %v2783_v39 = vadd.f32 %v3571_v60, %v2723_v19  ;;  %v2612_v44 = vpack.c.bf16 %v2596_v49, %v2595_v8  ;;  %v3583_v49 = vld [vmem:[%s3953_s15 + $0xc8] sm:$0xff] }
 0x4a5   : > { %v2815_v1 = vmax.f32 %v2783_v39, 0.0  ;;  %2764 = vmatmul.bf16.gmra.mxu2 %v2612_v44 }
 0x4a7   : > { %2847 = vst [vmem:[%s5337_s20 + $0x68] sm:$0xff] %v2815_v1  ;;  %v3584_v1 = vld [vmem:[%s3953_s15 + $0xd0] sm:$0xff] }
 0x4a8   : > { %v2725_v10 = vpop.f32.mrf.mxu2 }
 0x4a9   : > { %v2726_v32 = vadd.f32 %v5327_v31, %v2725_v10 }
 0x4ab   : > { %v2784_v21 = vadd.f32 %v3572_v27, %v2726_v32 }
 0x4ad   : > { %v2816_v46 = vmax.f32 %v2784_v21, 0.0 }
 0x4af   : > { %2848 = vst [vmem:[%s5337_s20 + $0x70] sm:$0xff] %v2816_v46  ;;  %v3585_v46 = vld [vmem:[%s3953_s15 + $0xd8] sm:$0xff] }
 0x4b0   : > { %v2727_v63 = vpop.f32.mrf.mxu2 }
 0x4b1   : > { %v2728_v22 = vadd.f32 %v5327_v31, %v2727_v63 }
 0x4b3   : > { %v2785_v58 = vadd.f32 %v3573_v23, %v2728_v22 }
 0x4b5   : > { %v2817_v54 = vmax.f32 %v2785_v58, 0.0 }
 0x4b7   : > { %2849 = vst [vmem:[%s5337_s20 + $0x78] sm:$0xff] %v2817_v54  ;;  %v3586_v54 = vld [vmem:[%s3953_s15 + $0xe0] sm:$0xff] }
 0x4b8   : > { %v2730_v25 = vpop.f32.mrf.mxu2 }
 0x4b9   : > { %v2731_v7 = vadd.f32 %v5327_v31, %v2730_v25 }
 0x4bb   : > { %v2786_v12 = vadd.f32 %v3574_v40, %v2731_v7 }
 0x4bd   : > { %v2818_v62 = vmax.f32 %v2786_v12, 0.0 }
 0x4bf   : > { %2850 = vst [vmem:[%s5337_s20 + $0x80] sm:$0xff] %v2818_v62  ;;  %v3587_v62 = vld [vmem:[%s3953_s15 + $0xe8] sm:$0xff] }
 0x4c0   : > { %v2732_v20 = vpop.f32.mrf.mxu2 }
 0x4c1   : > { %v2733_v53 = vadd.f32 %v5327_v31, %v2732_v20 }
 0x4c3   : > { %v2787_v47 = vadd.f32 %v3575_v57, %v2733_v53 }
 0x4c5   : > { %v2819_v17 = vmax.f32 %v2787_v47, 0.0 }
 0x4c7   : > { %2851 = vst [vmem:[%s5337_s20 + $0x88] sm:$0xff] %v2819_v17  ;;  %v3588_v17 = vld [vmem:[%s3953_s15 + $0xf0] sm:$0xff] }
 0x4c8   : > { %v2735_v61 = vpop.f32.mrf.mxu2 }
 0x4c9   : > { %v2736_v2 = vadd.f32 %v5327_v31, %v2735_v61 }
 0x4cb   : > { %v2788_v5 = vadd.f32 %v3576_v37, %v2736_v2 }
 0x4cd   : > { %v2820_v14 = vmax.f32 %v2788_v5, 0.0 }
 0x4cf   : > { %2852 = vst [vmem:[%s5337_s20 + $0x90] sm:$0xff] %v2820_v14  ;;  %v3589_v14 = vld [vmem:[%s3953_s15 + $0xf8] sm:$0xff] }
 0x4d0   : > { %v2737_v11 = vpop.f32.mrf.mxu2 }
 0x4d1   : > { %v2738_v48 = vadd.f32 %v5327_v31, %v2737_v11 }
 0x4d3   : > { %v2789_v42 = vadd.f32 %v3577_v35, %v2738_v48 }
 0x4d5   : > { %v2821_v45 = vmax.f32 %v2789_v42, 0.0 }
 0x4d7   : > { %2853 = vst [vmem:[%s5337_s20 + $0x98] sm:$0xff] %v2821_v45 }
 0x4d8   : > { %v2740_v50 = vpop.f32.mrf.mxu2 }
 0x4d9   : > { %v2741_v6 = vadd.f32 %v5327_v31, %v2740_v50 }
 0x4db   : > { %v2790_v16 = vadd.f32 %v3578_v13, %v2741_v6 }
 0x4dd   : > { %v2822_v55 = vmax.f32 %v2790_v16, 0.0 }
 0x4df   : > { %2854 = vst [vmem:[%s5337_s20 + $0xa0] sm:$0xff] %v2822_v55 }
 0x4e0   : > { %v2742_v59 = vpop.f32.mrf.mxu2 }
 0x4e1   : > { %v2743_v41 = vadd.f32 %v5327_v31, %v2742_v59 }
 0x4e3   : > { %v2791_v26 = vadd.f32 %v3579_v52, %v2743_v41 }
 0x4e5   : > { %v2823_v30 = vmax.f32 %v2791_v26, 0.0 }
 0x4e7   : > { %2855 = vst [vmem:[%s5337_s20 + $0xa8] sm:$0xff] %v2823_v30 }
 0x4e8   : > { %v2745_v3 = vpop.f32.mrf.mxu2 }
 0x4e9   : > { %v2746_v43 = vadd.f32 %v5327_v31, %v2745_v3 }
 0x4eb   : > { %v2792_v9 = vadd.f32 %v3580_v29, %v2746_v43 }
 0x4ed   : > { %v2824_v36 = vmax.f32 %v2792_v9, 0.0 }
 0x4ef   : > { %2856 = vst [vmem:[%s5337_s20 + $0xb0] sm:$0xff] %v2824_v36 }
 0x4f0   : > { %v2747_v15 = vpop.f32.mrf.mxu2 }
 0x4f1   : > { %v2748_v34 = vadd.f32 %v5327_v31, %v2747_v15 }
 0x4f3   : > { %v2793_v38 = vadd.f32 %v3581_v51, %v2748_v34 }
 0x4f5   : > { %v2825_v56 = vmax.f32 %v2793_v38, 0.0 }
 0x4f7   : > { %2857 = vst [vmem:[%s5337_s20 + $0xb8] sm:$0xff] %v2825_v56 }
 0x4f8   : > { %v2750_v33 = vpop.f32.mrf.mxu2 }
 0x4f9   : > { %v2751_v18 = vadd.f32 %v5327_v31, %v2750_v33 }
 0x4fb   : > { %v2794_v4 = vadd.f32 %v3582_v28, %v2751_v18 }
 0x4fd   : > { %v2826_v0 = vmax.f32 %v2794_v4, 0.0 }
 0x4ff   : > { %2858 = vst [vmem:[%s5337_s20 + $0xc0] sm:$0xff] %v2826_v0 }
 0x500   : > { %v2752_v24 = vpop.f32.mrf.mxu2 }
 0x501   : > { %v2753_v8 = vadd.f32 %v5327_v31, %v2752_v24 }
 0x503   : > { %v2795_v19 = vadd.f32 %v3583_v49, %v2753_v8 }
 0x505   : > { %v2827_v60 = vmax.f32 %v2795_v19, 0.0 }
 0x507   : > { %2859 = vst [vmem:[%s5337_s20 + $0xc8] sm:$0xff] %v2827_v60 }
 0x508   : > { %v2755_v39 = vpop.f32.mrf.mxu2 }
 0x509   : > { %v2756_v44 = vadd.f32 %v5327_v31, %v2755_v39 }
 0x50b   : > { %v2796_v10 = vadd.f32 %v3584_v1, %v2756_v44 }
 0x50d   : > { %v2828_v32 = vmax.f32 %v2796_v10, 0.0 }
 0x50f   : > { %2860 = vst [vmem:[%s5337_s20 + $0xd0] sm:$0xff] %v2828_v32 }
 0x510   : > { %v2757_v27 = vpop.f32.mrf.mxu2 }
 0x511   : > { %v2758_v21 = vadd.f32 %v5327_v31, %v2757_v27 }
 0x513   : > { %v2797_v63 = vadd.f32 %v3585_v46, %v2758_v21 }
 0x515   : > { %v2829_v22 = vmax.f32 %v2797_v63, 0.0 }
 0x517   : > { %2861 = vst [vmem:[%s5337_s20 + $0xd8] sm:$0xff] %v2829_v22 }
 0x518   : > { %v2760_v23 = vpop.f32.mrf.mxu2 }
 0x519   : > { %v2761_v58 = vadd.f32 %v5327_v31, %v2760_v23 }
 0x51b   : > { %v2798_v25 = vadd.f32 %v3586_v54, %v2761_v58 }
 0x51d   : > { %v2830_v7 = vmax.f32 %v2798_v25, 0.0 }
 0x51f   : > { %2862 = vst [vmem:[%s5337_s20 + $0xe0] sm:$0xff] %v2830_v7 }
 0x520   : > { %v2762_v40 = vpop.f32.mrf.mxu2 }
 0x521   : > { %v2763_v12 = vadd.f32 %v5327_v31, %v2762_v40 }
 0x523   : > { %v2799_v20 = vadd.f32 %v3587_v62, %v2763_v12 }
 0x525   : > { %v2831_v53 = vmax.f32 %v2799_v20, 0.0 }
 0x527   : > { %2863 = vst [vmem:[%s5337_s20 + $0xe8] sm:$0xff] %v2831_v53 }
 0x528   : > { %v2765_v57 = vpop.f32.mrf.mxu2 }
 0x529   : > { %v2766_v47 = vadd.f32 %v5327_v31, %v2765_v57 }
 0x52b   : > { %v2800_v61 = vadd.f32 %v3588_v17, %v2766_v47 }
 0x52d   : > { %v2832_v2 = vmax.f32 %v2800_v61, 0.0 }
 0x52f   : > { %2864 = vst [vmem:[%s5337_s20 + $0xf0] sm:$0xff] %v2832_v2 }
 0x530   : > { %v2767_v37 = vpop.f32.mrf.mxu2 }
 0x531   : > { %v2768_v5 = vadd.f32 %v5327_v31, %v2767_v37 }
 0x533   : > { %v2801_v11 = vadd.f32 %v3589_v14, %v2768_v5 }
 0x535   : > { %v2833_v48 = vmax.f32 %v2801_v11, 0.0 }
 0x537   : > { %2865 = vst [vmem:[%s5337_s20 + $0xf8] sm:$0xff] %v2833_v48 }
 0x538   : > { %3737 = shalt.err (!%p3734_p10)
}
 0x539   : > { %s3794_s22 = smov 128   ;;  %s3795_s15 = smov 8  }
 0x53a   : > { %3484 = dma.vmem_to_hbm [thread:$0]  (%p3919_p7), %s2880_s30, 4096, %s2882_s12, %s2867_s29, %s3794_s22, %s3794_s22, %s3795_s15  }
 0x53b PF: > { %s2896_s20 = sand.u32 1, %s3772_s24   ;;  %p5787_p12 = scmp.ge.s32.totalorder %s3784_s27, 2 }
 0x53c   : > { %s2897_s9 = scalar_lea.sflag [#allocation4], %s2896_s20 }
 0x53d   : > { %p3501_p13 = pnand %p5787_p12, %p3871_p6 }
 0x53f   : > { %p3502_p0 = pneg %p3501_p13 }
 0x541   : > { %3767 = dma.done.wait (%p3502_p0), %s2897_s9, 4096  }
 0x542   : > { %3769 = vsyncadd (%p3502_p0), %s2897_s9, 4294963200  ;;  %p22_p3 = scmp.ge.s32.totalorder %s3903_s11, 4   ;;  %s5788_s24 = smov %s3776_s25 }
 0x543   : > { %s5789_s25 = smov %s3780_s26  ;;  %s5790_s26 = smov %s3915_s17 }
 0x544   : > { %s5791_s27 = smov %s3903_s11  ;;  %24 = sbr.rel (!%p22_p3) target bundleno = 9 (0x9), region = 105 }
 0x549   :  { %2903 = vsyncpa [#allocation3], 1 }
 0x54a   :  { %2905 = vsyncpa [#allocation3 + $0x1], 1 }
 0x54b   :  { %2906 = vsyncpa [#allocation6], 1 }
 0x54c   :  { %2907 = vsyncpa [#allocation9], 1 }
 0x54d   :  { %2908 = vsyncpa [#allocation4], 1 }
 0x54e   :  { %2910 = vsyncpa [#allocation4 + $0x1], 1 }

</bundles_post_ra>
